<compile_context>
chip_gen: v6e
topology: v6e:2x2x1
jax: 0.10.0
libtpu: 0.0.40
codegen_flags: <defaults>
</compile_context>

<pallas_src>
from functools import partial

import jax
import jax.numpy as jnp
from jax.experimental import pallas as pl
from jax.experimental.pallas import tpu as pltpu


def _round_up(x, m):
    return ((x + m - 1) // m) * m


def _pick_chunk(S):
    """Chunk size (timesteps) for software-pipelining the x @ W_ih projection."""
    for c in (8, 4, 2):
        if S % c == 0 and S // c >= 2:
            return c
    return max(S, 1)


# ---------------------------------------------------------------------------
# Pallas kernel: full multi-layer LSTM over the whole sequence, one invocation.
# ---------------------------------------------------------------------------
def _make_encoder_kernel(S, Bp, Hp, n_layers, chunk):
    """Build the kernel for static (S, Bp, Hp, n_layers, chunk).

    Kernel refs (in order):
      gx0_ref      : (S*Bp, 4Hp) f32   layer-0 input projection (bias folded, gate
                                       order (i, f, o, g), H-padded)
      whh_ref      : (L, Hp, 4Hp) bf16 W_hh^T per layer (gate-permuted, padded)
      wih_rest_ref : (max(L-1,1), Hp, 4Hp) bf16  W_ih^T for layers >= 1
      b_rest_ref   : (max(L-1,1), 1, 4Hp) f32    b_ih + b_hh for layers >= 1
      out_ref      : (S*Bp, Hp) f32    top-layer hidden states (all timesteps)
      h_ref, c_ref : (L, Bp, Hp) f32   final h / c per layer
      gx_scr       : VMEM scratch for the layer>=1 input projection
      act_a, act_b : ping-pong VMEM scratch for inter-layer activations
    """
    n_chunks = S // chunk          # chunk always divides S (see _pick_chunk)
    rows = chunk * Bp

    def kernel(gx0_ref, whh_ref, wih_rest_ref, b_rest_ref,
               out_ref, h_ref, c_ref, gx_scr, act_a, act_b):
        acts = (act_a, act_b)

        for layer in range(n_layers):
            is_top = layer == n_layers - 1
            # Top layer writes straight into the lane-dense, (8,128)-aligned output
            # buffer; other layers write into the ping-pong activation scratch, so
            # out_ref is never read back (no WAR alias with the projection below).
            cur = out_ref if is_top else acts[layer % 2]

            if layer == 0:
                # Layer-0 x-projection (embedding gather fused with W_ih0 + b0) was
                # precomputed outside; slice it per timestep from the input ref.
                gx_ref = gx0_ref
                proj_chunk = None
            else:
                prev = acts[(layer - 1) % 2]            # previous layer's activations
                gx_ref = gx_scr
                wih = wih_rest_ref[layer - 1]           # (Hp, 4Hp) bf16
                b = b_rest_ref[layer - 1]               # (1, 4Hp)  f32

                def proj_chunk(ck, prev=prev, wih=wih, b=b):
                    # One bf16 MXU matmul for `chunk` timesteps of the
                    # time-independent x @ W_ih^T projection, written straight to
                    # VMEM scratch (never a giant live value).
                    r0 = ck * rows
                    x = prev[r0:r0 + rows, :].astype(jnp.bfloat16)
                    gx_scr[r0:r0 + rows, :] = (
                        jnp.dot(x, wih, preferred_element_type=jnp.float32) + b)

                proj_chunk(0)                           # prologue chunk

            whh = whh_ref[layer]                        # (Hp, 4Hp) bf16
            h = jnp.zeros((Bp, Hp), jnp.float32)
            c = jnp.zeros((Bp, Hp), jnp.float32)

            # Static (fully unrolled) chunk/time loops: S is small and static here.
            # TODO(synk): lax.fori_loop(..., unroll=...) over chunks for realistic S.
            for ck in range(n_chunks):
                if proj_chunk is not None and ck + 1 < n_chunks:
                    # Issue the NEXT chunk's projection before this chunk's
                    # recurrence: independent MXU work hides under the
                    # latency-bound sigmoid/tanh chain of the cell math.
                    proj_chunk(ck + 1)

                for tl in range(chunk):
                    r0 = (ck * chunk + tl) * Bp
                    gates = gx_ref[r0:r0 + Bp, :] + jnp.dot(
                        h.astype(jnp.bfloat16), whh,
                        preferred_element_type=jnp.float32)          # (Bp, 4Hp) f32

                    # Gates pre-permuted to (i, f, o, g): one contiguous sigmoid over
                    # the first 3Hp lanes, tanh only on the last Hp lanes.  All
                    # elementwise math stays f32.
                    sig = jax.nn.sigmoid(gates[:, :3 * Hp])
                    i_g = sig[:, 0 * Hp:1 * Hp]
                    f_g = sig[:, 1 * Hp:2 * Hp]
                    o_g = sig[:, 2 * Hp:3 * Hp]
                    g_g = jnp.tanh(gates[:, 3 * Hp:4 * Hp])

                    c = f_g * c + i_g * g_g
                    h = o_g * jnp.tanh(c)
                    cur[r0:r0 + Bp, :] = h              # aligned (8,128) VMEM store

            h_ref[layer] = h
            c_ref[layer] = c

    return kernel


def encoder_lstm_pallas(gx0, whh_all, wih_rest, b_rest, S, Bp):
    """Run the multi-layer LSTM over the padded sequence in ONE gridless pallas_call."""
    n_layers, Hp, G = whh_all.shape
    assert G == 4 * Hp
    chunk = _pick_chunk(S)
    kernel = _make_encoder_kernel(S, Bp, Hp, n_layers, chunk)
    vmem = pl.BlockSpec(memory_space=pltpu.MemorySpace.VMEM)

    # Scratch buffers only need full size when actually used.
    gx_shape = (S * Bp, 4 * Hp) if n_layers >= 2 else (8, 4 * Hp)
    act_a_shape = (S * Bp, Hp) if n_layers >= 2 else (8, Hp)
    act_b_shape = (S * Bp, Hp) if n_layers >= 3 else (8, Hp)

    out_flat, hidden, cell = pl.pallas_call(
        kernel,
        out_shape=(
            jax.ShapeDtypeStruct((S * Bp, Hp), jnp.float32),
            jax.ShapeDtypeStruct((n_layers, Bp, Hp), jnp.float32),
            jax.ShapeDtypeStruct((n_layers, Bp, Hp), jnp.float32),
        ),
        in_specs=[vmem, vmem, vmem, vmem],
        out_specs=(vmem, vmem, vmem),
        scratch_shapes=[
            pltpu.VMEM(gx_shape, jnp.float32),      # layer>=1 input projection
            pltpu.VMEM(act_a_shape, jnp.float32),   # ping
            pltpu.VMEM(act_b_shape, jnp.float32),   # pong
        ],
        # Raise scoped VMEM above the 16 MiB v5e default; harmless at toy sizes.
        compiler_params=pltpu.CompilerParams(vmem_limit_bytes=32 * 1024 * 1024),
    )(gx0, whh_all, wih_rest, b_rest)
    return out_flat, hidden, cell


# ---------------------------------------------------------------------------
# Parameters (PyTorch-like raw params) and one-time kernel-ready preparation.
# ---------------------------------------------------------------------------
def make_encoder_params(key, input_dim, emb_dim, hid_dim, n_layers):
    """Deterministic parameter init (PyTorch-like shapes / ranges)."""
    keys = jax.random.split(key, 1 + 4 * n_layers)
    params = {"embedding": jax.random.normal(keys[0], (input_dim, emb_dim), jnp.float32)}
    k = 1.0 / jnp.sqrt(hid_dim)
    layers = []
    for l in range(n_layers):
        in_sz = emb_dim if l == 0 else hid_dim
        kw = keys[1 + 4 * l: 1 + 4 * (l + 1)]
        layers.append({
            "w_ih": jax.random.uniform(kw[0], (4 * hid_dim, in_sz), jnp.float32, -k, k),
            "w_hh": jax.random.uniform(kw[1], (4 * hid_dim, hid_dim), jnp.float32, -k, k),
            "b_ih": jax.random.uniform(kw[2], (4 * hid_dim,), jnp.float32, -k, k),
            "b_hh": jax.random.uniform(kw[3], (4 * hid_dim,), jnp.float32, -k, k),
        })
    params["lstm"] = layers
    return params


def _reorder_pad_gates(w, H, Hp):
    """Last-dim gate blocks from PyTorch (i, f, g, o) order to (i, f, o, g),
    each H-wide block zero-padded to Hp lanes."""
    pad = [(0, 0)] * (w.ndim - 1) + [(0, Hp - H)]
    i, f, g, o = (w[..., k * H:(k + 1) * H] for k in range(4))
    return jnp.concatenate([jnp.pad(b, pad) for b in (i, f, o, g)], axis=-1)


def prepare_encoder_params(params, lanes=128):
    """One-time transform to kernel-ready layout (do NOT redo per forward)."""
    layers = params["lstm"]
    n_layers = len(layers)
    H = layers[0]["w_hh"].shape[1]
    Hp = _round_up(H, lanes)                      # pad hidden dim to full lanes
    emb = params["embedding"].astype(jnp.float32)

    # Fuse embedding gather with the layer-0 input projection + bias:
    #   take(emb, src) @ W_ih0^T + b0 == take(emb @ W_ih0^T + b0, src)
    # (valid because eval-mode dropout is identity).  Gate-permute + pad columns.
    l0 = layers[0]
    b0 = (l0["b_ih"] + l0["b_hh"]).astype(jnp.float32)
    emb_proj = emb @ jnp.transpose(l0["w_ih"]).astype(jnp.float32) + b0   # (vocab, 4H)
    emb_proj = _reorder_pad_gates(emb_proj, H, Hp)                        # (vocab, 4Hp)

    def prep_sq_weight(w):
        # (4H, H) PyTorch -> (Hp, 4Hp) transposed, gate-permuted, zero-padded, bf16.
        wt = jnp.transpose(w).astype(jnp.float32)            # (H, 4H)
        wt = _reorder_pad_gates(wt, H, Hp)                    # (H, 4Hp)
        wt = jnp.pad(wt, ((0, Hp - H), (0, 0)))               # (Hp, 4Hp)
        return wt.astype(jnp.bfloat16)

    whh_all = jnp.stack([prep_sq_weight(l["w_hh"]) for l in layers])      # (L, Hp, 4Hp)

    if n_layers > 1:
        wih_rest = jnp.stack([prep_sq_weight(l["w_ih"]) for l in layers[1:]])
        b_rest = jnp.stack([
            _reorder_pad_gates((l["b_ih"] + l["b_hh"]).astype(jnp.float32), H, Hp
                               ).reshape(1, 4 * Hp)
            for l in layers[1:]])                                         # (L-1, 1, 4Hp)
    else:
        wih_rest = jnp.zeros((1, Hp, 4 * Hp), jnp.bfloat16)   # unused dummy
        b_rest = jnp.zeros((1, 1, 4 * Hp), jnp.float32)       # unused dummy

    return {"emb_proj": emb_proj, "whh": whh_all, "wih_rest": wih_rest, "b_rest": b_rest}


@partial(jax.jit, static_argnames=("hid_dim",))
def encoder_forward(prep, src, *, hid_dim):
    """src: (S, B) int32 token ids -> (output, hidden, cell)."""
    S, B = src.shape
    Hp = prep["whh"].shape[1]
    Bp = _round_up(B, 8)                          # pad batch to full sublanes
    src_p = jnp.pad(src, ((0, 0), (0, Bp - B)))   # padded columns use token 0, sliced off

    # Embedding lookup + layer-0 x-projection + bias, all via one gather on emb_proj.
    # Dropout is identity in eval mode.
    # TODO(synk): at large S*B*4H, move this gather in-kernel via scalar prefetch.
    gx0 = jnp.take(prep["emb_proj"], src_p.reshape(S * Bp), axis=0)       # (S*Bp, 4Hp)

    out_flat, hidden_p, cell_p = encoder_lstm_pallas(
        gx0, prep["whh"], prep["wih_rest"], prep["b_rest"], S, Bp)

    output = out_flat.reshape(S, Bp, Hp)[:, :B, :hid_dim]
    hidden = hidden_p[:, :B, :hid_dim]
    cell = cell_p[:, :B, :hid_dim]
    return output, hidden, cell


# ---------------------------------------------------------------------------
# Pure-JAX reference (same math, PyTorch gate order) for a correctness check.
# ---------------------------------------------------------------------------
def _reference_encoder(params, src):
    x = jnp.take(params["embedding"], src, axis=0)          # (S, B, E)
    hs, cs = [], []
    for layer in params["lstm"]:
        w_ih, w_hh = layer["w_ih"], layer["w_hh"]
        b = layer["b_ih"] + layer["b_hh"]
        H = w_hh.shape[1]
        B = x.shape[1]

        def step(carry, x_t, w_ih=w_ih, w_hh=w_hh, b=b, H=H):
            h, c = carry
            gates = x_t @ w_ih.T + h @ w_hh.T + b
            i = jax.nn.sigmoid(gates[:, 0 * H:1 * H])
            f = jax.nn.sigmoid(gates[:, 1 * H:2 * H])
            g = jnp.tanh(gates[:, 2 * H:3 * H])
            o = jax.nn.sigmoid(gates[:, 3 * H:4 * H])
            c = f * c + i * g
            h = o * jnp.tanh(c)
            return (h, c), h

        init = (jnp.zeros((B, H), jnp.float32), jnp.zeros((B, H), jnp.float32))
        (h_n, c_n), ys = jax.lax.scan(step, init, x)
        x = ys
        hs.append(h_n)
        cs.append(c_n)
    return x, jnp.stack(hs, axis=0), jnp.stack(cs, axis=0)


if __name__ == "__main__":
    INPUT_DIM = 50     # vocab size
    EMB_DIM = 16
    HID_DIM = 32
    N_LAYERS = 2
    SEQ_LEN = 8
    BATCH = 2

    key = jax.random.PRNGKey(0)
    pkey, skey = jax.random.split(key)
    params = make_encoder_params(pkey, INPUT_DIM, EMB_DIM, HID_DIM, N_LAYERS)
    prep = prepare_encoder_params(params)        # one-time, outside the forward pass
    src = jax.random.randint(skey, (SEQ_LEN, BATCH), 0, INPUT_DIM, dtype=jnp.int32)

    output, hidden, cell = encoder_forward(prep, src, hid_dim=HID_DIM)
    jax.block_until_ready((output, hidden, cell))

    assert output.shape == (SEQ_LEN, BATCH, HID_DIM)
    assert hidden.shape == (N_LAYERS, BATCH, HID_DIM)
    assert cell.shape == (N_LAYERS, BATCH, HID_DIM)

    # Loose-tolerance numeric check vs pure-JAX f32 reference (bf16 MXU operands).
    ref_out, ref_h, ref_c = _reference_encoder(params, src)
    tol = 5e-2
    assert float(jnp.max(jnp.abs(output - ref_out))) < tol
    assert float(jnp.max(jnp.abs(hidden - ref_h))) < tol
    assert float(jnp.max(jnp.abs(cell - ref_c))) < tol

    print("KERNEL_OK")
</pallas_src>

<mosaic_0001>
module attributes {stable_mosaic.version = 11 : i64} {
  func.func @kernel(%arg0: memref<64x512xf32, #tpu.memory_space<vmem>>, %arg1: memref<2x128x512xbf16, #tpu.memory_space<vmem>>, %arg2: memref<1x128x512xbf16, #tpu.memory_space<vmem>>, %arg3: memref<1x1x512xf32, #tpu.memory_space<vmem>>, %arg4: memref<64x128xf32, #tpu.memory_space<vmem>>, %arg5: memref<2x8x128xf32, #tpu.memory_space<vmem>>, %arg6: memref<2x8x128xf32, #tpu.memory_space<vmem>>, %arg7: memref<64x512xf32, #tpu.memory_space<vmem>>, %arg8: memref<64x128xf32, #tpu.memory_space<vmem>>, %arg9: memref<8x128xf32, #tpu.memory_space<vmem>>) attributes {dimension_semantics = [], scalar_prefetch = 0 : i64, scratch_operands = 3 : i64, tpu.core_type = #tpu.core_type<tc>} {
    %c0 = arith.constant 0 : index
    %c0_0 = arith.constant 0 : index
    %c0_1 = arith.constant 0 : index
    %0 = vector.load %arg1[%c0, %c0_0, %c0_1] : memref<2x128x512xbf16, #tpu.memory_space<vmem>>, vector<1x128x512xbf16>
    %1 = vector.shape_cast %0 : vector<1x128x512xbf16> to vector<128x512xbf16>
    %cst = arith.constant 0.000000e+00 : f32
    %2 = vector.broadcast %cst : f32 to vector<8x128xf32>
    %cst_2 = arith.constant 0.000000e+00 : f32
    %3 = vector.broadcast %cst_2 : f32 to vector<8x128xf32>
    %c0_3 = arith.constant 0 : index
    %c0_4 = arith.constant 0 : index
    %4 = vector.load %arg0[%c0_3, %c0_4] : memref<64x512xf32, #tpu.memory_space<vmem>>, vector<8x512xf32>
    %5 = arith.truncf %2 : vector<8x128xf32> to vector<8x128xbf16>
    %cst_5 = arith.constant dense<0.000000e+00> : vector<8x512xf32>
    %6 = tpu.matmul %5, %1, %cst_5 {dimension_numbers = #tpu.dot_dimension_numbers<[1], [0], [0], [1], [0, 0, 1, 1], [], []>} : vector<8x128xbf16>, vector<128x512xbf16>, vector<8x512xf32> -> vector<8x512xf32>
    %7 = arith.addf %4, %6 : vector<8x512xf32>
    %8 = vector.extract_strided_slice %7 {offsets = [0, 0], sizes = [8, 384], strides = [1, 1]} : vector<8x512xf32> to vector<8x384xf32>
    %9 = arith.negf %8 : vector<8x384xf32>
    %10 = math.exp %9 : vector<8x384xf32>
    %cst_6 = arith.constant 1.000000e+00 : f32
    %11 = vector.broadcast %cst_6 : f32 to vector<8x384xf32>
    %12 = arith.addf %11, %10 : vector<8x384xf32>
    %13 = arith.divf %11, %12 : vector<8x384xf32>
    %14 = vector.extract_strided_slice %13 {offsets = [0, 0], sizes = [8, 128], strides = [1, 1]} : vector<8x384xf32> to vector<8x128xf32>
    %15 = vector.extract_strided_slice %13 {offsets = [0, 128], sizes = [8, 128], strides = [1, 1]} : vector<8x384xf32> to vector<8x128xf32>
    %16 = vector.extract_strided_slice %13 {offsets = [0, 256], sizes = [8, 128], strides = [1, 1]} : vector<8x384xf32> to vector<8x128xf32>
    %17 = vector.extract_strided_slice %7 {offsets = [0, 384], sizes = [8, 128], strides = [1, 1]} : vector<8x512xf32> to vector<8x128xf32>
    %18 = math.tanh %17 : vector<8x128xf32>
    %19 = arith.mulf %15, %3 : vector<8x128xf32>
    %20 = arith.mulf %14, %18 : vector<8x128xf32>
    %21 = arith.addf %19, %20 : vector<8x128xf32>
    %22 = math.tanh %21 : vector<8x128xf32>
    %23 = arith.mulf %16, %22 : vector<8x128xf32>
    %c0_7 = arith.constant 0 : index
    %c0_8 = arith.constant 0 : index
    %24 = vector.load %arg8[%c0_7, %c0_8] : memref<64x128xf32, #tpu.memory_space<vmem>>, vector<8x128xf32>
    tpu.vector_store %arg8[%c0_7, %c0_8], %23 {strides = array<i32>} : memref<64x128xf32, #tpu.memory_space<vmem>>, vector<8x128xf32>,
    %c8 = arith.constant 8 : index
    %c0_9 = arith.constant 0 : index
    %25 = vector.load %arg0[%c8, %c0_9] : memref<64x512xf32, #tpu.memory_space<vmem>>, vector<8x512xf32>
    %26 = arith.truncf %23 : vector<8x128xf32> to vector<8x128xbf16>
    %cst_10 = arith.constant dense<0.000000e+00> : vector<8x512xf32>
    %27 = tpu.matmul %26, %1, %cst_10 {dimension_numbers = #tpu.dot_dimension_numbers<[1], [0], [0], [1], [0, 0, 1, 1], [], []>} : vector<8x128xbf16>, vector<128x512xbf16>, vector<8x512xf32> -> vector<8x512xf32>
    %28 = arith.addf %25, %27 : vector<8x512xf32>
    %29 = vector.extract_strided_slice %28 {offsets = [0, 0], sizes = [8, 384], strides = [1, 1]} : vector<8x512xf32> to vector<8x384xf32>
    %30 = arith.negf %29 : vector<8x384xf32>
    %31 = math.exp %30 : vector<8x384xf32>
    %cst_11 = arith.constant 1.000000e+00 : f32
    %32 = vector.broadcast %cst_11 : f32 to vector<8x384xf32>
    %33 = arith.addf %32, %31 : vector<8x384xf32>
    %34 = arith.divf %32, %33 : vector<8x384xf32>
    %35 = vector.extract_strided_slice %34 {offsets = [0, 0], sizes = [8, 128], strides = [1, 1]} : vector<8x384xf32> to vector<8x128xf32>
    %36 = vector.extract_strided_slice %34 {offsets = [0, 128], sizes = [8, 128], strides = [1, 1]} : vector<8x384xf32> to vector<8x128xf32>
    %37 = vector.extract_strided_slice %34 {offsets = [0, 256], sizes = [8, 128], strides = [1, 1]} : vector<8x384xf32> to vector<8x128xf32>
    %38 = vector.extract_strided_slice %28 {offsets = [0, 384], sizes = [8, 128], strides = [1, 1]} : vector<8x512xf32> to vector<8x128xf32>
    %39 = math.tanh %38 : vector<8x128xf32>
    %40 = arith.mulf %36, %21 : vector<8x128xf32>
    %41 = arith.mulf %35, %39 : vector<8x128xf32>
    %42 = arith.addf %40, %41 : vector<8x128xf32>
    %43 = math.tanh %42 : vector<8x128xf32>
    %44 = arith.mulf %37, %43 : vector<8x128xf32>
    %c8_12 = arith.constant 8 : index
    %c0_13 = arith.constant 0 : index
    %45 = vector.load %arg8[%c8_12, %c0_13] : memref<64x128xf32, #tpu.memory_space<vmem>>, vector<8x128xf32>
    tpu.vector_store %arg8[%c8_12, %c0_13], %44 {strides = array<i32>} : memref<64x128xf32, #tpu.memory_space<vmem>>, vector<8x128xf32>,
    %c16 = arith.constant 16 : index
    %c0_14 = arith.constant 0 : index
    %46 = vector.load %arg0[%c16, %c0_14] : memref<64x512xf32, #tpu.memory_space<vmem>>, vector<8x512xf32>
    %47 = arith.truncf %44 : vector<8x128xf32> to vector<8x128xbf16>
    %cst_15 = arith.constant dense<0.000000e+00> : vector<8x512xf32>
    %48 = tpu.matmul %47, %1, %cst_15 {dimension_numbers = #tpu.dot_dimension_numbers<[1], [0], [0], [1], [0, 0, 1, 1], [], []>} : vector<8x128xbf16>, vector<128x512xbf16>, vector<8x512xf32> -> vector<8x512xf32>
    %49 = arith.addf %46, %48 : vector<8x512xf32>
    %50 = vector.extract_strided_slice %49 {offsets = [0, 0], sizes = [8, 384], strides = [1, 1]} : vector<8x512xf32> to vector<8x384xf32>
    %51 = arith.negf %50 : vector<8x384xf32>
    %52 = math.exp %51 : vector<8x384xf32>
    %cst_16 = arith.constant 1.000000e+00 : f32
    %53 = vector.broadcast %cst_16 : f32 to vector<8x384xf32>
    %54 = arith.addf %53, %52 : vector<8x384xf32>
    %55 = arith.divf %53, %54 : vector<8x384xf32>
    %56 = vector.extract_strided_slice %55 {offsets = [0, 0], sizes = [8, 128], strides = [1, 1]} : vector<8x384xf32> to vector<8x128xf32>
    %57 = vector.extract_strided_slice %55 {offsets = [0, 128], sizes = [8, 128], strides = [1, 1]} : vector<8x384xf32> to vector<8x128xf32>
    %58 = vector.extract_strided_slice %55 {offsets = [0, 256], sizes = [8, 128], strides = [1, 1]} : vector<8x384xf32> to vector<8x128xf32>
    %59 = vector.extract_strided_slice %49 {offsets = [0, 384], sizes = [8, 128], strides = [1, 1]} : vector<8x512xf32> to vector<8x128xf32>
    %60 = math.tanh %59 : vector<8x128xf32>
    %61 = arith.mulf %57, %42 : vector<8x128xf32>
    %62 = arith.mulf %56, %60 : vector<8x128xf32>
    %63 = arith.addf %61, %62 : vector<8x128xf32>
    %64 = math.tanh %63 : vector<8x128xf32>
    %65 = arith.mulf %58, %64 : vector<8x128xf32>
    %c16_17 = arith.constant 16 : index
    %c0_18 = arith.constant 0 : index
    %66 = vector.load %arg8[%c16_17, %c0_18] : memref<64x128xf32, #tpu.memory_space<vmem>>, vector<8x128xf32>
    tpu.vector_store %arg8[%c16_17, %c0_18], %65 {strides = array<i32>} : memref<64x128xf32, #tpu.memory_space<vmem>>, vector<8x128xf32>,
    %c24 = arith.constant 24 : index
    %c0_19 = arith.constant 0 : index
    %67 = vector.load %arg0[%c24, %c0_19] : memref<64x512xf32, #tpu.memory_space<vmem>>, vector<8x512xf32>
    %68 = arith.truncf %65 : vector<8x128xf32> to vector<8x128xbf16>
    %cst_20 = arith.constant dense<0.000000e+00> : vector<8x512xf32>
    %69 = tpu.matmul %68, %1, %cst_20 {dimension_numbers = #tpu.dot_dimension_numbers<[1], [0], [0], [1], [0, 0, 1, 1], [], []>} : vector<8x128xbf16>, vector<128x512xbf16>, vector<8x512xf32> -> vector<8x512xf32>
    %70 = arith.addf %67, %69 : vector<8x512xf32>
    %71 = vector.extract_strided_slice %70 {offsets = [0, 0], sizes = [8, 384], strides = [1, 1]} : vector<8x512xf32> to vector<8x384xf32>
    %72 = arith.negf %71 : vector<8x384xf32>
    %73 = math.exp %72 : vector<8x384xf32>
    %cst_21 = arith.constant 1.000000e+00 : f32
    %74 = vector.broadcast %cst_21 : f32 to vector<8x384xf32>
    %75 = arith.addf %74, %73 : vector<8x384xf32>
    %76 = arith.divf %74, %75 : vector<8x384xf32>
    %77 = vector.extract_strided_slice %76 {offsets = [0, 0], sizes = [8, 128], strides = [1, 1]} : vector<8x384xf32> to vector<8x128xf32>
    %78 = vector.extract_strided_slice %76 {offsets = [0, 128], sizes = [8, 128], strides = [1, 1]} : vector<8x384xf32> to vector<8x128xf32>
    %79 = vector.extract_strided_slice %76 {offsets = [0, 256], sizes = [8, 128], strides = [1, 1]} : vector<8x384xf32> to vector<8x128xf32>
    %80 = vector.extract_strided_slice %70 {offsets = [0, 384], sizes = [8, 128], strides = [1, 1]} : vector<8x512xf32> to vector<8x128xf32>
    %81 = math.tanh %80 : vector<8x128xf32>
    %82 = arith.mulf %78, %63 : vector<8x128xf32>
    %83 = arith.mulf %77, %81 : vector<8x128xf32>
    %84 = arith.addf %82, %83 : vector<8x128xf32>
    %85 = math.tanh %84 : vector<8x128xf32>
    %86 = arith.mulf %79, %85 : vector<8x128xf32>
    %c24_22 = arith.constant 24 : index
    %c0_23 = arith.constant 0 : index
    %87 = vector.load %arg8[%c24_22, %c0_23] : memref<64x128xf32, #tpu.memory_space<vmem>>, vector<8x128xf32>
    tpu.vector_store %arg8[%c24_22, %c0_23], %86 {strides = array<i32>} : memref<64x128xf32, #tpu.memory_space<vmem>>, vector<8x128xf32>,
    %c32 = arith.constant 32 : index
    %c0_24 = arith.constant 0 : index
    %88 = vector.load %arg0[%c32, %c0_24] : memref<64x512xf32, #tpu.memory_space<vmem>>, vector<8x512xf32>
    %89 = arith.truncf %86 : vector<8x128xf32> to vector<8x128xbf16>
    %cst_25 = arith.constant dense<0.000000e+00> : vector<8x512xf32>
    %90 = tpu.matmul %89, %1, %cst_25 {dimension_numbers = #tpu.dot_dimension_numbers<[1], [0], [0], [1], [0, 0, 1, 1], [], []>} : vector<8x128xbf16>, vector<128x512xbf16>, vector<8x512xf32> -> vector<8x512xf32>
    %91 = arith.addf %88, %90 : vector<8x512xf32>
    %92 = vector.extract_strided_slice %91 {offsets = [0, 0], sizes = [8, 384], strides = [1, 1]} : vector<8x512xf32> to vector<8x384xf32>
    %93 = arith.negf %92 : vector<8x384xf32>
    %94 = math.exp %93 : vector<8x384xf32>
    %cst_26 = arith.constant 1.000000e+00 : f32
    %95 = vector.broadcast %cst_26 : f32 to vector<8x384xf32>
    %96 = arith.addf %95, %94 : vector<8x384xf32>
    %97 = arith.divf %95, %96 : vector<8x384xf32>
    %98 = vector.extract_strided_slice %97 {offsets = [0, 0], sizes = [8, 128], strides = [1, 1]} : vector<8x384xf32> to vector<8x128xf32>
    %99 = vector.extract_strided_slice %97 {offsets = [0, 128], sizes = [8, 128], strides = [1, 1]} : vector<8x384xf32> to vector<8x128xf32>
    %100 = vector.extract_strided_slice %97 {offsets = [0, 256], sizes = [8, 128], strides = [1, 1]} : vector<8x384xf32> to vector<8x128xf32>
    %101 = vector.extract_strided_slice %91 {offsets = [0, 384], sizes = [8, 128], strides = [1, 1]} : vector<8x512xf32> to vector<8x128xf32>
    %102 = math.tanh %101 : vector<8x128xf32>
    %103 = arith.mulf %99, %84 : vector<8x128xf32>
    %104 = arith.mulf %98, %102 : vector<8x128xf32>
    %105 = arith.addf %103, %104 : vector<8x128xf32>
    %106 = math.tanh %105 : vector<8x128xf32>
    %107 = arith.mulf %100, %106 : vector<8x128xf32>
    %c32_27 = arith.constant 32 : index
    %c0_28 = arith.constant 0 : index
    %108 = vector.load %arg8[%c32_27, %c0_28] : memref<64x128xf32, #tpu.memory_space<vmem>>, vector<8x128xf32>
    tpu.vector_store %arg8[%c32_27, %c0_28], %107 {strides = array<i32>} : memref<64x128xf32, #tpu.memory_space<vmem>>, vector<8x128xf32>,
    %c40 = arith.constant 40 : index
    %c0_29 = arith.constant 0 : index
    %109 = vector.load %arg0[%c40, %c0_29] : memref<64x512xf32, #tpu.memory_space<vmem>>, vector<8x512xf32>
    %110 = arith.truncf %107 : vector<8x128xf32> to vector<8x128xbf16>
    %cst_30 = arith.constant dense<0.000000e+00> : vector<8x512xf32>
    %111 = tpu.matmul %110, %1, %cst_30 {dimension_numbers = #tpu.dot_dimension_numbers<[1], [0], [0], [1], [0, 0, 1, 1], [], []>} : vector<8x128xbf16>, vector<128x512xbf16>, vector<8x512xf32> -> vector<8x512xf32>
    %112 = arith.addf %109, %111 : vector<8x512xf32>
    %113 = vector.extract_strided_slice %112 {offsets = [0, 0], sizes = [8, 384], strides = [1, 1]} : vector<8x512xf32> to vector<8x384xf32>
    %114 = arith.negf %113 : vector<8x384xf32>
    %115 = math.exp %114 : vector<8x384xf32>
    %cst_31 = arith.constant 1.000000e+00 : f32
    %116 = vector.broadcast %cst_31 : f32 to vector<8x384xf32>
    %117 = arith.addf %116, %115 : vector<8x384xf32>
    %118 = arith.divf %116, %117 : vector<8x384xf32>
    %119 = vector.extract_strided_slice %118 {offsets = [0, 0], sizes = [8, 128], strides = [1, 1]} : vector<8x384xf32> to vector<8x128xf32>
    %120 = vector.extract_strided_slice %118 {offsets = [0, 128], sizes = [8, 128], strides = [1, 1]} : vector<8x384xf32> to vector<8x128xf32>
    %121 = vector.extract_strided_slice %118 {offsets = [0, 256], sizes = [8, 128], strides = [1, 1]} : vector<8x384xf32> to vector<8x128xf32>
    %122 = vector.extract_strided_slice %112 {offsets = [0, 384], sizes = [8, 128], strides = [1, 1]} : vector<8x512xf32> to vector<8x128xf32>
    %123 = math.tanh %122 : vector<8x128xf32>
    %124 = arith.mulf %120, %105 : vector<8x128xf32>
    %125 = arith.mulf %119, %123 : vector<8x128xf32>
    %126 = arith.addf %124, %125 : vector<8x128xf32>
    %127 = math.tanh %126 : vector<8x128xf32>
    %128 = arith.mulf %121, %127 : vector<8x128xf32>
    %c40_32 = arith.constant 40 : index
    %c0_33 = arith.constant 0 : index
    %129 = vector.load %arg8[%c40_32, %c0_33] : memref<64x128xf32, #tpu.memory_space<vmem>>, vector<8x128xf32>
    tpu.vector_store %arg8[%c40_32, %c0_33], %128 {strides = array<i32>} : memref<64x128xf32, #tpu.memory_space<vmem>>, vector<8x128xf32>,
    %c48 = arith.constant 48 : index
    %c0_34 = arith.constant 0 : index
    %130 = vector.load %arg0[%c48, %c0_34] : memref<64x512xf32, #tpu.memory_space<vmem>>, vector<8x512xf32>
    %131 = arith.truncf %128 : vector<8x128xf32> to vector<8x128xbf16>
    %cst_35 = arith.constant dense<0.000000e+00> : vector<8x512xf32>
    %132 = tpu.matmul %131, %1, %cst_35 {dimension_numbers = #tpu.dot_dimension_numbers<[1], [0], [0], [1], [0, 0, 1, 1], [], []>} : vector<8x128xbf16>, vector<128x512xbf16>, vector<8x512xf32> -> vector<8x512xf32>
    %133 = arith.addf %130, %132 : vector<8x512xf32>
    %134 = vector.extract_strided_slice %133 {offsets = [0, 0], sizes = [8, 384], strides = [1, 1]} : vector<8x512xf32> to vector<8x384xf32>
    %135 = arith.negf %134 : vector<8x384xf32>
    %136 = math.exp %135 : vector<8x384xf32>
    %cst_36 = arith.constant 1.000000e+00 : f32
    %137 = vector.broadcast %cst_36 : f32 to vector<8x384xf32>
    %138 = arith.addf %137, %136 : vector<8x384xf32>
    %139 = arith.divf %137, %138 : vector<8x384xf32>
    %140 = vector.extract_strided_slice %139 {offsets = [0, 0], sizes = [8, 128], strides = [1, 1]} : vector<8x384xf32> to vector<8x128xf32>
    %141 = vector.extract_strided_slice %139 {offsets = [0, 128], sizes = [8, 128], strides = [1, 1]} : vector<8x384xf32> to vector<8x128xf32>
    %142 = vector.extract_strided_slice %139 {offsets = [0, 256], sizes = [8, 128], strides = [1, 1]} : vector<8x384xf32> to vector<8x128xf32>
    %143 = vector.extract_strided_slice %133 {offsets = [0, 384], sizes = [8, 128], strides = [1, 1]} : vector<8x512xf32> to vector<8x128xf32>
    %144 = math.tanh %143 : vector<8x128xf32>
    %145 = arith.mulf %141, %126 : vector<8x128xf32>
    %146 = arith.mulf %140, %144 : vector<8x128xf32>
    %147 = arith.addf %145, %146 : vector<8x128xf32>
    %148 = math.tanh %147 : vector<8x128xf32>
    %149 = arith.mulf %142, %148 : vector<8x128xf32>
    %c48_37 = arith.constant 48 : index
    %c0_38 = arith.constant 0 : index
    %150 = vector.load %arg8[%c48_37, %c0_38] : memref<64x128xf32, #tpu.memory_space<vmem>>, vector<8x128xf32>
    tpu.vector_store %arg8[%c48_37, %c0_38], %149 {strides = array<i32>} : memref<64x128xf32, #tpu.memory_space<vmem>>, vector<8x128xf32>,
    %c56 = arith.constant 56 : index
    %c0_39 = arith.constant 0 : index
    %151 = vector.load %arg0[%c56, %c0_39] : memref<64x512xf32, #tpu.memory_space<vmem>>, vector<8x512xf32>
    %152 = arith.truncf %149 : vector<8x128xf32> to vector<8x128xbf16>
    %cst_40 = arith.constant dense<0.000000e+00> : vector<8x512xf32>
    %153 = tpu.matmul %152, %1, %cst_40 {dimension_numbers = #tpu.dot_dimension_numbers<[1], [0], [0], [1], [0, 0, 1, 1], [], []>} : vector<8x128xbf16>, vector<128x512xbf16>, vector<8x512xf32> -> vector<8x512xf32>
    %154 = arith.addf %151, %153 : vector<8x512xf32>
    %155 = vector.extract_strided_slice %154 {offsets = [0, 0], sizes = [8, 384], strides = [1, 1]} : vector<8x512xf32> to vector<8x384xf32>
    %156 = arith.negf %155 : vector<8x384xf32>
    %157 = math.exp %156 : vector<8x384xf32>
    %cst_41 = arith.constant 1.000000e+00 : f32
    %158 = vector.broadcast %cst_41 : f32 to vector<8x384xf32>
    %159 = arith.addf %158, %157 : vector<8x384xf32>
    %160 = arith.divf %158, %159 : vector<8x384xf32>
    %161 = vector.extract_strided_slice %160 {offsets = [0, 0], sizes = [8, 128], strides = [1, 1]} : vector<8x384xf32> to vector<8x128xf32>
    %162 = vector.extract_strided_slice %160 {offsets = [0, 128], sizes = [8, 128], strides = [1, 1]} : vector<8x384xf32> to vector<8x128xf32>
    %163 = vector.extract_strided_slice %160 {offsets = [0, 256], sizes = [8, 128], strides = [1, 1]} : vector<8x384xf32> to vector<8x128xf32>
    %164 = vector.extract_strided_slice %154 {offsets = [0, 384], sizes = [8, 128], strides = [1, 1]} : vector<8x512xf32> to vector<8x128xf32>
    %165 = math.tanh %164 : vector<8x128xf32>
    %166 = arith.mulf %162, %147 : vector<8x128xf32>
    %167 = arith.mulf %161, %165 : vector<8x128xf32>
    %168 = arith.addf %166, %167 : vector<8x128xf32>
    %169 = math.tanh %168 : vector<8x128xf32>
    %170 = arith.mulf %163, %169 : vector<8x128xf32>
    %c56_42 = arith.constant 56 : index
    %c0_43 = arith.constant 0 : index
    %171 = vector.load %arg8[%c56_42, %c0_43] : memref<64x128xf32, #tpu.memory_space<vmem>>, vector<8x128xf32>
    tpu.vector_store %arg8[%c56_42, %c0_43], %170 {strides = array<i32>} : memref<64x128xf32, #tpu.memory_space<vmem>>, vector<8x128xf32>,
    %c0_44 = arith.constant 0 : index
    %c0_45 = arith.constant 0 : index
    %c0_46 = arith.constant 0 : index
    %172 = vector.load %arg5[%c0_44, %c0_45, %c0_46] : memref<2x8x128xf32, #tpu.memory_space<vmem>>, vector<1x8x128xf32>
    %173 = vector.shape_cast %172 : vector<1x8x128xf32> to vector<8x128xf32>
    %174 = vector.shape_cast %170 : vector<8x128xf32> to vector<1x8x128xf32>
    tpu.vector_store %arg5[%c0_44, %c0_45, %c0_46], %174 {strides = array<i32>} : memref<2x8x128xf32, #tpu.memory_space<vmem>>, vector<1x8x128xf32>,
    %c0_47 = arith.constant 0 : index
    %c0_48 = arith.constant 0 : index
    %c0_49 = arith.constant 0 : index
    %175 = vector.load %arg6[%c0_47, %c0_48, %c0_49] : memref<2x8x128xf32, #tpu.memory_space<vmem>>, vector<1x8x128xf32>
    %176 = vector.shape_cast %175 : vector<1x8x128xf32> to vector<8x128xf32>
    %177 = vector.shape_cast %168 : vector<8x128xf32> to vector<1x8x128xf32>
    tpu.vector_store %arg6[%c0_47, %c0_48, %c0_49], %177 {strides = array<i32>} : memref<2x8x128xf32, #tpu.memory_space<vmem>>, vector<1x8x128xf32>,
    %c0_50 = arith.constant 0 : index
    %c0_51 = arith.constant 0 : index
    %c0_52 = arith.constant 0 : index
    %178 = vector.load %arg2[%c0_50, %c0_51, %c0_52] : memref<1x128x512xbf16, #tpu.memory_space<vmem>>, vector<1x128x512xbf16>
    %179 = vector.shape_cast %178 : vector<1x128x512xbf16> to vector<128x512xbf16>
    %c0_53 = arith.constant 0 : index
    %c0_54 = arith.constant 0 : index
    %c0_55 = arith.constant 0 : index
    %180 = vector.load %arg3[%c0_53, %c0_54, %c0_55] : memref<1x1x512xf32, #tpu.memory_space<vmem>>, vector<1x1x512xf32>
    %181 = vector.shape_cast %180 : vector<1x1x512xf32> to vector<1x512xf32>
    %c0_56 = arith.constant 0 : index
    %c0_57 = arith.constant 0 : index
    %182 = vector.load %arg8[%c0_56, %c0_57] : memref<64x128xf32, #tpu.memory_space<vmem>>, vector<32x128xf32>
    %183 = arith.truncf %182 : vector<32x128xf32> to vector<32x128xbf16>
    %cst_58 = arith.constant dense<0.000000e+00> : vector<32x512xf32>
    %184 = tpu.matmul %183, %179, %cst_58 {dimension_numbers = #tpu.dot_dimension_numbers<[1], [0], [0], [1], [0, 0, 1, 1], [], []>} : vector<32x128xbf16>, vector<128x512xbf16>, vector<32x512xf32> -> vector<32x512xf32>
    %185 = vector.broadcast %181 : vector<1x512xf32> to vector<32x512xf32>
    %186 = arith.addf %184, %185 : vector<32x512xf32>
    %c0_59 = arith.constant 0 : index
    %c0_60 = arith.constant 0 : index
    %187 = vector.load %arg7[%c0_59, %c0_60] : memref<64x512xf32, #tpu.memory_space<vmem>>, vector<32x512xf32>
    tpu.vector_store %arg7[%c0_59, %c0_60], %186 {strides = array<i32>} : memref<64x512xf32, #tpu.memory_space<vmem>>, vector<32x512xf32>,
    %c1 = arith.constant 1 : index
    %c0_61 = arith.constant 0 : index
    %c0_62 = arith.constant 0 : index
    %188 = vector.load %arg1[%c1, %c0_61, %c0_62] : memref<2x128x512xbf16, #tpu.memory_space<vmem>>, vector<1x128x512xbf16>
    %189 = vector.shape_cast %188 : vector<1x128x512xbf16> to vector<128x512xbf16>
    %cst_63 = arith.constant 0.000000e+00 : f32
    %190 = vector.broadcast %cst_63 : f32 to vector<8x128xf32>
    %cst_64 = arith.constant 0.000000e+00 : f32
    %191 = vector.broadcast %cst_64 : f32 to vector<8x128xf32>
    %c32_65 = arith.constant 32 : index
    %c0_66 = arith.constant 0 : index
    %192 = vector.load %arg8[%c32_65, %c0_66] : memref<64x128xf32, #tpu.memory_space<vmem>>, vector<32x128xf32>
    %193 = arith.truncf %192 : vector<32x128xf32> to vector<32x128xbf16>
    %cst_67 = arith.constant dense<0.000000e+00> : vector<32x512xf32>
    %194 = tpu.matmul %193, %179, %cst_67 {dimension_numbers = #tpu.dot_dimension_numbers<[1], [0], [0], [1], [0, 0, 1, 1], [], []>} : vector<32x128xbf16>, vector<128x512xbf16>, vector<32x512xf32> -> vector<32x512xf32>
    %195 = vector.broadcast %181 : vector<1x512xf32> to vector<32x512xf32>
    %196 = arith.addf %194, %195 : vector<32x512xf32>
    %c32_68 = arith.constant 32 : index
    %c0_69 = arith.constant 0 : index
    %197 = vector.load %arg7[%c32_68, %c0_69] : memref<64x512xf32, #tpu.memory_space<vmem>>, vector<32x512xf32>
    tpu.vector_store %arg7[%c32_68, %c0_69], %196 {strides = array<i32>} : memref<64x512xf32, #tpu.memory_space<vmem>>, vector<32x512xf32>,
    %c0_70 = arith.constant 0 : index
    %c0_71 = arith.constant 0 : index
    %198 = vector.load %arg7[%c0_70, %c0_71] : memref<64x512xf32, #tpu.memory_space<vmem>>, vector<8x512xf32>
    %199 = arith.truncf %190 : vector<8x128xf32> to vector<8x128xbf16>
    %cst_72 = arith.constant dense<0.000000e+00> : vector<8x512xf32>
    %200 = tpu.matmul %199, %189, %cst_72 {dimension_numbers = #tpu.dot_dimension_numbers<[1], [0], [0], [1], [0, 0, 1, 1], [], []>} : vector<8x128xbf16>, vector<128x512xbf16>, vector<8x512xf32> -> vector<8x512xf32>
    %201 = arith.addf %198, %200 : vector<8x512xf32>
    %202 = vector.extract_strided_slice %201 {offsets = [0, 0], sizes = [8, 384], strides = [1, 1]} : vector<8x512xf32> to vector<8x384xf32>
    %203 = arith.negf %202 : vector<8x384xf32>
    %204 = math.exp %203 : vector<8x384xf32>
    %cst_73 = arith.constant 1.000000e+00 : f32
    %205 = vector.broadcast %cst_73 : f32 to vector<8x384xf32>
    %206 = arith.addf %205, %204 : vector<8x384xf32>
    %207 = arith.divf %205, %206 : vector<8x384xf32>
    %208 = vector.extract_strided_slice %207 {offsets = [0, 0], sizes = [8, 128], strides = [1, 1]} : vector<8x384xf32> to vector<8x128xf32>
    %209 = vector.extract_strided_slice %207 {offsets = [0, 128], sizes = [8, 128], strides = [1, 1]} : vector<8x384xf32> to vector<8x128xf32>
    %210 = vector.extract_strided_slice %207 {offsets = [0, 256], sizes = [8, 128], strides = [1, 1]} : vector<8x384xf32> to vector<8x128xf32>
    %211 = vector.extract_strided_slice %201 {offsets = [0, 384], sizes = [8, 128], strides = [1, 1]} : vector<8x512xf32> to vector<8x128xf32>
    %212 = math.tanh %211 : vector<8x128xf32>
    %213 = arith.mulf %209, %191 : vector<8x128xf32>
    %214 = arith.mulf %208, %212 : vector<8x128xf32>
    %215 = arith.addf %213, %214 : vector<8x128xf32>
    %216 = math.tanh %215 : vector<8x128xf32>
    %217 = arith.mulf %210, %216 : vector<8x128xf32>
    %c0_74 = arith.constant 0 : index
    %c0_75 = arith.constant 0 : index
    %218 = vector.load %arg4[%c0_74, %c0_75] : memref<64x128xf32, #tpu.memory_space<vmem>>, vector<8x128xf32>
    tpu.vector_store %arg4[%c0_74, %c0_75], %217 {strides = array<i32>} : memref<64x128xf32, #tpu.memory_space<vmem>>, vector<8x128xf32>,
    %c8_76 = arith.constant 8 : index
    %c0_77 = arith.constant 0 : index
    %219 = vector.load %arg7[%c8_76, %c0_77] : memref<64x512xf32, #tpu.memory_space<vmem>>, vector<8x512xf32>
    %220 = arith.truncf %217 : vector<8x128xf32> to vector<8x128xbf16>
    %cst_78 = arith.constant dense<0.000000e+00> : vector<8x512xf32>
    %221 = tpu.matmul %220, %189, %cst_78 {dimension_numbers = #tpu.dot_dimension_numbers<[1], [0], [0], [1], [0, 0, 1, 1], [], []>} : vector<8x128xbf16>, vector<128x512xbf16>, vector<8x512xf32> -> vector<8x512xf32>
    %222 = arith.addf %219, %221 : vector<8x512xf32>
    %223 = vector.extract_strided_slice %222 {offsets = [0, 0], sizes = [8, 384], strides = [1, 1]} : vector<8x512xf32> to vector<8x384xf32>
    %224 = arith.negf %223 : vector<8x384xf32>
    %225 = math.exp %224 : vector<8x384xf32>
    %cst_79 = arith.constant 1.000000e+00 : f32
    %226 = vector.broadcast %cst_79 : f32 to vector<8x384xf32>
    %227 = arith.addf %226, %225 : vector<8x384xf32>
    %228 = arith.divf %226, %227 : vector<8x384xf32>
    %229 = vector.extract_strided_slice %228 {offsets = [0, 0], sizes = [8, 128], strides = [1, 1]} : vector<8x384xf32> to vector<8x128xf32>
    %230 = vector.extract_strided_slice %228 {offsets = [0, 128], sizes = [8, 128], strides = [1, 1]} : vector<8x384xf32> to vector<8x128xf32>
    %231 = vector.extract_strided_slice %228 {offsets = [0, 256], sizes = [8, 128], strides = [1, 1]} : vector<8x384xf32> to vector<8x128xf32>
    %232 = vector.extract_strided_slice %222 {offsets = [0, 384], sizes = [8, 128], strides = [1, 1]} : vector<8x512xf32> to vector<8x128xf32>
    %233 = math.tanh %232 : vector<8x128xf32>
    %234 = arith.mulf %230, %215 : vector<8x128xf32>
    %235 = arith.mulf %229, %233 : vector<8x128xf32>
    %236 = arith.addf %234, %235 : vector<8x128xf32>
    %237 = math.tanh %236 : vector<8x128xf32>
    %238 = arith.mulf %231, %237 : vector<8x128xf32>
    %c8_80 = arith.constant 8 : index
    %c0_81 = arith.constant 0 : index
    %239 = vector.load %arg4[%c8_80, %c0_81] : memref<64x128xf32, #tpu.memory_space<vmem>>, vector<8x128xf32>
    tpu.vector_store %arg4[%c8_80, %c0_81], %238 {strides = array<i32>} : memref<64x128xf32, #tpu.memory_space<vmem>>, vector<8x128xf32>,
    %c16_82 = arith.constant 16 : index
    %c0_83 = arith.constant 0 : index
    %240 = vector.load %arg7[%c16_82, %c0_83] : memref<64x512xf32, #tpu.memory_space<vmem>>, vector<8x512xf32>
    %241 = arith.truncf %238 : vector<8x128xf32> to vector<8x128xbf16>
    %cst_84 = arith.constant dense<0.000000e+00> : vector<8x512xf32>
    %242 = tpu.matmul %241, %189, %cst_84 {dimension_numbers = #tpu.dot_dimension_numbers<[1], [0], [0], [1], [0, 0, 1, 1], [], []>} : vector<8x128xbf16>, vector<128x512xbf16>, vector<8x512xf32> -> vector<8x512xf32>
    %243 = arith.addf %240, %242 : vector<8x512xf32>
    %244 = vector.extract_strided_slice %243 {offsets = [0, 0], sizes = [8, 384], strides = [1, 1]} : vector<8x512xf32> to vector<8x384xf32>
    %245 = arith.negf %244 : vector<8x384xf32>
    %246 = math.exp %245 : vector<8x384xf32>
    %cst_85 = arith.constant 1.000000e+00 : f32
    %247 = vector.broadcast %cst_85 : f32 to vector<8x384xf32>
    %248 = arith.addf %247, %246 : vector<8x384xf32>
    %249 = arith.divf %247, %248 : vector<8x384xf32>
    %250 = vector.extract_strided_slice %249 {offsets = [0, 0], sizes = [8, 128], strides = [1, 1]} : vector<8x384xf32> to vector<8x128xf32>
    %251 = vector.extract_strided_slice %249 {offsets = [0, 128], sizes = [8, 128], strides = [1, 1]} : vector<8x384xf32> to vector<8x128xf32>
    %252 = vector.extract_strided_slice %249 {offsets = [0, 256], sizes = [8, 128], strides = [1, 1]} : vector<8x384xf32> to vector<8x128xf32>
    %253 = vector.extract_strided_slice %243 {offsets = [0, 384], sizes = [8, 128], strides = [1, 1]} : vector<8x512xf32> to vector<8x128xf32>
    %254 = math.tanh %253 : vector<8x128xf32>
    %255 = arith.mulf %251, %236 : vector<8x128xf32>
    %256 = arith.mulf %250, %254 : vector<8x128xf32>
    %257 = arith.addf %255, %256 : vector<8x128xf32>
    %258 = math.tanh %257 : vector<8x128xf32>
    %259 = arith.mulf %252, %258 : vector<8x128xf32>
    %c16_86 = arith.constant 16 : index
    %c0_87 = arith.constant 0 : index
    %260 = vector.load %arg4[%c16_86, %c0_87] : memref<64x128xf32, #tpu.memory_space<vmem>>, vector<8x128xf32>
    tpu.vector_store %arg4[%c16_86, %c0_87], %259 {strides = array<i32>} : memref<64x128xf32, #tpu.memory_space<vmem>>, vector<8x128xf32>,
    %c24_88 = arith.constant 24 : index
    %c0_89 = arith.constant 0 : index
    %261 = vector.load %arg7[%c24_88, %c0_89] : memref<64x512xf32, #tpu.memory_space<vmem>>, vector<8x512xf32>
    %262 = arith.truncf %259 : vector<8x128xf32> to vector<8x128xbf16>
    %cst_90 = arith.constant dense<0.000000e+00> : vector<8x512xf32>
    %263 = tpu.matmul %262, %189, %cst_90 {dimension_numbers = #tpu.dot_dimension_numbers<[1], [0], [0], [1], [0, 0, 1, 1], [], []>} : vector<8x128xbf16>, vector<128x512xbf16>, vector<8x512xf32> -> vector<8x512xf32>
    %264 = arith.addf %261, %263 : vector<8x512xf32>
    %265 = vector.extract_strided_slice %264 {offsets = [0, 0], sizes = [8, 384], strides = [1, 1]} : vector<8x512xf32> to vector<8x384xf32>
    %266 = arith.negf %265 : vector<8x384xf32>
    %267 = math.exp %266 : vector<8x384xf32>
    %cst_91 = arith.constant 1.000000e+00 : f32
    %268 = vector.broadcast %cst_91 : f32 to vector<8x384xf32>
    %269 = arith.addf %268, %267 : vector<8x384xf32>
    %270 = arith.divf %268, %269 : vector<8x384xf32>
    %271 = vector.extract_strided_slice %270 {offsets = [0, 0], sizes = [8, 128], strides = [1, 1]} : vector<8x384xf32> to vector<8x128xf32>
    %272 = vector.extract_strided_slice %270 {offsets = [0, 128], sizes = [8, 128], strides = [1, 1]} : vector<8x384xf32> to vector<8x128xf32>
    %273 = vector.extract_strided_slice %270 {offsets = [0, 256], sizes = [8, 128], strides = [1, 1]} : vector<8x384xf32> to vector<8x128xf32>
    %274 = vector.extract_strided_slice %264 {offsets = [0, 384], sizes = [8, 128], strides = [1, 1]} : vector<8x512xf32> to vector<8x128xf32>
    %275 = math.tanh %274 : vector<8x128xf32>
    %276 = arith.mulf %272, %257 : vector<8x128xf32>
    %277 = arith.mulf %271, %275 : vector<8x128xf32>
    %278 = arith.addf %276, %277 : vector<8x128xf32>
    %279 = math.tanh %278 : vector<8x128xf32>
    %280 = arith.mulf %273, %279 : vector<8x128xf32>
    %c24_92 = arith.constant 24 : index
    %c0_93 = arith.constant 0 : index
    %281 = vector.load %arg4[%c24_92, %c0_93] : memref<64x128xf32, #tpu.memory_space<vmem>>, vector<8x128xf32>
    tpu.vector_store %arg4[%c24_92, %c0_93], %280 {strides = array<i32>} : memref<64x128xf32, #tpu.memory_space<vmem>>, vector<8x128xf32>,
    %c32_94 = arith.constant 32 : index
    %c0_95 = arith.constant 0 : index
    %282 = vector.load %arg7[%c32_94, %c0_95] : memref<64x512xf32, #tpu.memory_space<vmem>>, vector<8x512xf32>
    %283 = arith.truncf %280 : vector<8x128xf32> to vector<8x128xbf16>
    %cst_96 = arith.constant dense<0.000000e+00> : vector<8x512xf32>
    %284 = tpu.matmul %283, %189, %cst_96 {dimension_numbers = #tpu.dot_dimension_numbers<[1], [0], [0], [1], [0, 0, 1, 1], [], []>} : vector<8x128xbf16>, vector<128x512xbf16>, vector<8x512xf32> -> vector<8x512xf32>
    %285 = arith.addf %282, %284 : vector<8x512xf32>
    %286 = vector.extract_strided_slice %285 {offsets = [0, 0], sizes = [8, 384], strides = [1, 1]} : vector<8x512xf32> to vector<8x384xf32>
    %287 = arith.negf %286 : vector<8x384xf32>
    %288 = math.exp %287 : vector<8x384xf32>
    %cst_97 = arith.constant 1.000000e+00 : f32
    %289 = vector.broadcast %cst_97 : f32 to vector<8x384xf32>
    %290 = arith.addf %289, %288 : vector<8x384xf32>
    %291 = arith.divf %289, %290 : vector<8x384xf32>
    %292 = vector.extract_strided_slice %291 {offsets = [0, 0], sizes = [8, 128], strides = [1, 1]} : vector<8x384xf32> to vector<8x128xf32>
    %293 = vector.extract_strided_slice %291 {offsets = [0, 128], sizes = [8, 128], strides = [1, 1]} : vector<8x384xf32> to vector<8x128xf32>
    %294 = vector.extract_strided_slice %291 {offsets = [0, 256], sizes = [8, 128], strides = [1, 1]} : vector<8x384xf32> to vector<8x128xf32>
    %295 = vector.extract_strided_slice %285 {offsets = [0, 384], sizes = [8, 128], strides = [1, 1]} : vector<8x512xf32> to vector<8x128xf32>
    %296 = math.tanh %295 : vector<8x128xf32>
    %297 = arith.mulf %293, %278 : vector<8x128xf32>
    %298 = arith.mulf %292, %296 : vector<8x128xf32>
    %299 = arith.addf %297, %298 : vector<8x128xf32>
    %300 = math.tanh %299 : vector<8x128xf32>
    %301 = arith.mulf %294, %300 : vector<8x128xf32>
    %c32_98 = arith.constant 32 : index
    %c0_99 = arith.constant 0 : index
    %302 = vector.load %arg4[%c32_98, %c0_99] : memref<64x128xf32, #tpu.memory_space<vmem>>, vector<8x128xf32>
    tpu.vector_store %arg4[%c32_98, %c0_99], %301 {strides = array<i32>} : memref<64x128xf32, #tpu.memory_space<vmem>>, vector<8x128xf32>,
    %c40_100 = arith.constant 40 : index
    %c0_101 = arith.constant 0 : index
    %303 = vector.load %arg7[%c40_100, %c0_101] : memref<64x512xf32, #tpu.memory_space<vmem>>, vector<8x512xf32>
    %304 = arith.truncf %301 : vector<8x128xf32> to vector<8x128xbf16>
    %cst_102 = arith.constant dense<0.000000e+00> : vector<8x512xf32>
    %305 = tpu.matmul %304, %189, %cst_102 {dimension_numbers = #tpu.dot_dimension_numbers<[1], [0], [0], [1], [0, 0, 1, 1], [], []>} : vector<8x128xbf16>, vector<128x512xbf16>, vector<8x512xf32> -> vector<8x512xf32>
    %306 = arith.addf %303, %305 : vector<8x512xf32>
    %307 = vector.extract_strided_slice %306 {offsets = [0, 0], sizes = [8, 384], strides = [1, 1]} : vector<8x512xf32> to vector<8x384xf32>
    %308 = arith.negf %307 : vector<8x384xf32>
    %309 = math.exp %308 : vector<8x384xf32>
    %cst_103 = arith.constant 1.000000e+00 : f32
    %310 = vector.broadcast %cst_103 : f32 to vector<8x384xf32>
    %311 = arith.addf %310, %309 : vector<8x384xf32>
    %312 = arith.divf %310, %311 : vector<8x384xf32>
    %313 = vector.extract_strided_slice %312 {offsets = [0, 0], sizes = [8, 128], strides = [1, 1]} : vector<8x384xf32> to vector<8x128xf32>
    %314 = vector.extract_strided_slice %312 {offsets = [0, 128], sizes = [8, 128], strides = [1, 1]} : vector<8x384xf32> to vector<8x128xf32>
    %315 = vector.extract_strided_slice %312 {offsets = [0, 256], sizes = [8, 128], strides = [1, 1]} : vector<8x384xf32> to vector<8x128xf32>
    %316 = vector.extract_strided_slice %306 {offsets = [0, 384], sizes = [8, 128], strides = [1, 1]} : vector<8x512xf32> to vector<8x128xf32>
    %317 = math.tanh %316 : vector<8x128xf32>
    %318 = arith.mulf %314, %299 : vector<8x128xf32>
    %319 = arith.mulf %313, %317 : vector<8x128xf32>
    %320 = arith.addf %318, %319 : vector<8x128xf32>
    %321 = math.tanh %320 : vector<8x128xf32>
    %322 = arith.mulf %315, %321 : vector<8x128xf32>
    %c40_104 = arith.constant 40 : index
    %c0_105 = arith.constant 0 : index
    %323 = vector.load %arg4[%c40_104, %c0_105] : memref<64x128xf32, #tpu.memory_space<vmem>>, vector<8x128xf32>
    tpu.vector_store %arg4[%c40_104, %c0_105], %322 {strides = array<i32>} : memref<64x128xf32, #tpu.memory_space<vmem>>, vector<8x128xf32>,
    %c48_106 = arith.constant 48 : index
    %c0_107 = arith.constant 0 : index
    %324 = vector.load %arg7[%c48_106, %c0_107] : memref<64x512xf32, #tpu.memory_space<vmem>>, vector<8x512xf32>
    %325 = arith.truncf %322 : vector<8x128xf32> to vector<8x128xbf16>
    %cst_108 = arith.constant dense<0.000000e+00> : vector<8x512xf32>
    %326 = tpu.matmul %325, %189, %cst_108 {dimension_numbers = #tpu.dot_dimension_numbers<[1], [0], [0], [1], [0, 0, 1, 1], [], []>} : vector<8x128xbf16>, vector<128x512xbf16>, vector<8x512xf32> -> vector<8x512xf32>
    %327 = arith.addf %324, %326 : vector<8x512xf32>
    %328 = vector.extract_strided_slice %327 {offsets = [0, 0], sizes = [8, 384], strides = [1, 1]} : vector<8x512xf32> to vector<8x384xf32>
    %329 = arith.negf %328 : vector<8x384xf32>
    %330 = math.exp %329 : vector<8x384xf32>
    %cst_109 = arith.constant 1.000000e+00 : f32
    %331 = vector.broadcast %cst_109 : f32 to vector<8x384xf32>
    %332 = arith.addf %331, %330 : vector<8x384xf32>
    %333 = arith.divf %331, %332 : vector<8x384xf32>
    %334 = vector.extract_strided_slice %333 {offsets = [0, 0], sizes = [8, 128], strides = [1, 1]} : vector<8x384xf32> to vector<8x128xf32>
    %335 = vector.extract_strided_slice %333 {offsets = [0, 128], sizes = [8, 128], strides = [1, 1]} : vector<8x384xf32> to vector<8x128xf32>
    %336 = vector.extract_strided_slice %333 {offsets = [0, 256], sizes = [8, 128], strides = [1, 1]} : vector<8x384xf32> to vector<8x128xf32>
    %337 = vector.extract_strided_slice %327 {offsets = [0, 384], sizes = [8, 128], strides = [1, 1]} : vector<8x512xf32> to vector<8x128xf32>
    %338 = math.tanh %337 : vector<8x128xf32>
    %339 = arith.mulf %335, %320 : vector<8x128xf32>
    %340 = arith.mulf %334, %338 : vector<8x128xf32>
    %341 = arith.addf %339, %340 : vector<8x128xf32>
    %342 = math.tanh %341 : vector<8x128xf32>
    %343 = arith.mulf %336, %342 : vector<8x128xf32>
    %c48_110 = arith.constant 48 : index
    %c0_111 = arith.constant 0 : index
    %344 = vector.load %arg4[%c48_110, %c0_111] : memref<64x128xf32, #tpu.memory_space<vmem>>, vector<8x128xf32>
    tpu.vector_store %arg4[%c48_110, %c0_111], %343 {strides = array<i32>} : memref<64x128xf32, #tpu.memory_space<vmem>>, vector<8x128xf32>,
    %c56_112 = arith.constant 56 : index
    %c0_113 = arith.constant 0 : index
    %345 = vector.load %arg7[%c56_112, %c0_113] : memref<64x512xf32, #tpu.memory_space<vmem>>, vector<8x512xf32>
    %346 = arith.truncf %343 : vector<8x128xf32> to vector<8x128xbf16>
    %cst_114 = arith.constant dense<0.000000e+00> : vector<8x512xf32>
    %347 = tpu.matmul %346, %189, %cst_114 {dimension_numbers = #tpu.dot_dimension_numbers<[1], [0], [0], [1], [0, 0, 1, 1], [], []>} : vector<8x128xbf16>, vector<128x512xbf16>, vector<8x512xf32> -> vector<8x512xf32>
    %348 = arith.addf %345, %347 : vector<8x512xf32>
    %349 = vector.extract_strided_slice %348 {offsets = [0, 0], sizes = [8, 384], strides = [1, 1]} : vector<8x512xf32> to vector<8x384xf32>
    %350 = arith.negf %349 : vector<8x384xf32>
    %351 = math.exp %350 : vector<8x384xf32>
    %cst_115 = arith.constant 1.000000e+00 : f32
    %352 = vector.broadcast %cst_115 : f32 to vector<8x384xf32>
    %353 = arith.addf %352, %351 : vector<8x384xf32>
    %354 = arith.divf %352, %353 : vector<8x384xf32>
    %355 = vector.extract_strided_slice %354 {offsets = [0, 0], sizes = [8, 128], strides = [1, 1]} : vector<8x384xf32> to vector<8x128xf32>
    %356 = vector.extract_strided_slice %354 {offsets = [0, 128], sizes = [8, 128], strides = [1, 1]} : vector<8x384xf32> to vector<8x128xf32>
    %357 = vector.extract_strided_slice %354 {offsets = [0, 256], sizes = [8, 128], strides = [1, 1]} : vector<8x384xf32> to vector<8x128xf32>
    %358 = vector.extract_strided_slice %348 {offsets = [0, 384], sizes = [8, 128], strides = [1, 1]} : vector<8x512xf32> to vector<8x128xf32>
    %359 = math.tanh %358 : vector<8x128xf32>
    %360 = arith.mulf %356, %341 : vector<8x128xf32>
    %361 = arith.mulf %355, %359 : vector<8x128xf32>
    %362 = arith.addf %360, %361 : vector<8x128xf32>
    %363 = math.tanh %362 : vector<8x128xf32>
    %364 = arith.mulf %357, %363 : vector<8x128xf32>
    %c56_116 = arith.constant 56 : index
    %c0_117 = arith.constant 0 : index
    %365 = vector.load %arg4[%c56_116, %c0_117] : memref<64x128xf32, #tpu.memory_space<vmem>>, vector<8x128xf32>
    tpu.vector_store %arg4[%c56_116, %c0_117], %364 {strides = array<i32>} : memref<64x128xf32, #tpu.memory_space<vmem>>, vector<8x128xf32>,
    %c1_118 = arith.constant 1 : index
    %c0_119 = arith.constant 0 : index
    %c0_120 = arith.constant 0 : index
    %366 = vector.load %arg5[%c1_118, %c0_119, %c0_120] : memref<2x8x128xf32, #tpu.memory_space<vmem>>, vector<1x8x128xf32>
    %367 = vector.shape_cast %366 : vector<1x8x128xf32> to vector<8x128xf32>
    %368 = vector.shape_cast %364 : vector<8x128xf32> to vector<1x8x128xf32>
    tpu.vector_store %arg5[%c1_118, %c0_119, %c0_120], %368 {strides = array<i32>} : memref<2x8x128xf32, #tpu.memory_space<vmem>>, vector<1x8x128xf32>,
    %c1_121 = arith.constant 1 : index
    %c0_122 = arith.constant 0 : index
    %c0_123 = arith.constant 0 : index
    %369 = vector.load %arg6[%c1_121, %c0_122, %c0_123] : memref<2x8x128xf32, #tpu.memory_space<vmem>>, vector<1x8x128xf32>
    %370 = vector.shape_cast %369 : vector<1x8x128xf32> to vector<8x128xf32>
    %371 = vector.shape_cast %362 : vector<8x128xf32> to vector<1x8x128xf32>
    tpu.vector_store %arg6[%c1_121, %c0_122, %c0_123], %371 {strides = array<i32>} : memref<2x8x128xf32, #tpu.memory_space<vmem>>, vector<1x8x128xf32>,
    return
  }
}

</mosaic_0001>

<bundles_post_ra>
// kernel: encoder_forward.1
= control target key start
LH: loop header
LB: loop body
LE: loop exit
PB: predicated region body
PF: predicated region fallthrough
CT: control target
= control target key end

     0   :  { %v5042_v1 = vmov 0   ;;  %s5035_s1 = inlined_call_operand.vmem [shape: bf16[2,128,512], index: 1, kind: input, shape index: {}]   ;;  %s5036_s0 = inlined_call_operand.vmem [shape: f32[64,512], index: 0, kind: input, shape index: {}]   ;;  %s5037_s2 = inlined_call_operand.vmem [shape: bf16[1,128,512], index: 2, kind: input, shape index: {}]   ;;  %s5038_s6 = inlined_call_operand.vmem [shape: f32[2,8,128], index: 6, kind: output, shape index: {2}]   ;;  %s5039_s5 = inlined_call_operand.vmem [shape: f32[2,8,128], index: 5, kind: output, shape index: {1}]   ;;  %s5040_s3 = inlined_call_operand.vmem [shape: f32[1,1,512], index: 3, kind: input, shape index: {}]   ;;  %s5041_s4 = inlined_call_operand.vmem [shape: f32[64,128], index: 4, kind: output, shape index: {0}]  }
   0x1   :  { %v3430_v0 = vld [vmem:[%s5035_s1 + $0xe4] ss:$16 sps:$4 sm:$0xff]   ;;  %249 = vmatprep.mubr.bf16.mxu0 %v5042_v1  ;;  %290 = vmatprep.mubr.bf16.mxu1 %v5042_v1  ;;  %v3437_v2 = vld [vmem:[%s5035_s1 + $0xe0] ss:$16 sps:$4 sm:$0xff]   ;;  %v3460_v6 = vld [vmem:[%s5035_s1 + $0xec] ss:$16 sps:$4 sm:$0xff]  }
   0x2   :  { %217 = vmatprep.subr.bf16.mxu0 %v3430_v0  ;;  %v3443_v3 = vld [vmem:[%s5035_s1 + $0xc4] ss:$16 sps:$4 sm:$0xff]   ;;  %v3449_v4 = vld [vmem:[%s5035_s1 + $0xc0] ss:$16 sps:$4 sm:$0xff]   ;;  %v3465_v7 = vld [vmem:[%s5035_s1 + $0xe8] ss:$16 sps:$4 sm:$0xff]   ;;  %258 = vmatprep.subr.bf16.mxu1 %v3460_v6 }
   0x3   :  { %218 = vmatpush1.bf16.msra.mxu0 %v3437_v2  ;;  %v3455_v5 = vld [vmem:[%s5035_s1 + $0xa4] ss:$16 sps:$4 sm:$0xff]   ;;  %v3471_v8 = vld [vmem:[%s5035_s1 + $0xa0] ss:$16 sps:$4 sm:$0xff]   ;;  %259 = vmatpush1.bf16.msra.mxu1 %v3465_v7  ;;  %v3484_v10 = vld [vmem:[%s5035_s1 + $0xcc] ss:$16 sps:$4 sm:$0xff]  }
   0x4   :  { %219 = vmatprep.subr.bf16.mxu0 %v3443_v3  ;;  %v3478_v9 = vld [vmem:[%s5035_s1 + $0x84] ss:$16 sps:$4 sm:$0xff]   ;;  %v3489_v11 = vld [vmem:[%s5035_s1 + $0xc8] ss:$16 sps:$4 sm:$0xff]   ;;  %260 = vmatprep.subr.bf16.mxu1 %v3484_v10  ;;  %v3496_v12 = vld [vmem:[%s5035_s1 + $0x80] ss:$16 sps:$4 sm:$0xff]  }
   0x5   :  { %v3501_v13 = vld [vmem:[%s5035_s1 + $0x64] ss:$16 sps:$4 sm:$0xff]   ;;  %v3506_v14 = vld [vmem:[%s5035_s1 + $0xac] ss:$16 sps:$4 sm:$0xff]   ;;  %v3513_v15 = vld [vmem:[%s5035_s1 + $0xa8] ss:$16 sps:$4 sm:$0xff]  }
   0x6   :  { %v3519_v16 = vld [vmem:[%s5035_s1 + $0x8c] ss:$16 sps:$4 sm:$0xff]   ;;  %v3525_v17 = vld [vmem:[%s5035_s1 + $0x60] ss:$16 sps:$4 sm:$0xff]   ;;  %v3531_v18 = vld [vmem:[%s5035_s1 + $0x44] ss:$16 sps:$4 sm:$0xff]  }
   0x7   :  { %220 = vmatpush1.bf16.msra.mxu0 %v3449_v4  ;;  %261 = vmatpush1.bf16.msra.mxu1 %v3489_v11  ;;  %v3537_v19 = vld [vmem:[%s5035_s1 + $0x88] ss:$16 sps:$4 sm:$0xff]   ;;  %v3543_v20 = vld [vmem:[%s5035_s1 + $0x6c] ss:$16 sps:$4 sm:$0xff]   ;;  %v3549_v21 = vld [vmem:[%s5035_s1 + $0x40] ss:$16 sps:$4 sm:$0xff]  }
   0x8   :  { %221 = vmatprep.subr.bf16.mxu0 %v3455_v5  ;;  %262 = vmatprep.subr.bf16.mxu1 %v3506_v14  ;;  %v3554_v22 = vld [vmem:[%s5035_s1 + $0x24] ss:$16 sps:$4 sm:$0xff]   ;;  %v3561_v23 = vld [vmem:[%s5035_s1 + $0x68] ss:$16 sps:$4 sm:$0xff]   ;;  %v3566_v24 = vld [vmem:[%s5035_s1 + $0x20] ss:$16 sps:$4 sm:$0xff]  }
   0x9   :  { %v3572_v25 = vld [vmem:[%s5035_s1 + $0x4c] ss:$16 sps:$4 sm:$0xff]   ;;  %v3577_v26 = vld [vmem:[%s5035_s1 + $0x4] ss:$16 sps:$4 sm:$0xff]   ;;  %v3582_v27 = vld [vmem:[%s5035_s1 + $0x48] ss:$16 sps:$4 sm:$0xff]  }
   0xa   :  { %v3588_v28 = vld [vmem:[%s5035_s1 + $0x2c] ss:$16 sps:$4 sm:$0xff]   ;;  %v3595_v29 = vld [vmem:[%s5035_s1] ss:$16 sps:$4 sm:$0xff]   ;;  %v3601_v30 = vld [vmem:[%s5035_s1 + $0x28] ss:$16 sps:$4 sm:$0xff]  }
   0xb   :  { %222 = vmatpush1.bf16.msra.mxu0 %v3471_v8  ;;  %263 = vmatpush1.bf16.msra.mxu1 %v3513_v15  ;;  %v3607_v31 = vld [vmem:[%s5035_s1 + $0xc] ss:$16 sps:$4 sm:$0xff]   ;;  %v3617_v32 = vld [vmem:[%s5035_s1 + $0x8] ss:$16 sps:$4 sm:$0xff]   ;;  %v53_v33 = vld [vmem:[%s5036_s0] sm:$0xff] }
   0xc   :  { %223 = vmatprep.subr.bf16.mxu0 %v3478_v9  ;;  %264 = vmatprep.subr.bf16.mxu1 %v3519_v16  ;;  %v54_v35 = vld [vmem:[%s5036_s0 + $0x8] sm:$0xff]  ;;  %v55_v45 = vld [vmem:[%s5036_s0 + $0x10] sm:$0xff]  ;;  %v56_v49 = vld [vmem:[%s5036_s0 + $0x18] sm:$0xff] }
   0xf   :  { %224 = vmatpush1.bf16.msra.mxu0 %v3496_v12  ;;  %265 = vmatpush1.bf16.msra.mxu1 %v3537_v19 }
  0x10   :  { %225 = vmatprep.subr.bf16.mxu0 %v3501_v13  ;;  %266 = vmatprep.subr.bf16.mxu1 %v3543_v20 }
  0x13   :  { %226 = vmatpush1.bf16.msra.mxu0 %v3525_v17  ;;  %267 = vmatpush1.bf16.msra.mxu1 %v3561_v23 }
  0x14   :  { %227 = vmatprep.subr.bf16.mxu0 %v3531_v18  ;;  %268 = vmatprep.subr.bf16.mxu1 %v3572_v25 }
  0x17   :  { %228 = vmatpush1.bf16.msra.mxu0 %v3549_v21  ;;  %269 = vmatpush1.bf16.msra.mxu1 %v3582_v27 }
  0x18   :  { %229 = vmatprep.subr.bf16.mxu0 %v3554_v22  ;;  %270 = vmatprep.subr.bf16.mxu1 %v3588_v28 }
  0x1b   :  { %230 = vmatpush1.bf16.msra.mxu0 %v3566_v24  ;;  %271 = vmatpush1.bf16.msra.mxu1 %v3601_v30 }
  0x1c   :  { %231 = vmatprep.subr.bf16.mxu0 %v3577_v26  ;;  %272 = vmatprep.subr.bf16.mxu1 %v3607_v31 }
  0x1f   :  { %232 = vmatpush1.bf16.msra.mxu0 %v3595_v29  ;;  %273 = vmatpush1.bf16.msra.mxu1 %v3617_v32 }
  0x20   :  { %333 = vmatprep.subr.bf16.mxu0 %v3430_v0  ;;  %374 = vmatprep.subr.bf16.mxu1 %v3460_v6 }
  0x22   :  { %250 = vmatmul.mubr.bf16.vlgmr.msra.gmra.mxu0 %v5042_v1  ;;  %291 = vmatmul.mubr.bf16.vlgmr.msra.gmra.mxu1 %v5042_v1 }
  0x23   :  { %334 = vmatpush1.bf16.msra.mxu0 %v3437_v2  ;;  %365 = vmatprep.mubr.bf16.mxu0 %v5042_v1 }
  0x24   :  { %335 = vmatprep.subr.bf16.mxu0 %v3443_v3  ;;  %375 = vmatpush1.bf16.msra.mxu1 %v3465_v7 }
  0x25   :  { %376 = vmatprep.subr.bf16.mxu1 %v3484_v10  ;;  %406 = vmatprep.mubr.bf16.mxu1 %v5042_v1 }
  0x27   :  { %336 = vmatpush1.bf16.msra.mxu0 %v3449_v4 }
  0x28   :  { %337 = vmatprep.subr.bf16.mxu0 %v3455_v5  ;;  %377 = vmatpush1.bf16.msra.mxu1 %v3489_v11 }
  0x29   :  { %378 = vmatprep.subr.bf16.mxu1 %v3506_v14 }
  0x2b   :  { %338 = vmatpush1.bf16.msra.mxu0 %v3471_v8 }
  0x2c   :  { %339 = vmatprep.subr.bf16.mxu0 %v3478_v9  ;;  %379 = vmatpush1.bf16.msra.mxu1 %v3513_v15 }
  0x2d   :  { %380 = vmatprep.subr.bf16.mxu1 %v3519_v16 }
  0x2f   :  { %340 = vmatpush1.bf16.msra.mxu0 %v3496_v12 }
  0x30   :  { %341 = vmatprep.subr.bf16.mxu0 %v3501_v13  ;;  %381 = vmatpush1.bf16.msra.mxu1 %v3537_v19 }
  0x31   :  { %382 = vmatprep.subr.bf16.mxu1 %v3543_v20 }
  0x33   :  { %342 = vmatpush1.bf16.msra.mxu0 %v3525_v17 }
  0x34   :  { %343 = vmatprep.subr.bf16.mxu0 %v3531_v18  ;;  %383 = vmatpush1.bf16.msra.mxu1 %v3561_v23 }
  0x35   :  { %384 = vmatprep.subr.bf16.mxu1 %v3572_v25 }
  0x37   :  { %344 = vmatpush1.bf16.msra.mxu0 %v3549_v21 }
  0x38   :  { %345 = vmatprep.subr.bf16.mxu0 %v3554_v22  ;;  %385 = vmatpush1.bf16.msra.mxu1 %v3582_v27 }
  0x39   :  { %386 = vmatprep.subr.bf16.mxu1 %v3588_v28 }
  0x3b   :  { %346 = vmatpush1.bf16.msra.mxu0 %v3566_v24 }
  0x3c   :  { %347 = vmatprep.subr.bf16.mxu0 %v3577_v26  ;;  %387 = vmatpush1.bf16.msra.mxu1 %v3601_v30 }
  0x3d   :  { %388 = vmatprep.subr.bf16.mxu1 %v3607_v31 }
  0x3f   :  { %348 = vmatpush1.bf16.msra.mxu0 %v3595_v29 }
  0x40   :  { %449 = vmatprep.subr.bf16.mxu0 %v3430_v0  ;;  %389 = vmatpush1.bf16.msra.mxu1 %v3617_v32 }
  0x41   :  { %490 = vmatprep.subr.bf16.mxu1 %v3460_v6 }
  0xe2   :  { %v251_v34 = vpop.f32.mrf.mxu0  ;;  %v292_v42 = vpop.f32.mrf.mxu1 }
  0xe3   :  { %v299_v36 = vadd.f32 %v251_v34, %v53_v33  ;;  %v301_v47 = vadd.f32 %v292_v42, %v55_v45 }
  0xe4   :  { %v253_v37 = vpop.f32.mrf.mxu0  ;;  %v294_v44 = vpop.f32.mrf.mxu1 }
  0xe5   :  { %v2780_v38 = vmul.f32 -1.442695, %v299_v36  ;;  %v300_v39 = vadd.f32 %v253_v37, %v54_v35  ;;  %v2782_v50 = vmul.f32 -1.442695, %v301_v47  ;;  %v302_v51 = vadd.f32 %v294_v44, %v56_v49  ;;  %v328_v37 = vld [vmem:[%s5036_s0 + $0x20] sm:$0xff] }
  0xe6   :  { %v255_v40 = vpop.f32.mrf.mxu0  ;;  %v296_v46 = vpop.f32.mrf.mxu1 }
  0xe7   :  { %3071 = vpow2.f32 %v2780_v38  ;;  %v2781_v41 = vmul.f32 -1.442695, %v300_v39  ;;  %v329_v40 = vld [vmem:[%s5036_s0 + $0x28] sm:$0xff] }
  0xe8   :  { %v256_v43 = vpop.f32.mrf.mxu0  ;;  %v297_v48 = vpop.f32.mrf.mxu1 }
  0xe9   :  { %3073 = vpow2.f32 %v2781_v41 }
  0xea   :  { %3075 = vpow2.f32 %v2782_v50 }
  0xeb   :  { %3077 = vtanh.f32 %v302_v51  ;;  %v330_v51 = vld [vmem:[%s5036_s0 + $0x30] sm:$0xff] }
  0xf4   :  { %v3072_v52 = vpop.eup %3071 }
  0xf5   :  { %v312_v53 = vadd.f32 1.0, %v3072_v52 }
  0xf6   :  { %v3074_v54 = vpop.eup %3073 }
  0xf7   :  { %3079 = vrcp.f32 %v312_v53  ;;  %v313_v55 = vadd.f32 1.0, %v3074_v54  ;;  %v3076_v56 = vpop.eup %3075  ;;  %v331_v53 = vld [vmem:[%s5036_s0 + $0x38] sm:$0xff] }
  0xf8   :  { %v3078_v57 = vpop.eup %3077  ;;  %v314_v60 = vadd.f32 1.0, %v3076_v56 }
  0xf9   :  { %3081 = vrcp.f32 %v313_v55 }
  0xfa   :  { %3083 = vrcp.f32 %v314_v60 }
 0x104   :  { %v3080_v58 = vpop.eup %3079 }
 0x105   :  { %v323_v62 = vmul.f32 %v3080_v58, %v3078_v57 }
 0x106   :  { %v3082_v59 = vpop.eup %3081 }
 0x107   :  { %v322_v61 = vmul.f32 0.0, %v3082_v59  ;;  %v3084_v33 = vpop.eup %3083 }
 0x109   :  { %v3671_v63 = vadd.f32 %v323_v62, %v322_v61 }
 0x10b   :  { %3085 = vtanh.f32 %v3671_v63 }
 0x118   :  { %v3086_v34 = vpop.eup %3085 }
 0x119   :  { %v3674_v35 = vmul.f32 %v3086_v34, %v3084_v33 }
 0x11b   :  { %v332_v36 = vpack.c.bf16 %v3674_v35, %v3674_v35 }
 0x11d   :  { %366 = vmatmul.mubr.bf16.vlgmr.msra.gmra.mxu0 %v332_v36  ;;  %407 = vmatmul.mubr.bf16.vlgmr.msra.gmra.mxu1 %v332_v36 }
 0x11e   :  { %450 = vmatpush1.bf16.msra.mxu0 %v3437_v2  ;;  %491 = vmatpush1.bf16.msra.mxu1 %v3465_v7 }
 0x11f   :  { %451 = vmatprep.subr.bf16.mxu0 %v3443_v3  ;;  %492 = vmatprep.subr.bf16.mxu1 %v3484_v10 }
 0x120   :  { %481 = vmatprep.mubr.bf16.mxu0 %v5042_v1  ;;  %522 = vmatprep.mubr.bf16.mxu1 %v5042_v1 }
 0x122   :  { %452 = vmatpush1.bf16.msra.mxu0 %v3449_v4  ;;  %493 = vmatpush1.bf16.msra.mxu1 %v3489_v11 }
 0x123   :  { %453 = vmatprep.subr.bf16.mxu0 %v3455_v5  ;;  %494 = vmatprep.subr.bf16.mxu1 %v3506_v14 }
 0x126   :  { %454 = vmatpush1.bf16.msra.mxu0 %v3471_v8  ;;  %495 = vmatpush1.bf16.msra.mxu1 %v3513_v15 }
 0x127   :  { %455 = vmatprep.subr.bf16.mxu0 %v3478_v9  ;;  %496 = vmatprep.subr.bf16.mxu1 %v3519_v16 }
 0x12a   :  { %456 = vmatpush1.bf16.msra.mxu0 %v3496_v12  ;;  %497 = vmatpush1.bf16.msra.mxu1 %v3537_v19 }
 0x12b   :  { %457 = vmatprep.subr.bf16.mxu0 %v3501_v13  ;;  %498 = vmatprep.subr.bf16.mxu1 %v3543_v20 }
 0x12e   :  { %458 = vmatpush1.bf16.msra.mxu0 %v3525_v17  ;;  %499 = vmatpush1.bf16.msra.mxu1 %v3561_v23 }
 0x12f   :  { %459 = vmatprep.subr.bf16.mxu0 %v3531_v18  ;;  %500 = vmatprep.subr.bf16.mxu1 %v3572_v25 }
 0x132   :  { %460 = vmatpush1.bf16.msra.mxu0 %v3549_v21  ;;  %501 = vmatpush1.bf16.msra.mxu1 %v3582_v27 }
 0x133   :  { %461 = vmatprep.subr.bf16.mxu0 %v3554_v22  ;;  %502 = vmatprep.subr.bf16.mxu1 %v3588_v28 }
 0x136   :  { %462 = vmatpush1.bf16.msra.mxu0 %v3566_v24  ;;  %503 = vmatpush1.bf16.msra.mxu1 %v3601_v30 }
 0x137   :  { %463 = vmatprep.subr.bf16.mxu0 %v3577_v26  ;;  %504 = vmatprep.subr.bf16.mxu1 %v3607_v31 }
 0x13a   :  { %464 = vmatpush1.bf16.msra.mxu0 %v3595_v29  ;;  %505 = vmatpush1.bf16.msra.mxu1 %v3617_v32 }
 0x13b   :  { %565 = vmatprep.subr.bf16.mxu0 %v3430_v0  ;;  %606 = vmatprep.subr.bf16.mxu1 %v3460_v6 }
 0x1dd   :  { %v367_v38 = vpop.f32.mrf.mxu0  ;;  %v408_v39 = vpop.f32.mrf.mxu1 }
 0x1de   :  { %v415_v41 = vadd.f32 %v367_v38, %v328_v37  ;;  %v417_v52 = vadd.f32 %v408_v39, %v330_v51 }
 0x1df   :  { %v369_v42 = vpop.f32.mrf.mxu0  ;;  %v410_v43 = vpop.f32.mrf.mxu1 }
 0x1e0   :  { %v2783_v44 = vmul.f32 -1.442695, %v415_v41  ;;  %v416_v45 = vadd.f32 %v369_v42, %v329_v40  ;;  %v2785_v54 = vmul.f32 -1.442695, %v417_v52  ;;  %v418_v56 = vadd.f32 %v410_v43, %v331_v53 }
 0x1e1   :  { %v371_v46 = vpop.f32.mrf.mxu0  ;;  %v412_v47 = vpop.f32.mrf.mxu1 }
 0x1e2   :  { %3087 = vpow2.f32 %v2783_v44  ;;  %v2784_v48 = vmul.f32 -1.442695, %v416_v45  ;;  %v445_v45 = vld [vmem:[%s5036_s0 + $0x48] sm:$0xff] }
 0x1e3   :  { %v372_v49 = vpop.f32.mrf.mxu0  ;;  %v413_v50 = vpop.f32.mrf.mxu1 }
 0x1e4   :  { %3089 = vpow2.f32 %v2784_v48 }
 0x1e5   :  { %3091 = vpow2.f32 %v2785_v54 }
 0x1ef   :  { %v3088_v55 = vpop.eup %3087 }
 0x1f0   :  { %v428_v57 = vadd.f32 1.0, %v3088_v55 }
 0x1f1   :  { %v3090_v58 = vpop.eup %3089 }
 0x1f2   :  { %3093 = vrcp.f32 %v428_v57  ;;  %v429_v59 = vadd.f32 1.0, %v3090_v58  ;;  %v3092_v60 = vpop.eup %3091  ;;  %v447_v58 = vld [vmem:[%s5036_s0 + $0x58] sm:$0xff] }
 0x1f3   :  { %3095 = vtanh.f32 %v418_v56  ;;  %v430_v34 = vadd.f32 1.0, %v3092_v60  ;;  %v446_v56 = vld [vmem:[%s5036_s0 + $0x50] sm:$0xff] }
 0x1f4   :  { %3097 = vrcp.f32 %v429_v59 }
 0x1f5   :  { %3099 = vrcp.f32 %v430_v34 }
 0x1ff   :  { %v3094_v61 = vpop.eup %3093 }
 0x200   :  { %v3096_v62 = vpop.eup %3095 }
 0x201   :  { %v3098_v33 = vpop.eup %3097  ;;  %v439_v37 = vmul.f32 %v3096_v62, %v3094_v61 }
 0x202   :  { %v438_v36 = vmul.f32 %v3098_v33, %v3671_v63  ;;  %v3100_v39 = vpop.eup %3099  ;;  %v444_v63 = vld [vmem:[%s5036_s0 + $0x40] sm:$0xff] }
 0x204   :  { %v3725_v38 = vadd.f32 %v439_v37, %v438_v36 }
 0x206   :  { %3101 = vtanh.f32 %v3725_v38 }
 0x213   :  { %v3102_v40 = vpop.eup %3101 }
 0x214   :  { %v3728_v41 = vmul.f32 %v3102_v40, %v3100_v39 }
 0x216   :  { %v448_v42 = vpack.c.bf16 %v3728_v41, %v3728_v41 }
 0x218   :  { %482 = vmatmul.mubr.bf16.vlgmr.msra.gmra.mxu0 %v448_v42  ;;  %523 = vmatmul.mubr.bf16.vlgmr.msra.gmra.mxu1 %v448_v42 }
 0x219   :  { %566 = vmatpush1.bf16.msra.mxu0 %v3437_v2  ;;  %607 = vmatpush1.bf16.msra.mxu1 %v3465_v7 }
 0x21a   :  { %567 = vmatprep.subr.bf16.mxu0 %v3443_v3  ;;  %608 = vmatprep.subr.bf16.mxu1 %v3484_v10 }
 0x21b   :  { %597 = vmatprep.mubr.bf16.mxu0 %v5042_v1  ;;  %638 = vmatprep.mubr.bf16.mxu1 %v5042_v1 }
 0x21d   :  { %568 = vmatpush1.bf16.msra.mxu0 %v3449_v4  ;;  %609 = vmatpush1.bf16.msra.mxu1 %v3489_v11 }
 0x21e   :  { %569 = vmatprep.subr.bf16.mxu0 %v3455_v5  ;;  %610 = vmatprep.subr.bf16.mxu1 %v3506_v14 }
 0x221   :  { %570 = vmatpush1.bf16.msra.mxu0 %v3471_v8  ;;  %611 = vmatpush1.bf16.msra.mxu1 %v3513_v15 }
 0x222   :  { %571 = vmatprep.subr.bf16.mxu0 %v3478_v9  ;;  %612 = vmatprep.subr.bf16.mxu1 %v3519_v16 }
 0x225   :  { %572 = vmatpush1.bf16.msra.mxu0 %v3496_v12  ;;  %613 = vmatpush1.bf16.msra.mxu1 %v3537_v19 }
 0x226   :  { %573 = vmatprep.subr.bf16.mxu0 %v3501_v13  ;;  %614 = vmatprep.subr.bf16.mxu1 %v3543_v20 }
 0x229   :  { %574 = vmatpush1.bf16.msra.mxu0 %v3525_v17  ;;  %615 = vmatpush1.bf16.msra.mxu1 %v3561_v23 }
 0x22a   :  { %575 = vmatprep.subr.bf16.mxu0 %v3531_v18  ;;  %616 = vmatprep.subr.bf16.mxu1 %v3572_v25 }
 0x22d   :  { %576 = vmatpush1.bf16.msra.mxu0 %v3549_v21  ;;  %617 = vmatpush1.bf16.msra.mxu1 %v3582_v27 }
 0x22e   :  { %577 = vmatprep.subr.bf16.mxu0 %v3554_v22  ;;  %618 = vmatprep.subr.bf16.mxu1 %v3588_v28 }
 0x231   :  { %578 = vmatpush1.bf16.msra.mxu0 %v3566_v24  ;;  %619 = vmatpush1.bf16.msra.mxu1 %v3601_v30 }
 0x232   :  { %579 = vmatprep.subr.bf16.mxu0 %v3577_v26  ;;  %620 = vmatprep.subr.bf16.mxu1 %v3607_v31 }
 0x235   :  { %580 = vmatpush1.bf16.msra.mxu0 %v3595_v29  ;;  %621 = vmatpush1.bf16.msra.mxu1 %v3617_v32 }
 0x236   :  { %681 = vmatprep.subr.bf16.mxu0 %v3430_v0  ;;  %722 = vmatprep.subr.bf16.mxu1 %v3460_v6 }
 0x2d8   :  { %v483_v43 = vpop.f32.mrf.mxu0  ;;  %v524_v44 = vpop.f32.mrf.mxu1 }
 0x2d9   :  { %v531_v46 = vadd.f32 %v483_v43, %v444_v63  ;;  %v533_v57 = vadd.f32 %v524_v44, %v446_v56 }
 0x2da   :  { %v485_v47 = vpop.f32.mrf.mxu0  ;;  %v526_v48 = vpop.f32.mrf.mxu1 }
 0x2db   :  { %v2786_v49 = vmul.f32 -1.442695, %v531_v46  ;;  %v532_v50 = vadd.f32 %v485_v47, %v445_v45  ;;  %v2788_v59 = vmul.f32 -1.442695, %v533_v57  ;;  %v534_v61 = vadd.f32 %v526_v48, %v447_v58 }
 0x2dc   :  { %v487_v51 = vpop.f32.mrf.mxu0  ;;  %v528_v52 = vpop.f32.mrf.mxu1 }
 0x2dd   :  { %3103 = vpow2.f32 %v2786_v49  ;;  %v2787_v53 = vmul.f32 -1.442695, %v532_v50  ;;  %v561_v51 = vld [vmem:[%s5036_s0 + $0x68] sm:$0xff] }
 0x2de   :  { %v488_v54 = vpop.f32.mrf.mxu0  ;;  %v529_v55 = vpop.f32.mrf.mxu1 }
 0x2df   :  { %3105 = vpow2.f32 %v2787_v53 }
 0x2e0   :  { %3107 = vpow2.f32 %v2788_v59 }
 0x2ea   :  { %v3104_v60 = vpop.eup %3103 }
 0x2eb   :  { %v544_v62 = vadd.f32 1.0, %v3104_v60 }
 0x2ec   :  { %v3106_v33 = vpop.eup %3105 }
 0x2ed   :  { %3109 = vrcp.f32 %v544_v62  ;;  %v545_v34 = vadd.f32 1.0, %v3106_v33  ;;  %v3108_v36 = vpop.eup %3107  ;;  %v562_v62 = vld [vmem:[%s5036_s0 + $0x70] sm:$0xff] }
 0x2ee   :  { %3111 = vtanh.f32 %v534_v61  ;;  %v546_v42 = vadd.f32 1.0, %v3108_v36 }
 0x2ef   :  { %3113 = vrcp.f32 %v545_v34  ;;  %v563_v34 = vld [vmem:[%s5036_s0 + $0x78] sm:$0xff] }
 0x2f0   :  { %3115 = vrcp.f32 %v546_v42 }
 0x2fa   :  { %v3110_v37 = vpop.eup %3109 }
 0x2fb   :  { %v3112_v39 = vpop.eup %3111 }
 0x2fc   :  { %v3114_v40 = vpop.eup %3113  ;;  %v555_v43 = vmul.f32 %v3112_v39, %v3110_v37 }
 0x2fd   :  { %v554_v63 = vmul.f32 %v3114_v40, %v3725_v38  ;;  %v3116_v45 = vpop.eup %3115  ;;  %v560_v38 = vld [vmem:[%s5036_s0 + $0x60] sm:$0xff] }
 0x2ff   :  { %v3779_v44 = vadd.f32 %v555_v43, %v554_v63 }
 0x301   :  { %3117 = vtanh.f32 %v3779_v44 }
 0x30e   :  { %v3118_v46 = vpop.eup %3117 }
 0x30f   :  { %v3782_v47 = vmul.f32 %v3118_v46, %v3116_v45 }
 0x311   :  { %v564_v48 = vpack.c.bf16 %v3782_v47, %v3782_v47 }
 0x313   :  { %598 = vmatmul.mubr.bf16.vlgmr.msra.gmra.mxu0 %v564_v48  ;;  %639 = vmatmul.mubr.bf16.vlgmr.msra.gmra.mxu1 %v564_v48 }
 0x314   :  { %682 = vmatpush1.bf16.msra.mxu0 %v3437_v2  ;;  %723 = vmatpush1.bf16.msra.mxu1 %v3465_v7 }
 0x315   :  { %683 = vmatprep.subr.bf16.mxu0 %v3443_v3  ;;  %724 = vmatprep.subr.bf16.mxu1 %v3484_v10 }
 0x316   :  { %713 = vmatprep.mubr.bf16.mxu0 %v5042_v1  ;;  %754 = vmatprep.mubr.bf16.mxu1 %v5042_v1 }
 0x318   :  { %684 = vmatpush1.bf16.msra.mxu0 %v3449_v4  ;;  %725 = vmatpush1.bf16.msra.mxu1 %v3489_v11 }
 0x319   :  { %685 = vmatprep.subr.bf16.mxu0 %v3455_v5  ;;  %726 = vmatprep.subr.bf16.mxu1 %v3506_v14 }
 0x31c   :  { %686 = vmatpush1.bf16.msra.mxu0 %v3471_v8  ;;  %727 = vmatpush1.bf16.msra.mxu1 %v3513_v15 }
 0x31d   :  { %687 = vmatprep.subr.bf16.mxu0 %v3478_v9  ;;  %728 = vmatprep.subr.bf16.mxu1 %v3519_v16 }
 0x320   :  { %688 = vmatpush1.bf16.msra.mxu0 %v3496_v12  ;;  %729 = vmatpush1.bf16.msra.mxu1 %v3537_v19 }
 0x321   :  { %689 = vmatprep.subr.bf16.mxu0 %v3501_v13  ;;  %730 = vmatprep.subr.bf16.mxu1 %v3543_v20 }
 0x324   :  { %690 = vmatpush1.bf16.msra.mxu0 %v3525_v17  ;;  %731 = vmatpush1.bf16.msra.mxu1 %v3561_v23 }
 0x325   :  { %691 = vmatprep.subr.bf16.mxu0 %v3531_v18  ;;  %732 = vmatprep.subr.bf16.mxu1 %v3572_v25 }
 0x328   :  { %692 = vmatpush1.bf16.msra.mxu0 %v3549_v21  ;;  %733 = vmatpush1.bf16.msra.mxu1 %v3582_v27 }
 0x329   :  { %693 = vmatprep.subr.bf16.mxu0 %v3554_v22  ;;  %734 = vmatprep.subr.bf16.mxu1 %v3588_v28 }
 0x32c   :  { %694 = vmatpush1.bf16.msra.mxu0 %v3566_v24  ;;  %735 = vmatpush1.bf16.msra.mxu1 %v3601_v30 }
 0x32d   :  { %695 = vmatprep.subr.bf16.mxu0 %v3577_v26  ;;  %736 = vmatprep.subr.bf16.mxu1 %v3607_v31 }
 0x330   :  { %696 = vmatpush1.bf16.msra.mxu0 %v3595_v29  ;;  %737 = vmatpush1.bf16.msra.mxu1 %v3617_v32 }
 0x331   :  { %797 = vmatprep.subr.bf16.mxu0 %v3430_v0  ;;  %838 = vmatprep.subr.bf16.mxu1 %v3460_v6 }
 0x3d3   :  { %v599_v49 = vpop.f32.mrf.mxu0  ;;  %v640_v50 = vpop.f32.mrf.mxu1 }
 0x3d4   :  { %v647_v52 = vadd.f32 %v599_v49, %v560_v38  ;;  %v649_v33 = vadd.f32 %v640_v50, %v562_v62 }
 0x3d5   :  { %v601_v53 = vpop.f32.mrf.mxu0  ;;  %v642_v54 = vpop.f32.mrf.mxu1 }
 0x3d6   :  { %v2789_v55 = vmul.f32 -1.442695, %v647_v52  ;;  %v648_v56 = vadd.f32 %v601_v53, %v561_v51  ;;  %v2791_v36 = vmul.f32 -1.442695, %v649_v33  ;;  %v650_v39 = vadd.f32 %v642_v54, %v563_v34  ;;  %v679_v33 = vld [vmem:[%s5036_s0 + $0x98] sm:$0xff] }
 0x3d7   :  { %v603_v57 = vpop.f32.mrf.mxu0  ;;  %v644_v58 = vpop.f32.mrf.mxu1 }
 0x3d8   :  { %3119 = vpow2.f32 %v2789_v55  ;;  %v2790_v59 = vmul.f32 -1.442695, %v648_v56 }
 0x3d9   :  { %v604_v60 = vpop.f32.mrf.mxu0  ;;  %v645_v61 = vpop.f32.mrf.mxu1 }
 0x3da   :  { %3121 = vpow2.f32 %v2790_v59  ;;  %v678_v61 = vld [vmem:[%s5036_s0 + $0x90] sm:$0xff] }
 0x3db   :  { %3123 = vpow2.f32 %v2791_v36 }
 0x3e5   :  { %v3120_v37 = vpop.eup %3119 }
 0x3e6   :  { %v660_v40 = vadd.f32 1.0, %v3120_v37 }
 0x3e7   :  { %v3122_v42 = vpop.eup %3121 }
 0x3e8   :  { %3125 = vrcp.f32 %v660_v40  ;;  %v661_v63 = vadd.f32 1.0, %v3122_v42  ;;  %v3124_v43 = vpop.eup %3123 }
 0x3e9   :  { %3127 = vtanh.f32 %v650_v39  ;;  %v662_v38 = vadd.f32 1.0, %v3124_v43 }
 0x3ea   :  { %3129 = vrcp.f32 %v661_v63 }
 0x3eb   :  { %3131 = vrcp.f32 %v662_v38 }
 0x3f5   :  { %v3126_v45 = vpop.eup %3125 }
 0x3f6   :  { %v3128_v46 = vpop.eup %3127 }
 0x3f7   :  { %v3130_v48 = vpop.eup %3129  ;;  %v671_v50 = vmul.f32 %v3128_v46, %v3126_v45 }
 0x3f8   :  { %v670_v49 = vmul.f32 %v3130_v48, %v3779_v44  ;;  %v3132_v52 = vpop.eup %3131 }
 0x3fa   :  { %v3833_v51 = vadd.f32 %v671_v50, %v670_v49 }
 0x3fc   :  { %3133 = vtanh.f32 %v3833_v51 }
 0x409   :  { %v3134_v53 = vpop.eup %3133 }
 0x40a   :  { %v3836_v54 = vmul.f32 %v3134_v53, %v3132_v52 }
 0x40c   :  { %v680_v55 = vpack.c.bf16 %v3836_v54, %v3836_v54 }
 0x40e   :  { %714 = vmatmul.mubr.bf16.vlgmr.msra.gmra.mxu0 %v680_v55  ;;  %755 = vmatmul.mubr.bf16.vlgmr.msra.gmra.mxu1 %v680_v55 }
 0x40f   :  { %798 = vmatpush1.bf16.msra.mxu0 %v3437_v2  ;;  %839 = vmatpush1.bf16.msra.mxu1 %v3465_v7  ;;  %v676_v2 = vld [vmem:[%s5036_s0 + $0x80] sm:$0xff] }
 0x410   :  { %799 = vmatprep.subr.bf16.mxu0 %v3443_v3  ;;  %840 = vmatprep.subr.bf16.mxu1 %v3484_v10 }
 0x411   :  { %829 = vmatprep.mubr.bf16.mxu0 %v5042_v1  ;;  %870 = vmatprep.mubr.bf16.mxu1 %v5042_v1 }
 0x413   :  { %800 = vmatpush1.bf16.msra.mxu0 %v3449_v4  ;;  %841 = vmatpush1.bf16.msra.mxu1 %v3489_v11 }
 0x414   :  { %801 = vmatprep.subr.bf16.mxu0 %v3455_v5  ;;  %842 = vmatprep.subr.bf16.mxu1 %v3506_v14  ;;  %v677_v5 = vld [vmem:[%s5036_s0 + $0x88] sm:$0xff] }
 0x417   :  { %802 = vmatpush1.bf16.msra.mxu0 %v3471_v8  ;;  %843 = vmatpush1.bf16.msra.mxu1 %v3513_v15 }
 0x418   :  { %803 = vmatprep.subr.bf16.mxu0 %v3478_v9  ;;  %844 = vmatprep.subr.bf16.mxu1 %v3519_v16 }
 0x41b   :  { %804 = vmatpush1.bf16.msra.mxu0 %v3496_v12  ;;  %845 = vmatpush1.bf16.msra.mxu1 %v3537_v19 }
 0x41c   :  { %805 = vmatprep.subr.bf16.mxu0 %v3501_v13  ;;  %846 = vmatprep.subr.bf16.mxu1 %v3543_v20 }
 0x41f   :  { %806 = vmatpush1.bf16.msra.mxu0 %v3525_v17  ;;  %847 = vmatpush1.bf16.msra.mxu1 %v3561_v23 }
 0x420   :  { %807 = vmatprep.subr.bf16.mxu0 %v3531_v18  ;;  %848 = vmatprep.subr.bf16.mxu1 %v3572_v25 }
 0x423   :  { %808 = vmatpush1.bf16.msra.mxu0 %v3549_v21  ;;  %849 = vmatpush1.bf16.msra.mxu1 %v3582_v27 }
 0x424   :  { %809 = vmatprep.subr.bf16.mxu0 %v3554_v22  ;;  %850 = vmatprep.subr.bf16.mxu1 %v3588_v28 }
 0x427   :  { %810 = vmatpush1.bf16.msra.mxu0 %v3566_v24  ;;  %851 = vmatpush1.bf16.msra.mxu1 %v3601_v30 }
 0x428   :  { %811 = vmatprep.subr.bf16.mxu0 %v3577_v26  ;;  %852 = vmatprep.subr.bf16.mxu1 %v3607_v31 }
 0x42b   :  { %812 = vmatpush1.bf16.msra.mxu0 %v3595_v29  ;;  %853 = vmatpush1.bf16.msra.mxu1 %v3617_v32 }
 0x42c   :  { %913 = vmatprep.subr.bf16.mxu0 %v3430_v0  ;;  %954 = vmatprep.subr.bf16.mxu1 %v3460_v6 }
 0x4ce   :  { %v715_v3 = vpop.f32.mrf.mxu0  ;;  %v756_v4 = vpop.f32.mrf.mxu1 }
 0x4cf   :  { %v763_v8 = vadd.f32 %v715_v3, %v676_v2  ;;  %v765_v62 = vadd.f32 %v756_v4, %v678_v61  ;;  %v3897_v3 = vld [vmem:[%s5035_s1 + $0xe0] ss:$16 sps:$4 sm:$0xff]  }
 0x4d0   :  { %v717_v9 = vpop.f32.mrf.mxu0  ;;  %v758_v44 = vpop.f32.mrf.mxu1  ;;  %v3913_v4 = vld [vmem:[%s5035_s1 + $0xc0] ss:$16 sps:$4 sm:$0xff]  }
 0x4d1   :  { %v2792_v56 = vmul.f32 -1.442695, %v763_v8  ;;  %v764_v57 = vadd.f32 %v717_v9, %v677_v5  ;;  %v2794_v34 = vmul.f32 -1.442695, %v765_v62  ;;  %v766_v37 = vadd.f32 %v758_v44, %v679_v33 }
 0x4d2   :  { %v719_v58 = vpop.f32.mrf.mxu0  ;;  %v760_v59 = vpop.f32.mrf.mxu1 }
 0x4d3   :  { %3135 = vpow2.f32 %v2792_v56  ;;  %v2793_v0 = vmul.f32 -1.442695, %v764_v57 }
 0x4d4   :  { %v720_v6 = vpop.f32.mrf.mxu0  ;;  %v761_v60 = vpop.f32.mrf.mxu1 }
 0x4d5   :  { %3137 = vpow2.f32 %v2793_v0 }
 0x4d6   :  { %3139 = vpow2.f32 %v2794_v34 }
 0x4e0   :  { %v3136_v36 = vpop.eup %3135 }
 0x4e1   :  { %v776_v39 = vadd.f32 1.0, %v3136_v36 }
 0x4e2   :  { %v3138_v40 = vpop.eup %3137 }
 0x4e3   :  { %3141 = vrcp.f32 %v776_v39  ;;  %v777_v42 = vadd.f32 1.0, %v3138_v40  ;;  %v3140_v63 = vpop.eup %3139  ;;  %v3336_v39 = vld [vmem:[%s5035_s1 + $0xcc] ss:$16 sps:$4 sm:$0xff]   ;;  %v3337_v40 = vld [vmem:[%s5035_s1 + $0xc8] ss:$16 sps:$4 sm:$0xff]  }
 0x4e4   :  { %3143 = vtanh.f32 %v766_v37  ;;  %v778_v48 = vadd.f32 1.0, %v3140_v63  ;;  %v3335_v37 = vld [vmem:[%s5035_s1 + $0xe8] ss:$16 sps:$4 sm:$0xff]  }
 0x4e5   :  { %3145 = vrcp.f32 %v777_v42  ;;  %v3338_v42 = vld [vmem:[%s5035_s1 + $0xac] ss:$16 sps:$4 sm:$0xff]   ;;  %v3339_v63 = vld [vmem:[%s5035_s1 + $0xa8] ss:$16 sps:$4 sm:$0xff]  }
 0x4e6   :  { %3147 = vrcp.f32 %v778_v48  ;;  %v3343_v48 = vld [vmem:[%s5035_s1 + $0x64] ss:$16 sps:$4 sm:$0xff]  }
 0x4f0   :  { %v3142_v43 = vpop.eup %3141 }
 0x4f1   :  { %v3144_v45 = vpop.eup %3143 }
 0x4f2   :  { %v3146_v46 = vpop.eup %3145  ;;  %v787_v49 = vmul.f32 %v3144_v45, %v3142_v43  ;;  %v3340_v43 = vld [vmem:[%s5035_s1 + $0x8c] ss:$16 sps:$4 sm:$0xff]   ;;  %v3341_v45 = vld [vmem:[%s5035_s1 + $0x80] ss:$16 sps:$4 sm:$0xff]  }
 0x4f3   :  { %v786_v38 = vmul.f32 %v3146_v46, %v3833_v51  ;;  %v3148_v52 = vpop.eup %3147  ;;  %v3904_v51 = vld [vmem:[%s5035_s1 + $0xc4] ss:$16 sps:$4 sm:$0xff]   ;;  %v3342_v46 = vld [vmem:[%s5035_s1 + $0x88] ss:$16 sps:$4 sm:$0xff]  }
 0x4f5   :  { %v3887_v50 = vadd.f32 %v787_v49, %v786_v38  ;;  %v3344_v38 = vld [vmem:[%s5035_s1 + $0x6c] ss:$16 sps:$4 sm:$0xff]   ;;  %v3345_v49 = vld [vmem:[%s5035_s1 + $0x60] ss:$16 sps:$4 sm:$0xff]  }
 0x4f7   :  { %3149 = vtanh.f32 %v3887_v50 }
 0x504   :  { %v3150_v53 = vpop.eup %3149 }
 0x505   :  { %v3890_v55 = vmul.f32 %v3150_v53, %v3148_v52  ;;  %v3347_v52 = vld [vmem:[%s5035_s1 + $0x44] ss:$16 sps:$4 sm:$0xff]   ;;  %v3348_v53 = vld [vmem:[%s5035_s1 + $0x4c] ss:$16 sps:$4 sm:$0xff]  }
 0x507   :  { %v796_v2 = vpack.c.bf16 %v3890_v55, %v3890_v55 }
 0x509   :  { %830 = vmatmul.mubr.bf16.vlgmr.msra.gmra.mxu0 %v796_v2  ;;  %871 = vmatmul.mubr.bf16.vlgmr.msra.gmra.mxu1 %v796_v2  ;;  %v3349_v2 = vld [vmem:[%s5035_s1 + $0x40] ss:$16 sps:$4 sm:$0xff]  }
 0x50a   :  { %914 = vmatpush1.bf16.msra.mxu0 %v3897_v3  ;;  %955 = vmatpush1.bf16.msra.mxu1 %v3465_v7  ;;  %v3920_v7 = vld [vmem:[%s5035_s1 + $0xa4] ss:$16 sps:$4 sm:$0xff]  }
 0x50b   :  { %915 = vmatprep.subr.bf16.mxu0 %v3904_v51  ;;  %956 = vmatprep.subr.bf16.mxu1 %v3484_v10  ;;  %v3927_v10 = vld [vmem:[%s5035_s1 + $0xa0] ss:$16 sps:$4 sm:$0xff]  }
 0x50c   :  { %945 = vmatprep.mubr.bf16.mxu0 %v5042_v1  ;;  %986 = vmatprep.mubr.bf16.mxu1 %v5042_v1 }
 0x50e   :  { %916 = vmatpush1.bf16.msra.mxu0 %v3913_v4  ;;  %957 = vmatpush1.bf16.msra.mxu1 %v3489_v11  ;;  %v3934_v11 = vld [vmem:[%s5035_s1 + $0x84] ss:$16 sps:$4 sm:$0xff]  }
 0x50f   :  { %917 = vmatprep.subr.bf16.mxu0 %v3920_v7  ;;  %958 = vmatprep.subr.bf16.mxu1 %v3506_v14  ;;  %v792_v14 = vld [vmem:[%s5036_s0 + $0xa0] sm:$0xff] }
 0x512   :  { %918 = vmatpush1.bf16.msra.mxu0 %v3927_v10  ;;  %959 = vmatpush1.bf16.msra.mxu1 %v3513_v15 }
 0x513   :  { %919 = vmatprep.subr.bf16.mxu0 %v3934_v11  ;;  %960 = vmatprep.subr.bf16.mxu1 %v3519_v16 }
 0x516   :  { %920 = vmatpush1.bf16.msra.mxu0 %v3496_v12  ;;  %961 = vmatpush1.bf16.msra.mxu1 %v3537_v19  ;;  %v3333_v12 = vld [vmem:[%s5035_s1 + $0xe4] ss:$16 sps:$4 sm:$0xff]  }
 0x517   :  { %921 = vmatprep.subr.bf16.mxu0 %v3501_v13  ;;  %962 = vmatprep.subr.bf16.mxu1 %v3543_v20  ;;  %v3334_v13 = vld [vmem:[%s5035_s1 + $0xec] ss:$16 sps:$4 sm:$0xff]  }
 0x51a   :  { %922 = vmatpush1.bf16.msra.mxu0 %v3525_v17  ;;  %963 = vmatpush1.bf16.msra.mxu1 %v3561_v23  ;;  %v793_v17 = vld [vmem:[%s5036_s0 + $0xa8] sm:$0xff] }
 0x51b   :  { %923 = vmatprep.subr.bf16.mxu0 %v3531_v18  ;;  %964 = vmatprep.subr.bf16.mxu1 %v3572_v25 }
 0x51e   :  { %924 = vmatpush1.bf16.msra.mxu0 %v3549_v21  ;;  %965 = vmatpush1.bf16.msra.mxu1 %v3582_v27 }
 0x51f   :  { %925 = vmatprep.subr.bf16.mxu0 %v3554_v22  ;;  %966 = vmatprep.subr.bf16.mxu1 %v3588_v28  ;;  %v794_v28 = vld [vmem:[%s5036_s0 + $0xb0] sm:$0xff] }
 0x522   :  { %926 = vmatpush1.bf16.msra.mxu0 %v3566_v24  ;;  %967 = vmatpush1.bf16.msra.mxu1 %v3601_v30  ;;  %v795_v30 = vld [vmem:[%s5036_s0 + $0xb8] sm:$0xff] }
 0x523   :  { %927 = vmatprep.subr.bf16.mxu0 %v3577_v26  ;;  %968 = vmatprep.subr.bf16.mxu1 %v3607_v31 }
 0x526   :  { %928 = vmatpush1.bf16.msra.mxu0 %v3595_v29  ;;  %969 = vmatpush1.bf16.msra.mxu1 %v3617_v32 }
 0x527   :  { %1029 = vmatprep.subr.bf16.mxu0 %v3333_v12  ;;  %1070 = vmatprep.subr.bf16.mxu1 %v3334_v13  ;;  %v3356_v12 = vld [vmem:[%s5035_s1 + $0xc] ss:$16 sps:$4 sm:$0xff]   ;;  %v3357_v13 = vld [vmem:[%s5035_s1] ss:$16 sps:$4 sm:$0xff]  }
 0x5c9   :  { %v831_v15 = vpop.f32.mrf.mxu0  ;;  %v872_v16 = vpop.f32.mrf.mxu1 }
 0x5ca   :  { %v879_v18 = vadd.f32 %v831_v15, %v792_v14  ;;  %v881_v29 = vadd.f32 %v872_v16, %v794_v28  ;;  %v3358_v14 = vld [vmem:[%s5035_s1 + $0x8] ss:$16 sps:$4 sm:$0xff]   ;;  %v4065_v15 = vld [vmem:[%s5037_s2 + $0xe4] ss:$16 sps:$4 sm:$0xff]   ;;  %v4070_v16 = vld [vmem:[%s5037_s2 + $0xec] ss:$16 sps:$4 sm:$0xff]  }
 0x5cb   :  { %v833_v19 = vpop.f32.mrf.mxu0  ;;  %v874_v20 = vpop.f32.mrf.mxu1 }
 0x5cc   :  { %v2795_v21 = vmul.f32 -1.442695, %v879_v18  ;;  %v880_v22 = vadd.f32 %v833_v19, %v793_v17  ;;  %v2797_v31 = vmul.f32 -1.442695, %v881_v29  ;;  %v882_v5 = vadd.f32 %v874_v20, %v795_v30  ;;  %v908_v17 = vld [vmem:[%s5036_s0 + $0xc0] sm:$0xff]  ;;  %v909_v20 = vld [vmem:[%s5036_s0 + $0xc8] sm:$0xff] }
 0x5cd   :  { %v835_v23 = vpop.f32.mrf.mxu0  ;;  %v876_v24 = vpop.f32.mrf.mxu1 }
 0x5ce   :  { %3151 = vpow2.f32 %v2795_v21  ;;  %v2796_v25 = vmul.f32 -1.442695, %v880_v22 }
 0x5cf   :  { %v836_v26 = vpop.f32.mrf.mxu0  ;;  %v877_v27 = vpop.f32.mrf.mxu1 }
 0x5d0   :  { %3153 = vpow2.f32 %v2796_v25 }
 0x5d1   :  { %3155 = vpow2.f32 %v2797_v31  ;;  %v910_v31 = vld [vmem:[%s5036_s0 + $0xd0] sm:$0xff] }
 0x5db   :  { %v3152_v32 = vpop.eup %3151 }
 0x5dc   :  { %v892_v8 = vadd.f32 1.0, %v3152_v32 }
 0x5dd   :  { %v3154_v9 = vpop.eup %3153 }
 0x5de   :  { %3157 = vrcp.f32 %v892_v8  ;;  %v893_v44 = vadd.f32 1.0, %v3154_v9  ;;  %v3156_v56 = vpop.eup %3155 }
 0x5df   :  { %3159 = vtanh.f32 %v882_v5  ;;  %v894_v0 = vadd.f32 1.0, %v3156_v56  ;;  %v911_v5 = vld [vmem:[%s5036_s0 + $0xd8] sm:$0xff] }
 0x5e0   :  { %3161 = vrcp.f32 %v893_v44 }
 0x5e1   :  { %3163 = vrcp.f32 %v894_v0 }
 0x5eb   :  { %v3158_v57 = vpop.eup %3157 }
 0x5ec   :  { %v3160_v58 = vpop.eup %3159 }
 0x5ed   :  { %v3162_v59 = vpop.eup %3161  ;;  %v903_v60 = vmul.f32 %v3160_v58, %v3158_v57 }
 0x5ee   :  { %v902_v6 = vmul.f32 %v3162_v59, %v3887_v50  ;;  %v3164_v62 = vpop.eup %3163  ;;  %v3346_v50 = vld [vmem:[%s5035_s1 + $0x68] ss:$16 sps:$4 sm:$0xff]  }
 0x5f0   :  { %v3975_v61 = vadd.f32 %v903_v60, %v902_v6 }
 0x5f2   :  { %3165 = vtanh.f32 %v3975_v61 }
 0x5ff   :  { %v3166_v33 = vpop.eup %3165 }
 0x600   :  { %v3978_v34 = vmul.f32 %v3166_v33, %v3164_v62 }
 0x602   :  { %v912_v36 = vpack.c.bf16 %v3978_v34, %v3978_v34 }
 0x604   :  { %946 = vmatmul.mubr.bf16.vlgmr.msra.gmra.mxu0 %v912_v36  ;;  %987 = vmatmul.mubr.bf16.vlgmr.msra.gmra.mxu1 %v912_v36 }
 0x605   :  { %1030 = vmatpush1.bf16.msra.mxu0 %v3897_v3  ;;  %1071 = vmatpush1.bf16.msra.mxu1 %v3335_v37  ;;  %v3350_v3 = vld [vmem:[%s5035_s1 + $0x48] ss:$16 sps:$4 sm:$0xff]  }
 0x606   :  { %1031 = vmatprep.subr.bf16.mxu0 %v3904_v51  ;;  %1072 = vmatprep.subr.bf16.mxu1 %v3336_v39  ;;  %v3351_v51 = vld [vmem:[%s5035_s1 + $0x24] ss:$16 sps:$4 sm:$0xff]  }
 0x607   :  { %1061 = vmatprep.mubr.bf16.mxu0 %v5042_v1  ;;  %1102 = vmatprep.mubr.bf16.mxu1 %v5042_v1 }
 0x609   :  { %1032 = vmatpush1.bf16.msra.mxu0 %v3913_v4  ;;  %1073 = vmatpush1.bf16.msra.mxu1 %v3337_v40  ;;  %v3352_v4 = vld [vmem:[%s5035_s1 + $0x2c] ss:$16 sps:$4 sm:$0xff]  }
 0x60a   :  { %1033 = vmatprep.subr.bf16.mxu0 %v3920_v7  ;;  %1074 = vmatprep.subr.bf16.mxu1 %v3338_v42  ;;  %v3353_v7 = vld [vmem:[%s5035_s1 + $0x20] ss:$16 sps:$4 sm:$0xff]  }
 0x60d   :  { %1034 = vmatpush1.bf16.msra.mxu0 %v3927_v10  ;;  %1075 = vmatpush1.bf16.msra.mxu1 %v3339_v63  ;;  %v3354_v10 = vld [vmem:[%s5035_s1 + $0x28] ss:$16 sps:$4 sm:$0xff]   ;;  %v4095_v63 = vld [vmem:[%s5037_s2 + $0xe0] ss:$16 sps:$4 sm:$0xff]  }
 0x60e   :  { %1035 = vmatprep.subr.bf16.mxu0 %v3934_v11  ;;  %1076 = vmatprep.subr.bf16.mxu1 %v3340_v43  ;;  %v3355_v11 = vld [vmem:[%s5035_s1 + $0x4] ss:$16 sps:$4 sm:$0xff]   ;;  %v4100_v43 = vld [vmem:[%s5037_s2 + $0xe8] ss:$16 sps:$4 sm:$0xff]  }
 0x611   :  { %1036 = vmatpush1.bf16.msra.mxu0 %v3341_v45  ;;  %1077 = vmatpush1.bf16.msra.mxu1 %v3342_v46  ;;  %v4107_v45 = vld [vmem:[%s5037_s2 + $0xc4] ss:$16 sps:$4 sm:$0xff]   ;;  %v4112_v46 = vld [vmem:[%s5037_s2 + $0xcc] ss:$16 sps:$4 sm:$0xff]  }
 0x612   :  { %1037 = vmatprep.subr.bf16.mxu0 %v3343_v48  ;;  %1078 = vmatprep.subr.bf16.mxu1 %v3344_v38  ;;  %v4119_v48 = vld [vmem:[%s5037_s2 + $0xc0] ss:$16 sps:$4 sm:$0xff]   ;;  %v4124_v38 = vld [vmem:[%s5037_s2 + $0xc8] ss:$16 sps:$4 sm:$0xff]  }
 0x615   :  { %1038 = vmatpush1.bf16.msra.mxu0 %v3345_v49  ;;  %1079 = vmatpush1.bf16.msra.mxu1 %v3346_v50  ;;  %v4131_v49 = vld [vmem:[%s5037_s2 + $0xa4] ss:$16 sps:$4 sm:$0xff]   ;;  %v4136_v50 = vld [vmem:[%s5037_s2 + $0xac] ss:$16 sps:$4 sm:$0xff]  }
 0x616   :  { %1039 = vmatprep.subr.bf16.mxu0 %v3347_v52  ;;  %1080 = vmatprep.subr.bf16.mxu1 %v3348_v53  ;;  %v4145_v52 = vld [vmem:[%s5037_s2 + $0xa0] ss:$16 sps:$4 sm:$0xff]   ;;  %v4150_v53 = vld [vmem:[%s5037_s2 + $0xa8] ss:$16 sps:$4 sm:$0xff]  }
 0x619   :  { %1040 = vmatpush1.bf16.msra.mxu0 %v3349_v2  ;;  %1081 = vmatpush1.bf16.msra.mxu1 %v3350_v3  ;;  %v2995_v2 = vld [vmem:[%s5037_s2 + $0x84] ss:$16 sps:$4 sm:$0xff]   ;;  %v2998_v3 = vld [vmem:[%s5037_s2 + $0x8c] ss:$16 sps:$4 sm:$0xff]  }
 0x61a   :  { %1041 = vmatprep.subr.bf16.mxu0 %v3351_v51  ;;  %1082 = vmatprep.subr.bf16.mxu1 %v3352_v4  ;;  %v2993_v51 = vld [vmem:[%s5037_s2 + $0x80] ss:$16 sps:$4 sm:$0xff]   ;;  %v2996_v4 = vld [vmem:[%s5037_s2 + $0x88] ss:$16 sps:$4 sm:$0xff]  }
 0x61d   :  { %1042 = vmatpush1.bf16.msra.mxu0 %v3353_v7  ;;  %1083 = vmatpush1.bf16.msra.mxu1 %v3354_v10  ;;  %v3001_v7 = vld [vmem:[%s5037_s2 + $0x64] ss:$16 sps:$4 sm:$0xff]   ;;  %v3004_v10 = vld [vmem:[%s5037_s2 + $0x6c] ss:$16 sps:$4 sm:$0xff]  }
 0x61e   :  { %1043 = vmatprep.subr.bf16.mxu0 %v3355_v11  ;;  %1084 = vmatprep.subr.bf16.mxu1 %v3356_v12  ;;  %v2999_v11 = vld [vmem:[%s5037_s2 + $0x60] ss:$16 sps:$4 sm:$0xff]   ;;  %v3002_v12 = vld [vmem:[%s5037_s2 + $0x68] ss:$16 sps:$4 sm:$0xff]  }
 0x621   :  { %1044 = vmatpush1.bf16.msra.mxu0 %v3357_v13  ;;  %1085 = vmatpush1.bf16.msra.mxu1 %v3358_v14  ;;  %v3007_v13 = vld [vmem:[%s5037_s2 + $0x44] ss:$16 sps:$4 sm:$0xff]   ;;  %v3010_v14 = vld [vmem:[%s5037_s2 + $0x4c] ss:$16 sps:$4 sm:$0xff]  }
 0x622   :  { %1362 = vmatprep.subr.bf16.mxu0 %v4065_v15  ;;  %1415 = vmatprep.subr.bf16.mxu1 %v4070_v16 }
 0x6c4   :  { %v947_v18 = vpop.f32.mrf.mxu0  ;;  %v988_v19 = vpop.f32.mrf.mxu1 }
 0x6c5   :  { %v995_v21 = vadd.f32 %v947_v18, %v908_v17  ;;  %v997_v32 = vadd.f32 %v988_v19, %v910_v31  ;;  %v3005_v17 = vld [vmem:[%s5037_s2 + $0x40] ss:$16 sps:$4 sm:$0xff]   ;;  %v3008_v18 = vld [vmem:[%s5037_s2 + $0x48] ss:$16 sps:$4 sm:$0xff]   ;;  %v3013_v19 = vld [vmem:[%s5037_s2 + $0x24] ss:$16 sps:$4 sm:$0xff]  }
 0x6c6   :  { %v949_v22 = vpop.f32.mrf.mxu0  ;;  %v990_v23 = vpop.f32.mrf.mxu1  ;;  %v4296_v31 = vld [vmem:[%s5035_s1 + $0x1ac] ss:$16 sps:$4 sm:$0xff]  }
 0x6c7   :  { %v2798_v24 = vmul.f32 -1.442695, %v995_v21  ;;  %v996_v25 = vadd.f32 %v949_v22, %v909_v20  ;;  %v2800_v8 = vmul.f32 -1.442695, %v997_v32  ;;  %v998_v44 = vadd.f32 %v990_v23, %v911_v5  ;;  %v3016_v20 = vld [vmem:[%s5037_s2 + $0x2c] ss:$16 sps:$4 sm:$0xff]  }
 0x6c8   :  { %v951_v26 = vpop.f32.mrf.mxu0  ;;  %v992_v27 = vpop.f32.mrf.mxu1  ;;  %v3011_v21 = vld [vmem:[%s5037_s2 + $0x20] ss:$16 sps:$4 sm:$0xff]   ;;  %v3014_v22 = vld [vmem:[%s5037_s2 + $0x28] ss:$16 sps:$4 sm:$0xff]   ;;  %v3019_v23 = vld [vmem:[%s5037_s2 + $0x4] ss:$16 sps:$4 sm:$0xff]  }
 0x6c9   :  { %3167 = vpow2.f32 %v2798_v24  ;;  %v2799_v28 = vmul.f32 -1.442695, %v996_v25  ;;  %v3022_v24 = vld [vmem:[%s5037_s2 + $0xc] ss:$16 sps:$4 sm:$0xff]   ;;  %v3017_v25 = vld [vmem:[%s5037_s2] ss:$16 sps:$4 sm:$0xff]   ;;  %v1179_v27 = vpack.c.bf16 %v3728_v41, %v3674_v35  ;;  %v1180_v35 = vpack.c.bf16 %v3836_v54, %v3782_v47 }
 0x6ca   :  { %v952_v29 = vpop.f32.mrf.mxu0  ;;  %v993_v30 = vpop.f32.mrf.mxu1  ;;  %v3020_v26 = vld [vmem:[%s5037_s2 + $0x8] ss:$16 sps:$4 sm:$0xff]   ;;  %v1521_v41 = vpack.c.bf16 %v3978_v34, %v3890_v55  ;;  %v4243_v47 = vld [vmem:[%s5035_s1 + $0x1e4] ss:$16 sps:$4 sm:$0xff]   ;;  %v4248_v54 = vld [vmem:[%s5035_s1 + $0x1ec] ss:$16 sps:$4 sm:$0xff]  }
 0x6cb   :  { %3169 = vpow2.f32 %v2799_v28  ;;  %v4253_v55 = vld [vmem:[%s5035_s1 + $0x1e0] ss:$16 sps:$4 sm:$0xff]   ;;  %v4258_v34 = vld [vmem:[%s5035_s1 + $0x1e8] ss:$16 sps:$4 sm:$0xff]   ;;  %v4291_v30 = vld [vmem:[%s5035_s1 + $0x1a4] ss:$16 sps:$4 sm:$0xff]  }
 0x6cc   :  { %3171 = vpow2.f32 %v2800_v8  ;;  %v4277_v28 = vld [vmem:[%s5035_s1 + $0x1c0] ss:$16 sps:$4 sm:$0xff]   ;;  %v4282_v29 = vld [vmem:[%s5035_s1 + $0x1c8] ss:$16 sps:$4 sm:$0xff]   ;;  %v4315_v8 = vld [vmem:[%s5035_s1 + $0x184] ss:$16 sps:$4 sm:$0xff]  }
 0x6cd   :  { %v4301_v32 = vld [vmem:[%s5035_s1 + $0x1a0] ss:$16 sps:$4 sm:$0xff]   ;;  %v4306_v5 = vld [vmem:[%s5035_s1 + $0x1a8] ss:$16 sps:$4 sm:$0xff]  }
 0x6d6   :  { %v3168_v9 = vpop.eup %3167 }
 0x6d7   :  { %v1008_v56 = vadd.f32 1.0, %v3168_v9  ;;  %v4320_v9 = vld [vmem:[%s5035_s1 + $0x18c] ss:$16 sps:$4 sm:$0xff]  }
 0x6d8   :  { %v3170_v57 = vpop.eup %3169 }
 0x6d9   :  { %3173 = vrcp.f32 %v1008_v56  ;;  %v1009_v58 = vadd.f32 1.0, %v3170_v57  ;;  %v3172_v59 = vpop.eup %3171  ;;  %v4330_v56 = vld [vmem:[%s5035_s1 + $0x188] ss:$16 sps:$4 sm:$0xff]   ;;  %v4335_v57 = vld [vmem:[%s5035_s1 + $0x164] ss:$16 sps:$4 sm:$0xff]  }
 0x6da   :  { %3175 = vtanh.f32 %v998_v44  ;;  %v1010_v62 = vadd.f32 1.0, %v3172_v59  ;;  %v4325_v44 = vld [vmem:[%s5035_s1 + $0x180] ss:$16 sps:$4 sm:$0xff]  }
 0x6db   :  { %3177 = vrcp.f32 %v1009_v58  ;;  %v4340_v58 = vld [vmem:[%s5035_s1 + $0x16c] ss:$16 sps:$4 sm:$0xff]   ;;  %v4349_v59 = vld [vmem:[%s5035_s1 + $0x160] ss:$16 sps:$4 sm:$0xff]  }
 0x6dc   :  { %3179 = vrcp.f32 %v1010_v62  ;;  %v4373_v62 = vld [vmem:[%s5035_s1 + $0x140] ss:$16 sps:$4 sm:$0xff]  }
 0x6e6   :  { %v3174_v0 = vpop.eup %3173 }
 0x6e7   :  { %v3176_v6 = vpop.eup %3175 }
 0x6e8   :  { %v3178_v60 = vpop.eup %3177  ;;  %v1019_v36 = vmul.f32 %v3176_v6, %v3174_v0  ;;  %v4354_v0 = vld [vmem:[%s5035_s1 + $0x168] ss:$16 sps:$4 sm:$0xff]   ;;  %v4361_v6 = vld [vmem:[%s5035_s1 + $0x144] ss:$16 sps:$4 sm:$0xff]  }
 0x6e9   :  { %v1018_v33 = vmul.f32 %v3178_v60, %v3975_v61  ;;  %v3180_v39 = vpop.eup %3179  ;;  %v4366_v60 = vld [vmem:[%s5035_s1 + $0x14c] ss:$16 sps:$4 sm:$0xff]  }
 0x6eb   :  { %v4087_v37 = vadd.f32 %v1019_v36, %v1018_v33  ;;  %v4378_v33 = vld [vmem:[%s5035_s1 + $0x148] ss:$16 sps:$4 sm:$0xff]   ;;  %v4387_v36 = vld [vmem:[%s5035_s1 + $0x124] ss:$16 sps:$4 sm:$0xff]  }
 0x6ed   :  { %3181 = vtanh.f32 %v4087_v37 }
 0x6fa   :  { %v3182_v40 = vpop.eup %3181 }
 0x6fb   :  { %v4090_v42 = vmul.f32 %v3182_v40, %v3180_v39  ;;  %v4392_v39 = vld [vmem:[%s5035_s1 + $0x12c] ss:$16 sps:$4 sm:$0xff]   ;;  %v4397_v40 = vld [vmem:[%s5035_s1 + $0x120] ss:$16 sps:$4 sm:$0xff]  }
 0x6fd   :  { %v1028_v61 = vpack.c.bf16 %v4090_v42, %v4090_v42 }
 0x6ff   :  { %1062 = vmatmul.mubr.bf16.vlgmr.msra.gmra.mxu0 %v1028_v61  ;;  %1103 = vmatmul.mubr.bf16.vlgmr.msra.gmra.mxu1 %v1028_v61  ;;  %v4416_v61 = vld [vmem:[%s5035_s1 + $0x10c] ss:$16 sps:$4 sm:$0xff]  }
 0x700   :  { %1363 = vmatpush1.bf16.msra.mxu0 %v4095_v63  ;;  %1416 = vmatpush1.bf16.msra.mxu1 %v4100_v43 }
 0x701   :  { %1364 = vmatprep.subr.bf16.mxu0 %v4107_v45  ;;  %1417 = vmatprep.subr.bf16.mxu1 %v4112_v46 }
 0x702   :  { %1394 = vmatprep.mubr.bf16.mxu0 %v5042_v1  ;;  %1447 = vmatprep.mubr.bf16.mxu1 %v5042_v1 }
 0x704   :  { %1365 = vmatpush1.bf16.msra.mxu0 %v4119_v48  ;;  %1418 = vmatpush1.bf16.msra.mxu1 %v4124_v38 }
 0x705   :  { %1366 = vmatprep.subr.bf16.mxu0 %v4131_v49  ;;  %1419 = vmatprep.subr.bf16.mxu1 %v4136_v50 }
 0x708   :  { %1367 = vmatpush1.bf16.msra.mxu0 %v4145_v52  ;;  %1420 = vmatpush1.bf16.msra.mxu1 %v4150_v53 }
 0x709   :  { %1368 = vmatprep.subr.bf16.mxu0 %v2995_v2  ;;  %1421 = vmatprep.subr.bf16.mxu1 %v2998_v3 }
 0x70c   :  { %1369 = vmatpush1.bf16.msra.mxu0 %v2993_v51  ;;  %1422 = vmatpush1.bf16.msra.mxu1 %v2996_v4 }
 0x70d   :  { %1370 = vmatprep.subr.bf16.mxu0 %v3001_v7  ;;  %1423 = vmatprep.subr.bf16.mxu1 %v3004_v10 }
 0x710   :  { %1371 = vmatpush1.bf16.msra.mxu0 %v2999_v11  ;;  %1424 = vmatpush1.bf16.msra.mxu1 %v3002_v12 }
 0x711   :  { %1372 = vmatprep.subr.bf16.mxu0 %v3007_v13  ;;  %1425 = vmatprep.subr.bf16.mxu1 %v3010_v14 }
 0x714   :  { %1373 = vmatpush1.bf16.msra.mxu0 %v3005_v17  ;;  %1426 = vmatpush1.bf16.msra.mxu1 %v3008_v18 }
 0x715   :  { %1374 = vmatprep.subr.bf16.mxu0 %v3013_v19  ;;  %1427 = vmatprep.subr.bf16.mxu1 %v3016_v20 }
 0x718   :  { %1375 = vmatpush1.bf16.msra.mxu0 %v3011_v21  ;;  %1428 = vmatpush1.bf16.msra.mxu1 %v3014_v22 }
 0x719   :  { %1376 = vmatprep.subr.bf16.mxu0 %v3019_v23  ;;  %1429 = vmatprep.subr.bf16.mxu1 %v3022_v24 }
 0x71c   :  { %1377 = vmatpush1.bf16.msra.mxu0 %v3017_v25  ;;  %1430 = vmatpush1.bf16.msra.mxu1 %v3020_v26 }
 0x71d   :  { %1523 = vmatprep.subr.bf16.mxu0 %v4065_v15  ;;  %1576 = vmatprep.subr.bf16.mxu1 %v4070_v16  ;;  %v4267_v15 = vld [vmem:[%s5035_s1 + $0x1c4] ss:$16 sps:$4 sm:$0xff]   ;;  %v4272_v16 = vld [vmem:[%s5035_s1 + $0x1cc] ss:$16 sps:$4 sm:$0xff]  }
 0x71f   :  { %1395 = vmatmul.mubr.bf16.vlgmr.msra.gmra.mxu0 %v1179_v27  ;;  %1448 = vmatmul.mubr.bf16.vlgmr.msra.gmra.mxu1 %v1179_v27 }
 0x720   :  { %1524 = vmatpush1.bf16.msra.mxu0 %v4095_v63  ;;  %1577 = vmatpush1.bf16.msra.mxu1 %v4100_v43  ;;  %v4402_v63 = vld [vmem:[%s5035_s1 + $0x128] ss:$16 sps:$4 sm:$0xff]   ;;  %v4411_v43 = vld [vmem:[%s5035_s1 + $0x104] ss:$16 sps:$4 sm:$0xff]  }
 0x721   :  { %1525 = vmatprep.subr.bf16.mxu0 %v4107_v45  ;;  %1578 = vmatprep.subr.bf16.mxu1 %v4112_v46  ;;  %v4421_v45 = vld [vmem:[%s5035_s1 + $0x100] ss:$16 sps:$4 sm:$0xff]   ;;  %v4426_v46 = vld [vmem:[%s5035_s1 + $0x108] ss:$16 sps:$4 sm:$0xff]  }
 0x722   :  { %1404 = vmatprep.mubr.bf16.mxu0 %v5042_v1  ;;  %1457 = vmatprep.mubr.bf16.mxu1 %v5042_v1 }
 0x724   :  { %1526 = vmatpush1.bf16.msra.mxu0 %v4119_v48  ;;  %1579 = vmatpush1.bf16.msra.mxu1 %v4124_v38  ;;  %v1024_v48 = vld [vmem:[%s5036_s0 + $0xe0] sm:$0xff] }
 0x725   :  { %1527 = vmatprep.subr.bf16.mxu0 %v4131_v49  ;;  %1580 = vmatprep.subr.bf16.mxu1 %v4136_v50  ;;  %v1025_v50 = vld [vmem:[%s5036_s0 + $0xe8] sm:$0xff] }
 0x727   :  { %1405 = vmatmul.mubr.bf16.gmra.mxu0 %v1180_v35  ;;  %1458 = vmatmul.mubr.bf16.gmra.mxu1 %v1180_v35 }
 0x728   :  { %1528 = vmatpush1.bf16.msra.mxu0 %v4145_v52  ;;  %1581 = vmatpush1.bf16.msra.mxu1 %v4150_v53 }
 0x729   :  { %1529 = vmatprep.subr.bf16.mxu0 %v2995_v2  ;;  %1582 = vmatprep.subr.bf16.mxu1 %v2998_v3 }
 0x72a   :  { %1555 = vmatprep.mubr.bf16.mxu0 %v5042_v1  ;;  %1608 = vmatprep.mubr.bf16.mxu1 %v5042_v1 }
 0x72c   :  { %1530 = vmatpush1.bf16.msra.mxu0 %v2993_v51  ;;  %1583 = vmatpush1.bf16.msra.mxu1 %v2996_v4 }
 0x72d   :  { %1531 = vmatprep.subr.bf16.mxu0 %v3001_v7  ;;  %1584 = vmatprep.subr.bf16.mxu1 %v3004_v10 }
 0x730   :  { %1532 = vmatpush1.bf16.msra.mxu0 %v2999_v11  ;;  %1585 = vmatpush1.bf16.msra.mxu1 %v3002_v12 }
 0x731   :  { %1533 = vmatprep.subr.bf16.mxu0 %v3007_v13  ;;  %1586 = vmatprep.subr.bf16.mxu1 %v3010_v14  ;;  %v1026_v13 = vld [vmem:[%s5036_s0 + $0xf0] sm:$0xff] }
 0x734   :  { %1534 = vmatpush1.bf16.msra.mxu0 %v3005_v17  ;;  %1587 = vmatpush1.bf16.msra.mxu1 %v3008_v18  ;;  %v1027_v17 = vld [vmem:[%s5036_s0 + $0xf8] sm:$0xff] }
 0x735   :  { %1535 = vmatprep.subr.bf16.mxu0 %v3013_v19  ;;  %1588 = vmatprep.subr.bf16.mxu1 %v3016_v20 }
 0x738   :  { %1536 = vmatpush1.bf16.msra.mxu0 %v3011_v21  ;;  %1589 = vmatpush1.bf16.msra.mxu1 %v3014_v22 }
 0x739   :  { %1537 = vmatprep.subr.bf16.mxu0 %v3019_v23  ;;  %1590 = vmatprep.subr.bf16.mxu1 %v3022_v24 }
 0x73c   :  { %1538 = vmatpush1.bf16.msra.mxu0 %v3017_v25  ;;  %1591 = vmatpush1.bf16.msra.mxu1 %v3020_v26 }
 0x73d   :  { %1809 = vmatprep.subr.bf16.mxu0 %v4243_v47  ;;  %1850 = vmatprep.subr.bf16.mxu1 %v4248_v54 }
 0x73f   :  { %1556 = vmatmul.mubr.bf16.vlgmr.msra.gmra.mxu0 %v1521_v41  ;;  %1609 = vmatmul.mubr.bf16.vlgmr.msra.gmra.mxu1 %v1521_v41 }
 0x740   :  { %1565 = vmatprep.mubr.bf16.mxu0 %v5042_v1  ;;  %1618 = vmatprep.mubr.bf16.mxu1 %v5042_v1 }
 0x741   :  { %1810 = vmatpush1.bf16.msra.mxu0 %v4253_v55  ;;  %1851 = vmatpush1.bf16.msra.mxu1 %v4258_v34 }
 0x742   :  { %1811 = vmatprep.subr.bf16.mxu0 %v4267_v15  ;;  %1852 = vmatprep.subr.bf16.mxu1 %v4272_v16 }
 0x745   :  { %1812 = vmatpush1.bf16.msra.mxu0 %v4277_v28  ;;  %1853 = vmatpush1.bf16.msra.mxu1 %v4282_v29 }
 0x746   :  { %1813 = vmatprep.subr.bf16.mxu0 %v4291_v30  ;;  %1854 = vmatprep.subr.bf16.mxu1 %v4296_v31 }
 0x749   :  { %1814 = vmatpush1.bf16.msra.mxu0 %v4301_v32  ;;  %1855 = vmatpush1.bf16.msra.mxu1 %v4306_v5 }
 0x74a   :  { %1815 = vmatprep.subr.bf16.mxu0 %v4315_v8  ;;  %1856 = vmatprep.subr.bf16.mxu1 %v4320_v9 }
 0x74d   :  { %1816 = vmatpush1.bf16.msra.mxu0 %v4325_v44  ;;  %1857 = vmatpush1.bf16.msra.mxu1 %v4330_v56 }
 0x74e   :  { %1817 = vmatprep.subr.bf16.mxu0 %v4335_v57  ;;  %1858 = vmatprep.subr.bf16.mxu1 %v4340_v58 }
 0x751   :  { %1818 = vmatpush1.bf16.msra.mxu0 %v4349_v59  ;;  %1859 = vmatpush1.bf16.msra.mxu1 %v4354_v0 }
 0x752   :  { %1819 = vmatprep.subr.bf16.mxu0 %v4361_v6  ;;  %1860 = vmatprep.subr.bf16.mxu1 %v4366_v60 }
 0x755   :  { %1820 = vmatpush1.bf16.msra.mxu0 %v4373_v62  ;;  %1861 = vmatpush1.bf16.msra.mxu1 %v4378_v33 }
 0x756   :  { %1821 = vmatprep.subr.bf16.mxu0 %v4387_v36  ;;  %1862 = vmatprep.subr.bf16.mxu1 %v4392_v39 }
 0x759   :  { %1822 = vmatpush1.bf16.msra.mxu0 %v4397_v40  ;;  %1863 = vmatpush1.bf16.msra.mxu1 %v4402_v63 }
 0x75a   :  { %1823 = vmatprep.subr.bf16.mxu0 %v4411_v43  ;;  %1864 = vmatprep.subr.bf16.mxu1 %v4416_v61 }
 0x75d   :  { %1824 = vmatpush1.bf16.msra.mxu0 %v4421_v45  ;;  %1865 = vmatpush1.bf16.msra.mxu1 %v4426_v46 }
 0x75e   :  { %1925 = vmatprep.subr.bf16.mxu0 %v4243_v47  ;;  %1966 = vmatprep.subr.bf16.mxu1 %v4248_v54 }
 0x7bf   :  { %v1063_v38 = vpop.f32.mrf.mxu0  ;;  %v1104_v49 = vpop.f32.mrf.mxu1 }
 0x7c0   :  { %v1111_v52 = vadd.f32 %v1063_v38, %v1024_v48  ;;  %v1113_v14 = vadd.f32 %v1104_v49, %v1026_v13 }
 0x7c1   :  { %v1065_v53 = vpop.f32.mrf.mxu0  ;;  %v1106_v2 = vpop.f32.mrf.mxu1 }
 0x7c2   :  { %v2801_v3 = vmul.f32 -1.442695, %v1111_v52  ;;  %v1112_v51 = vadd.f32 %v1065_v53, %v1025_v50  ;;  %v2803_v18 = vmul.f32 -1.442695, %v1113_v14  ;;  %v1114_v20 = vadd.f32 %v1106_v2, %v1027_v17 }
 0x7c3   :  { %v1067_v4 = vpop.f32.mrf.mxu0  ;;  %v1108_v7 = vpop.f32.mrf.mxu1 }
 0x7c4   :  { %3183 = vpow2.f32 %v2801_v3  ;;  %v2802_v10 = vmul.f32 -1.442695, %v1112_v51 }
 0x7c5   :  { %v1068_v11 = vpop.f32.mrf.mxu0  ;;  %v1109_v12 = vpop.f32.mrf.mxu1 }
 0x7c6   :  { %3185 = vpow2.f32 %v2802_v10 }
 0x7c7   :  { %3187 = vpow2.f32 %v2803_v18 }
 0x7d1   :  { %v3184_v19 = vpop.eup %3183 }
 0x7d2   :  { %v1124_v21 = vadd.f32 1.0, %v3184_v19 }
 0x7d3   :  { %v3186_v22 = vpop.eup %3185 }
 0x7d4   :  { %3189 = vrcp.f32 %v1124_v21  ;;  %v1125_v23 = vadd.f32 1.0, %v3186_v22  ;;  %v3188_v24 = vpop.eup %3187 }
 0x7d5   :  { %3191 = vtanh.f32 %v1114_v20  ;;  %v1126_v35 = vadd.f32 1.0, %v3188_v24 }
 0x7d6   :  { %3193 = vrcp.f32 %v1125_v23 }
 0x7d7   :  { %3195 = vrcp.f32 %v1126_v35 }
 0x7e1   :  { %v3190_v25 = vpop.eup %3189 }
 0x7e2   :  { %v3192_v26 = vpop.eup %3191 }
 0x7e3   :  { %v3194_v27 = vpop.eup %3193  ;;  %v1135_v48 = vmul.f32 %v3192_v26, %v3190_v25  ;;  %v1182_v25 = vlaneseq }
 0x7e4   :  { %v1134_v41 = vmul.f32 %v3194_v27, %v4087_v37  ;;  %v3196_v49 = vpop.eup %3195  ;;  %v1396_v37 = vpop.f32.mrf.mxu0 }
 0x7e5   :  { %v1183_v35 = vshrl.u32 %v1182_v25, 7 }
 0x7e6   :  { %v1136_v38 = vadd.f32 %v1135_v48, %v1134_v41  ;;  %v1398_v2 = vpop.f32.mrf.mxu0 }
 0x7e8   :  { %3197 = vtanh.f32 %v1136_v38  ;;  %1141 = vst [vmem:[%s5038_s6] sm:$0xff] %v1136_v38  ;;  %v4492_v51 = vpop.f32.mrf.mxu0  ;;  %v1184_v38 = vsub.s32 0, %v1183_v35 }
 0x7ea   :  { %v4496_v7 = vpop.f32.mrf.mxu0 }
 0x7ec   :  { %v4500_v11 = vpop.f32.mrf.mxu0 }
 0x7ee   :  { %v4504_v13 = vpop.f32.mrf.mxu0 }
 0x7f0   :  { %v4508_v17 = vpop.f32.mrf.mxu0 }
 0x7f1   :  { %5046 = vst [vmem:[#allocation7_spill] sm:$0xff] %v4508_v17 }
 0x7f2   :  { %v4512_v19 = vpop.f32.mrf.mxu0 }
 0x7f3   :  { %5048 = vst [vmem:[#allocation9_spill] sm:$0xff] %v4512_v19 }
 0x7f5   :  { %v3198_v50 = vpop.eup %3197 }
 0x7f6   :  { %v1138_v52 = vmul.f32 %v3198_v50, %v3196_v49  ;;  %v1174_v49 = vld [vmem:[%s5040_s3] sm:$0xf] }
 0x7f8   :  { %1140 = vst [vmem:[%s5039_s5] sm:$0xff] %v1138_v52  ;;  %v1522_v53 = vpack.c.bf16 %v1138_v52, %v4090_v42  ;;  %v1449_v42 = vpop.f32.mrf.mxu1 }
 0x7fa   :  { %1566 = vmatmul.mubr.bf16.gmra.mxu0 %v1522_v53  ;;  %1619 = vmatmul.mubr.bf16.gmra.mxu1 %v1522_v53  ;;  %v1451_v3 = vpop.f32.mrf.mxu1  ;;  %v1188_v53 = vsub.s32 1, %v1183_v35 }
 0x7fb   :  { %1841 = vmatprep.mubr.bf16.mxu0 %v5042_v1  ;;  %1882 = vmatprep.mubr.bf16.mxu1 %v5042_v1 }
 0x7fc   :  { %v4494_v4 = vpop.f32.mrf.mxu1 }
 0x7fe   :  { %v4498_v10 = vpop.f32.mrf.mxu1 }
 0x7ff   :  { %v4516_v21 = vpop.f32.mrf.mxu0 }
 0x800   :  { %v4502_v12 = vpop.f32.mrf.mxu1  ;;  %5050 = vst [vmem:[#allocation11_spill] sm:$0xff] %v4516_v21 }
 0x801   :  { %5044 = vst [vmem:[#allocation5_spill] sm:$0xff] %v4502_v12  ;;  %v4520_v23 = vpop.f32.mrf.mxu0 }
 0x802   :  { %1842 = vmatmul.mubr.bf16.vlgmr.msra.gmra.mxu0 %v5042_v1  ;;  %1883 = vmatmul.mubr.bf16.vlgmr.msra.gmra.mxu1 %v5042_v1  ;;  %v4506_v14 = vpop.f32.mrf.mxu1  ;;  %5052 = vst [vmem:[#allocation13_spill] sm:$0xff] %v4520_v23 }
 0x803   :  { %1926 = vmatpush1.bf16.msra.mxu0 %v4253_v55  ;;  %1967 = vmatpush1.bf16.msra.mxu1 %v4258_v34  ;;  %5045 = vst [vmem:[#allocation6_spill] sm:$0xff] %v4506_v14  ;;  %v4524_v26 = vpop.f32.mrf.mxu0 }
 0x804   :  { %1927 = vmatprep.subr.bf16.mxu0 %v4267_v15  ;;  %1968 = vmatprep.subr.bf16.mxu1 %v4272_v16  ;;  %v4510_v18 = vpop.f32.mrf.mxu1  ;;  %5054 = vst [vmem:[#allocation15_spill] sm:$0xff] %v4524_v26 }
 0x805   :  { %1957 = vmatprep.mubr.bf16.mxu0 %v5042_v1  ;;  %1998 = vmatprep.mubr.bf16.mxu1 %v5042_v1  ;;  %5047 = vst [vmem:[#allocation8_spill] sm:$0xff] %v4510_v18  ;;  %v4528_v41 = vpop.f32.mrf.mxu0 }
 0x806   :  { %v4514_v20 = vpop.f32.mrf.mxu1  ;;  %5056 = vst [vmem:[#allocation17_spill] sm:$0xff] %v4528_v41 }
 0x807   :  { %1928 = vmatpush1.bf16.msra.mxu0 %v4277_v28  ;;  %1969 = vmatpush1.bf16.msra.mxu1 %v4282_v29  ;;  %5049 = vst [vmem:[#allocation10_spill] sm:$0xff] %v4514_v20 }
 0x808   :  { %1929 = vmatprep.subr.bf16.mxu0 %v4291_v30  ;;  %1970 = vmatprep.subr.bf16.mxu1 %v4296_v31  ;;  %v4518_v22 = vpop.f32.mrf.mxu1 }
 0x809   :  { %5051 = vst [vmem:[#allocation12_spill] sm:$0xff] %v4518_v22 }
 0x80a   :  { %v4522_v24 = vpop.f32.mrf.mxu1 }
 0x80b   :  { %1930 = vmatpush1.bf16.msra.mxu0 %v4301_v32  ;;  %1971 = vmatpush1.bf16.msra.mxu1 %v4306_v5  ;;  %5053 = vst [vmem:[#allocation14_spill] sm:$0xff] %v4522_v24 }
 0x80c   :  { %1931 = vmatprep.subr.bf16.mxu0 %v4315_v8  ;;  %1972 = vmatprep.subr.bf16.mxu1 %v4320_v9  ;;  %v4526_v27 = vpop.f32.mrf.mxu1 }
 0x80d   :  { %5055 = vst [vmem:[#allocation16_spill] sm:$0xff] %v4526_v27  ;;  %v4543_v27 = vrot.slane %v1174_v49, %v1184_v38 }
 0x80e   :  { %v4530_v48 = vpop.f32.mrf.mxu1 }
 0x80f   :  { %1932 = vmatpush1.bf16.msra.mxu0 %v4325_v44  ;;  %1973 = vmatpush1.bf16.msra.mxu1 %v4330_v56  ;;  %5057 = vst [vmem:[#allocation18_spill] sm:$0xff] %v4530_v48  ;;  %v4549_v48 = vrot.slane %v1174_v49, %v1188_v53 }
 0x810   :  { %1933 = vmatprep.subr.bf16.mxu0 %v4335_v57  ;;  %1974 = vmatprep.subr.bf16.mxu1 %v4340_v58 }
 0x813   :  { %1934 = vmatpush1.bf16.msra.mxu0 %v4349_v59  ;;  %1975 = vmatpush1.bf16.msra.mxu1 %v4354_v0 }
 0x814   :  { %1935 = vmatprep.subr.bf16.mxu0 %v4361_v6  ;;  %1976 = vmatprep.subr.bf16.mxu1 %v4366_v60 }
 0x817   :  { %1936 = vmatpush1.bf16.msra.mxu0 %v4373_v62  ;;  %1977 = vmatpush1.bf16.msra.mxu1 %v4378_v33 }
 0x818   :  { %1937 = vmatprep.subr.bf16.mxu0 %v4387_v36  ;;  %1978 = vmatprep.subr.bf16.mxu1 %v4392_v39 }
 0x81b   :  { %1938 = vmatpush1.bf16.msra.mxu0 %v4397_v40  ;;  %1979 = vmatpush1.bf16.msra.mxu1 %v4402_v63 }
 0x81c   :  { %1939 = vmatprep.subr.bf16.mxu0 %v4411_v43  ;;  %1980 = vmatprep.subr.bf16.mxu1 %v4416_v61 }
 0x81f   :  { %1940 = vmatpush1.bf16.msra.mxu0 %v4421_v45  ;;  %1981 = vmatpush1.bf16.msra.mxu1 %v4426_v46 }
 0x820   :  { %2041 = vmatprep.subr.bf16.mxu0 %v4243_v47  ;;  %2082 = vmatprep.subr.bf16.mxu1 %v4248_v54 }
 0x8ba   :  { %v4535_v50 = vpop.f32.mrf.mxu0  ;;  %v4537_v52 = vpop.f32.mrf.mxu1 }
 0x8bb   :  { %5058 = vst [vmem:[#allocation19_spill] sm:$0xff] %v4535_v50  ;;  %5059 = vst [vmem:[#allocation20_spill] sm:$0xff] %v4537_v52  ;;  %v1397_v50 = vadd.f32 %v1396_v37, %v4543_v27  ;;  %v1196_v37 = vsub.s32 3, %v1183_v35 }
 0x8bc   :  { %v4539_v1 = vpop.f32.mrf.mxu0  ;;  %v4541_v26 = vpop.f32.mrf.mxu1 }
 0x8bd   :  { %5060 = vst [vmem:[#allocation21_spill] sm:$0xff] %v4539_v1  ;;  %5061 = vst [vmem:[#allocation22_spill] sm:$0xff] %v4541_v26  ;;  %v1399_v1 = vadd.f32 %v1398_v2, %v4549_v48  ;;  %v1192_v26 = vsub.s32 2, %v1183_v35  ;;  %v4560_v12 = vrot.slane %v1174_v49, %v1196_v37  ;;  %v1401_v37 = vadd.f32 %v4492_v51, %v4543_v27 }
 0x8be   :  { %v4545_v25 = vpop.f32.mrf.mxu0  ;;  %v4547_v41 = vpop.f32.mrf.mxu1 }
 0x8bf   :  { %5062 = vst [vmem:[#allocation23_spill] sm:$0xff] %v4545_v25  ;;  %5063 = vst [vmem:[#allocation24_spill] sm:$0xff] %v4547_v41  ;;  %v4557_v17 = vrot.slane %v1174_v49, %v1192_v26 }
 0x8c0   :  { %v4551_v24 = vpop.f32.mrf.mxu0  ;;  %v4553_v22 = vpop.f32.mrf.mxu1 }
 0x8c1   :  { %5064 = vst [vmem:[#allocation25_spill] sm:$0xff] %v4551_v24  ;;  %5065 = vst [vmem:[#allocation26_spill] sm:$0xff] %v4553_v22  ;;  %v1450_v14 = vadd.f32 %v1449_v42, %v4557_v17  ;;  %v1454_v51 = vadd.f32 %v4494_v4, %v4557_v17 }
 0x8c2   :  { %v1843_v52 = vpop.f32.mrf.mxu0  ;;  %v1884_v23 = vpop.f32.mrf.mxu1 }
 0x8c3   :  { %v1891_v21 = vadd.f32 %v1843_v52, %v1397_v50  ;;  %v1893_v2 = vadd.f32 %v1884_v23, %v1450_v14  ;;  %v1452_v50 = vadd.f32 %v1451_v3, %v4560_v12 }
 0x8c4   :  { %v1845_v38 = vpop.f32.mrf.mxu0  ;;  %v1886_v20 = vpop.f32.mrf.mxu1 }
 0x8c5   :  { %v2900_v18 = vmul.f32 -1.442695, %v1891_v21  ;;  %v1892_v25 = vadd.f32 %v1845_v38, %v1399_v1  ;;  %v2902_v52 = vmul.f32 -1.442695, %v1893_v2  ;;  %v1894_v1 = vadd.f32 %v1886_v20, %v1452_v50 }
 0x8c6   :  { %v1847_v19 = vpop.f32.mrf.mxu0  ;;  %v1888_v41 = vpop.f32.mrf.mxu1 }
 0x8c7   :  { %3199 = vpow2.f32 %v2900_v18  ;;  %v2901_v53 = vmul.f32 -1.442695, %v1892_v25 }
 0x8c8   :  { %v1848_v24 = vpop.f32.mrf.mxu0  ;;  %v1889_v22 = vpop.f32.mrf.mxu1 }
 0x8c9   :  { %3201 = vpow2.f32 %v2901_v53  ;;  %v5066_v53 = vmov 0  }
 0x8ca   :  { %3203 = vpow2.f32 %v2902_v52  ;;  %v1403_v52 = vadd.f32 %v4496_v7, %v4549_v48 }
 0x8d4   :  { %v3200_v21 = vpop.eup %3199 }
 0x8d5   :  { %v1904_v19 = vadd.f32 1.0, %v3200_v21 }
 0x8d6   :  { %v3202_v41 = vpop.eup %3201 }
 0x8d7   :  { %3205 = vrcp.f32 %v1904_v19  ;;  %v1905_v18 = vadd.f32 1.0, %v3202_v41  ;;  %v3204_v22 = vpop.eup %3203 }
 0x8d8   :  { %3207 = vtanh.f32 %v1894_v1  ;;  %v1906_v42 = vadd.f32 1.0, %v3204_v22 }
 0x8d9   :  { %3209 = vrcp.f32 %v1905_v18 }
 0x8da   :  { %3211 = vrcp.f32 %v1906_v42 }
 0x8e4   :  { %v3206_v24 = vpop.eup %3205 }
 0x8e5   :  { %v3208_v26 = vpop.eup %3207 }
 0x8e6   :  { %v3210_v35 = vpop.eup %3209  ;;  %v1915_v25 = vmul.f32 %v3208_v26, %v3206_v24 }
 0x8e7   :  { %v1914_v49 = vmul.f32 0.0, %v3210_v35  ;;  %v3212_v3 = vpop.eup %3211 }
 0x8e9   :  { %v4563_v14 = vadd.f32 %v1915_v25, %v1914_v49  ;;  %v1456_v25 = vadd.f32 %v4498_v10, %v4560_v12 }
 0x8eb   :  { %3213 = vtanh.f32 %v4563_v14 }
 0x8f8   :  { %v3214_v20 = vpop.eup %3213 }
 0x8f9   :  { %v1918_v23 = vmul.f32 %v3214_v20, %v3212_v3 }
 0x8fb   :  { %1919 = vst [vmem:[%s5041_s4] sm:$0xff] %v1918_v23  ;;  %v1924_v38 = vpack.c.bf16 %v1918_v23, %v1918_v23 }
 0x8fd   :  { %1958 = vmatmul.mubr.bf16.vlgmr.msra.gmra.mxu0 %v1924_v38  ;;  %1999 = vmatmul.mubr.bf16.vlgmr.msra.gmra.mxu1 %v1924_v38 }
 0x8fe   :  { %2042 = vmatpush1.bf16.msra.mxu0 %v4253_v55  ;;  %2083 = vmatpush1.bf16.msra.mxu1 %v4258_v34 }
 0x8ff   :  { %2043 = vmatprep.subr.bf16.mxu0 %v4267_v15  ;;  %2084 = vmatprep.subr.bf16.mxu1 %v4272_v16 }
 0x900   :  { %2073 = vmatprep.mubr.bf16.mxu0 %v5066_v53  ;;  %2114 = vmatprep.mubr.bf16.mxu1 %v5066_v53 }
 0x902   :  { %2044 = vmatpush1.bf16.msra.mxu0 %v4277_v28  ;;  %2085 = vmatpush1.bf16.msra.mxu1 %v4282_v29 }
 0x903   :  { %2045 = vmatprep.subr.bf16.mxu0 %v4291_v30  ;;  %2086 = vmatprep.subr.bf16.mxu1 %v4296_v31 }
 0x906   :  { %2046 = vmatpush1.bf16.msra.mxu0 %v4301_v32  ;;  %2087 = vmatpush1.bf16.msra.mxu1 %v4306_v5 }
 0x907   :  { %2047 = vmatprep.subr.bf16.mxu0 %v4315_v8  ;;  %2088 = vmatprep.subr.bf16.mxu1 %v4320_v9 }
 0x90a   :  { %2048 = vmatpush1.bf16.msra.mxu0 %v4325_v44  ;;  %2089 = vmatpush1.bf16.msra.mxu1 %v4330_v56 }
 0x90b   :  { %2049 = vmatprep.subr.bf16.mxu0 %v4335_v57  ;;  %2090 = vmatprep.subr.bf16.mxu1 %v4340_v58 }
 0x90e   :  { %2050 = vmatpush1.bf16.msra.mxu0 %v4349_v59  ;;  %2091 = vmatpush1.bf16.msra.mxu1 %v4354_v0 }
 0x90f   :  { %2051 = vmatprep.subr.bf16.mxu0 %v4361_v6  ;;  %2092 = vmatprep.subr.bf16.mxu1 %v4366_v60 }
 0x912   :  { %2052 = vmatpush1.bf16.msra.mxu0 %v4373_v62  ;;  %2093 = vmatpush1.bf16.msra.mxu1 %v4378_v33 }
 0x913   :  { %2053 = vmatprep.subr.bf16.mxu0 %v4387_v36  ;;  %2094 = vmatprep.subr.bf16.mxu1 %v4392_v39 }
 0x916   :  { %2054 = vmatpush1.bf16.msra.mxu0 %v4397_v40  ;;  %2095 = vmatpush1.bf16.msra.mxu1 %v4402_v63 }
 0x917   :  { %2055 = vmatprep.subr.bf16.mxu0 %v4411_v43  ;;  %2096 = vmatprep.subr.bf16.mxu1 %v4416_v61 }
 0x91a   :  { %2056 = vmatpush1.bf16.msra.mxu0 %v4421_v45  ;;  %2097 = vmatpush1.bf16.msra.mxu1 %v4426_v46 }
 0x91b   :  { %2157 = vmatprep.subr.bf16.mxu0 %v4243_v47  ;;  %2198 = vmatprep.subr.bf16.mxu1 %v4248_v54 }
 0x9bd   :  { %v1959_v2 = vpop.f32.mrf.mxu0  ;;  %v2000_v50 = vpop.f32.mrf.mxu1 }
 0x9be   :  { %v2007_v21 = vadd.f32 %v1959_v2, %v1401_v37  ;;  %v2009_v49 = vadd.f32 %v2000_v50, %v1454_v51 }
 0x9bf   :  { %v1961_v1 = vpop.f32.mrf.mxu0  ;;  %v2002_v19 = vpop.f32.mrf.mxu1 }
 0x9c0   :  { %v2903_v41 = vmul.f32 -1.442695, %v2007_v21  ;;  %v2008_v18 = vadd.f32 %v1961_v1, %v1403_v52  ;;  %v2905_v7 = vmul.f32 -1.442695, %v2009_v49  ;;  %v2010_v3 = vadd.f32 %v2002_v19, %v1456_v25 }
 0x9c1   :  { %v1963_v22 = vpop.f32.mrf.mxu0  ;;  %v2004_v24 = vpop.f32.mrf.mxu1 }
 0x9c2   :  { %3215 = vpow2.f32 %v2903_v41  ;;  %v2904_v26 = vmul.f32 -1.442695, %v2008_v18 }
 0x9c3   :  { %v1964_v35 = vpop.f32.mrf.mxu0  ;;  %v2005_v42 = vpop.f32.mrf.mxu1 }
 0x9c4   :  { %3217 = vpow2.f32 %v2904_v26  ;;  %v1409_v42 = vadd.f32 %v4504_v13, %v4549_v48 }
 0x9c5   :  { %3219 = vpow2.f32 %v2905_v7 }
 0x9c6   :  { %3221 = vtanh.f32 %v2010_v3 }
 0x9cf   :  { %v3216_v20 = vpop.eup %3215 }
 0x9d0   :  { %v2020_v23 = vadd.f32 1.0, %v3216_v20 }
 0x9d1   :  { %v3218_v38 = vpop.eup %3217 }
 0x9d2   :  { %3223 = vrcp.f32 %v2020_v23  ;;  %v2021_v37 = vadd.f32 1.0, %v3218_v38  ;;  %v3220_v2 = vpop.eup %3219 }
 0x9d3   :  { %v3222_v52 = vpop.eup %3221  ;;  %v2022_v4 = vadd.f32 1.0, %v3220_v2 }
 0x9d4   :  { %3225 = vrcp.f32 %v2021_v37 }
 0x9d5   :  { %3227 = vrcp.f32 %v2022_v4 }
 0x9df   :  { %v3224_v21 = vpop.eup %3223 }
 0x9e0   :  { %v2031_v1 = vmul.f32 %v3224_v21, %v3222_v52  ;;  %v5067_v52 = vld [vmem:[#allocation5_spill] sm:$0xff] }
 0x9e1   :  { %v3226_v41 = vpop.eup %3225 }
 0x9e2   :  { %v2030_v50 = vmul.f32 %v3226_v41, %v4563_v14  ;;  %v3228_v10 = vpop.eup %3227  ;;  %v1407_v14 = vadd.f32 %v4500_v11, %v4543_v27  ;;  %v1460_v11 = vadd.f32 %v5067_v52, %v4557_v17  ;;  %v5070_v52 = vld [vmem:[#allocation9_spill] sm:$0xff] }
 0x9e4   :  { %v4612_v18 = vadd.f32 %v2031_v1, %v2030_v50  ;;  %v5068_v1 = vld [vmem:[#allocation6_spill] sm:$0xff] }
 0x9e5   :  { %v1462_v41 = vadd.f32 %v5068_v1, %v4560_v12 }
 0x9e6   :  { %3229 = vtanh.f32 %v4612_v18 }
 0x9f3   :  { %v3230_v19 = vpop.eup %3229 }
 0x9f4   :  { %v2034_v22 = vmul.f32 %v3230_v19, %v3228_v10 }
 0x9f6   :  { %2035 = vst [vmem:[%s5041_s4 + $0x8] sm:$0xff] %v2034_v22  ;;  %v2040_v24 = vpack.c.bf16 %v2034_v22, %v2034_v22 }
 0x9f8   :  { %2074 = vmatmul.mubr.bf16.vlgmr.msra.gmra.mxu0 %v2040_v24  ;;  %2115 = vmatmul.mubr.bf16.vlgmr.msra.gmra.mxu1 %v2040_v24 }
 0x9f9   :  { %2158 = vmatpush1.bf16.msra.mxu0 %v4253_v55  ;;  %2199 = vmatpush1.bf16.msra.mxu1 %v4258_v34 }
 0x9fa   :  { %2159 = vmatprep.subr.bf16.mxu0 %v4267_v15  ;;  %2200 = vmatprep.subr.bf16.mxu1 %v4272_v16 }
 0x9fb   :  { %2189 = vmatprep.mubr.bf16.mxu0 %v5066_v53  ;;  %2230 = vmatprep.mubr.bf16.mxu1 %v5066_v53 }
 0x9fd   :  { %2160 = vmatpush1.bf16.msra.mxu0 %v4277_v28  ;;  %2201 = vmatpush1.bf16.msra.mxu1 %v4282_v29 }
 0x9fe   :  { %2161 = vmatprep.subr.bf16.mxu0 %v4291_v30  ;;  %2202 = vmatprep.subr.bf16.mxu1 %v4296_v31 }
 0xa01   :  { %2162 = vmatpush1.bf16.msra.mxu0 %v4301_v32  ;;  %2203 = vmatpush1.bf16.msra.mxu1 %v4306_v5 }
 0xa02   :  { %2163 = vmatprep.subr.bf16.mxu0 %v4315_v8  ;;  %2204 = vmatprep.subr.bf16.mxu1 %v4320_v9 }
 0xa05   :  { %2164 = vmatpush1.bf16.msra.mxu0 %v4325_v44  ;;  %2205 = vmatpush1.bf16.msra.mxu1 %v4330_v56 }
 0xa06   :  { %2165 = vmatprep.subr.bf16.mxu0 %v4335_v57  ;;  %2206 = vmatprep.subr.bf16.mxu1 %v4340_v58 }
 0xa09   :  { %2166 = vmatpush1.bf16.msra.mxu0 %v4349_v59  ;;  %2207 = vmatpush1.bf16.msra.mxu1 %v4354_v0 }
 0xa0a   :  { %2167 = vmatprep.subr.bf16.mxu0 %v4361_v6  ;;  %2208 = vmatprep.subr.bf16.mxu1 %v4366_v60 }
 0xa0d   :  { %2168 = vmatpush1.bf16.msra.mxu0 %v4373_v62  ;;  %2209 = vmatpush1.bf16.msra.mxu1 %v4378_v33 }
 0xa0e   :  { %2169 = vmatprep.subr.bf16.mxu0 %v4387_v36  ;;  %2210 = vmatprep.subr.bf16.mxu1 %v4392_v39 }
 0xa11   :  { %2170 = vmatpush1.bf16.msra.mxu0 %v4397_v40  ;;  %2211 = vmatpush1.bf16.msra.mxu1 %v4402_v63 }
 0xa12   :  { %2171 = vmatprep.subr.bf16.mxu0 %v4411_v43  ;;  %2212 = vmatprep.subr.bf16.mxu1 %v4416_v61 }
 0xa15   :  { %2172 = vmatpush1.bf16.msra.mxu0 %v4421_v45  ;;  %2213 = vmatpush1.bf16.msra.mxu1 %v4426_v46 }
 0xa16   :  { %2273 = vmatprep.subr.bf16.mxu0 %v4243_v47  ;;  %2314 = vmatprep.subr.bf16.mxu1 %v4248_v54 }
 0xab8   :  { %v2075_v26 = vpop.f32.mrf.mxu0  ;;  %v2116_v35 = vpop.f32.mrf.mxu1 }
 0xab9   :  { %v2123_v51 = vadd.f32 %v2075_v26, %v1407_v14  ;;  %v2125_v21 = vadd.f32 %v2116_v35, %v1460_v11  ;;  %v1413_v11 = vadd.f32 %v5070_v52, %v4549_v48 }
 0xaba   :  { %v2077_v49 = vpop.f32.mrf.mxu0  ;;  %v2118_v25 = vpop.f32.mrf.mxu1 }
 0xabb   :  { %v2906_v7 = vmul.f32 -1.442695, %v2123_v51  ;;  %v2124_v3 = vadd.f32 %v2077_v49, %v1409_v42  ;;  %v2908_v13 = vmul.f32 -1.442695, %v2125_v21  ;;  %v2126_v4 = vadd.f32 %v2118_v25, %v1462_v41 }
 0xabc   :  { %v2079_v20 = vpop.f32.mrf.mxu0  ;;  %v2120_v23 = vpop.f32.mrf.mxu1 }
 0xabd   :  { %3231 = vpow2.f32 %v2906_v7  ;;  %v2907_v38 = vmul.f32 -1.442695, %v2124_v3 }
 0xabe   :  { %v2080_v37 = vpop.f32.mrf.mxu0  ;;  %v2121_v2 = vpop.f32.mrf.mxu1 }
 0xabf   :  { %3233 = vpow2.f32 %v2907_v38 }
 0xac0   :  { %3235 = vpow2.f32 %v2908_v13 }
 0xac1   :  { %3237 = vtanh.f32 %v2126_v4 }
 0xaca   :  { %v3232_v50 = vpop.eup %3231 }
 0xacb   :  { %v2136_v10 = vadd.f32 1.0, %v3232_v50 }
 0xacc   :  { %v3234_v19 = vpop.eup %3233 }
 0xacd   :  { %3239 = vrcp.f32 %v2136_v10  ;;  %v2137_v22 = vadd.f32 1.0, %v3234_v19  ;;  %v3236_v24 = vpop.eup %3235 }
 0xace   :  { %v3238_v14 = vpop.eup %3237  ;;  %v2138_v49 = vadd.f32 1.0, %v3236_v24 }
 0xacf   :  { %3241 = vrcp.f32 %v2137_v22 }
 0xad0   :  { %3243 = vrcp.f32 %v2138_v49 }
 0xada   :  { %v3240_v26 = vpop.eup %3239 }
 0xadb   :  { %v2147_v42 = vmul.f32 %v3240_v26, %v3238_v14  ;;  %v5072_v26 = vld [vmem:[#allocation10_spill] sm:$0xff] }
 0xadc   :  { %v3242_v51 = vpop.eup %3241 }
 0xadd   :  { %v2146_v35 = vmul.f32 %v3242_v51, %v4612_v18  ;;  %v3244_v25 = vpop.eup %3243  ;;  %v5069_v18 = vld [vmem:[#allocation7_spill] sm:$0xff] }
 0xade   :  { %v1411_v38 = vadd.f32 %v5069_v18, %v4543_v27 }
 0xadf   :  { %v4661_v7 = vadd.f32 %v2147_v42, %v2146_v35  ;;  %v1466_v42 = vadd.f32 %v5072_v26, %v4560_v12 }
 0xae1   :  { %3245 = vtanh.f32 %v4661_v7 }
 0xaee   :  { %v3246_v3 = vpop.eup %3245 }
 0xaef   :  { %v2150_v20 = vmul.f32 %v3246_v3, %v3244_v25 }
 0xaf1   :  { %2151 = vst [vmem:[%s5041_s4 + $0x10] sm:$0xff] %v2150_v20  ;;  %v2156_v23 = vpack.c.bf16 %v2150_v20, %v2150_v20 }
 0xaf3   :  { %2190 = vmatmul.mubr.bf16.vlgmr.msra.gmra.mxu0 %v2156_v23  ;;  %2231 = vmatmul.mubr.bf16.vlgmr.msra.gmra.mxu1 %v2156_v23 }
 0xaf4   :  { %2274 = vmatpush1.bf16.msra.mxu0 %v4253_v55  ;;  %2315 = vmatpush1.bf16.msra.mxu1 %v4258_v34 }
 0xaf5   :  { %2275 = vmatprep.subr.bf16.mxu0 %v4267_v15  ;;  %2316 = vmatprep.subr.bf16.mxu1 %v4272_v16 }
 0xaf6   :  { %2305 = vmatprep.mubr.bf16.mxu0 %v5066_v53  ;;  %2346 = vmatprep.mubr.bf16.mxu1 %v5066_v53 }
 0xaf8   :  { %2276 = vmatpush1.bf16.msra.mxu0 %v4277_v28  ;;  %2317 = vmatpush1.bf16.msra.mxu1 %v4282_v29 }
 0xaf9   :  { %2277 = vmatprep.subr.bf16.mxu0 %v4291_v30  ;;  %2318 = vmatprep.subr.bf16.mxu1 %v4296_v31 }
 0xafc   :  { %2278 = vmatpush1.bf16.msra.mxu0 %v4301_v32  ;;  %2319 = vmatpush1.bf16.msra.mxu1 %v4306_v5 }
 0xafd   :  { %2279 = vmatprep.subr.bf16.mxu0 %v4315_v8  ;;  %2320 = vmatprep.subr.bf16.mxu1 %v4320_v9 }
 0xb00   :  { %2280 = vmatpush1.bf16.msra.mxu0 %v4325_v44  ;;  %2321 = vmatpush1.bf16.msra.mxu1 %v4330_v56 }
 0xb01   :  { %2281 = vmatprep.subr.bf16.mxu0 %v4335_v57  ;;  %2322 = vmatprep.subr.bf16.mxu1 %v4340_v58 }
 0xb04   :  { %2282 = vmatpush1.bf16.msra.mxu0 %v4349_v59  ;;  %2323 = vmatpush1.bf16.msra.mxu1 %v4354_v0 }
 0xb05   :  { %2283 = vmatprep.subr.bf16.mxu0 %v4361_v6  ;;  %2324 = vmatprep.subr.bf16.mxu1 %v4366_v60 }
 0xb08   :  { %2284 = vmatpush1.bf16.msra.mxu0 %v4373_v62  ;;  %2325 = vmatpush1.bf16.msra.mxu1 %v4378_v33 }
 0xb09   :  { %2285 = vmatprep.subr.bf16.mxu0 %v4387_v36  ;;  %2326 = vmatprep.subr.bf16.mxu1 %v4392_v39 }
 0xb0c   :  { %2286 = vmatpush1.bf16.msra.mxu0 %v4397_v40  ;;  %2327 = vmatpush1.bf16.msra.mxu1 %v4402_v63 }
 0xb0d   :  { %2287 = vmatprep.subr.bf16.mxu0 %v4411_v43  ;;  %2328 = vmatprep.subr.bf16.mxu1 %v4416_v61 }
 0xb10   :  { %2288 = vmatpush1.bf16.msra.mxu0 %v4421_v45  ;;  %2329 = vmatpush1.bf16.msra.mxu1 %v4426_v46 }
 0xb11   :  { %2389 = vmatprep.subr.bf16.mxu0 %v4243_v47  ;;  %2430 = vmatprep.subr.bf16.mxu1 %v4248_v54  ;;  %v5071_v54 = vld [vmem:[#allocation8_spill] sm:$0xff] }
 0xb12   :  { %v1464_v24 = vadd.f32 %v5071_v54, %v4557_v17 }
 0xbb3   :  { %v2191_v37 = vpop.f32.mrf.mxu0  ;;  %v2232_v2 = vpop.f32.mrf.mxu1 }
 0xbb4   :  { %v2239_v21 = vadd.f32 %v2191_v37, %v1411_v38  ;;  %v2241_v14 = vadd.f32 %v2232_v2, %v1464_v24 }
 0xbb5   :  { %v2193_v1 = vpop.f32.mrf.mxu0  ;;  %v2234_v41 = vpop.f32.mrf.mxu1 }
 0xbb6   :  { %v2909_v13 = vmul.f32 -1.442695, %v2239_v21  ;;  %v2240_v4 = vadd.f32 %v2193_v1, %v1413_v11  ;;  %v2911_v51 = vmul.f32 -1.442695, %v2241_v14  ;;  %v2242_v49 = vadd.f32 %v2234_v41, %v1466_v42 }
 0xbb7   :  { %v2195_v50 = vpop.f32.mrf.mxu0  ;;  %v2236_v10 = vpop.f32.mrf.mxu1 }
 0xbb8   :  { %3247 = vpow2.f32 %v2909_v13  ;;  %v2910_v19 = vmul.f32 -1.442695, %v2240_v4 }
 0xbb9   :  { %v2196_v47 = vpop.f32.mrf.mxu0  ;;  %v2237_v22 = vpop.f32.mrf.mxu1 }
 0xbba   :  { %3249 = vpow2.f32 %v2910_v19 }
 0xbbb   :  { %3251 = vpow2.f32 %v2911_v51  ;;  %v4778_v51 = vld [vmem:[%s5035_s1 + $0x1e0] ss:$16 sps:$4 sm:$0xff]  }
 0xbbc   :  { %3253 = vtanh.f32 %v2242_v49  ;;  %v4784_v49 = vld [vmem:[%s5035_s1 + $0x1e8] ss:$16 sps:$4 sm:$0xff]  }
 0xbc5   :  { %v3248_v35 = vpop.eup %3247 }
 0xbc6   :  { %v2252_v25 = vadd.f32 1.0, %v3248_v35  ;;  %v4790_v35 = vld [vmem:[%s5035_s1 + $0x1c4] ss:$16 sps:$4 sm:$0xff]  }
 0xbc7   :  { %v3250_v3 = vpop.eup %3249 }
 0xbc8   :  { %3255 = vrcp.f32 %v2252_v25  ;;  %v2253_v20 = vadd.f32 1.0, %v3250_v3  ;;  %v3252_v23 = vpop.eup %3251  ;;  %v4796_v25 = vld [vmem:[%s5035_s1 + $0x1cc] ss:$16 sps:$4 sm:$0xff]   ;;  %v4804_v3 = vld [vmem:[%s5035_s1 + $0x1c0] ss:$16 sps:$4 sm:$0xff]  }
 0xbc9   :  { %v3254_v18 = vpop.eup %3253  ;;  %v2254_v11 = vadd.f32 1.0, %v3252_v23  ;;  %v4816_v23 = vld [vmem:[%s5035_s1 + $0x1a4] ss:$16 sps:$4 sm:$0xff]  }
 0xbca   :  { %3257 = vrcp.f32 %v2253_v20  ;;  %v4810_v20 = vld [vmem:[%s5035_s1 + $0x1c8] ss:$16 sps:$4 sm:$0xff]  }
 0xbcb   :  { %3259 = vrcp.f32 %v2254_v11  ;;  %v4846_v11 = vld [vmem:[%s5035_s1 + $0x18c] ss:$16 sps:$4 sm:$0xff]  }
 0xbd5   :  { %v3256_v38 = vpop.eup %3255 }
 0xbd6   :  { %v2263_v37 = vmul.f32 %v3256_v38, %v3254_v18  ;;  %v4822_v18 = vld [vmem:[%s5035_s1 + $0x1ac] ss:$16 sps:$4 sm:$0xff]   ;;  %v4828_v38 = vld [vmem:[%s5035_s1 + $0x1a0] ss:$16 sps:$4 sm:$0xff]  }
 0xbd7   :  { %v3258_v52 = vpop.eup %3257 }
 0xbd8   :  { %v2262_v2 = vmul.f32 %v3258_v52, %v4661_v7  ;;  %v3260_v1 = vpop.eup %3259  ;;  %v4840_v52 = vld [vmem:[%s5035_s1 + $0x184] ss:$16 sps:$4 sm:$0xff]  }
 0xbda   :  { %v4710_v21 = vadd.f32 %v2263_v37, %v2262_v2  ;;  %v4834_v37 = vld [vmem:[%s5035_s1 + $0x1a8] ss:$16 sps:$4 sm:$0xff]   ;;  %v4852_v2 = vld [vmem:[%s5035_s1 + $0x180] ss:$16 sps:$4 sm:$0xff]  }
 0xbdc   :  { %3261 = vtanh.f32 %v4710_v21 }
 0xbe9   :  { %v3262_v41 = vpop.eup %3261 }
 0xbea   :  { %v2266_v13 = vmul.f32 %v3262_v41, %v3260_v1  ;;  %v4864_v1 = vld [vmem:[%s5035_s1 + $0x164] ss:$16 sps:$4 sm:$0xff]   ;;  %v4870_v41 = vld [vmem:[%s5035_s1 + $0x16c] ss:$16 sps:$4 sm:$0xff]  }
 0xbec   :  { %2267 = vst [vmem:[%s5041_s4 + $0x18] sm:$0xff] %v2266_v13  ;;  %v2272_v4 = vpack.c.bf16 %v2266_v13, %v2266_v13  ;;  %v4876_v13 = vld [vmem:[%s5035_s1 + $0x160] ss:$16 sps:$4 sm:$0xff]  }
 0xbee   :  { %2306 = vmatmul.mubr.bf16.vlgmr.msra.gmra.mxu0 %v2272_v4  ;;  %2347 = vmatmul.mubr.bf16.vlgmr.msra.gmra.mxu1 %v2272_v4  ;;  %v4882_v4 = vld [vmem:[%s5035_s1 + $0x168] ss:$16 sps:$4 sm:$0xff]  }
 0xbef   :  { %2390 = vmatpush1.bf16.msra.mxu0 %v4253_v55  ;;  %2431 = vmatpush1.bf16.msra.mxu1 %v4258_v34  ;;  %v4751_v55 = vld [vmem:[%s5035_s1 + $0x1e4] ss:$16 sps:$4 sm:$0xff]   ;;  %v4757_v34 = vld [vmem:[%s5035_s1 + $0x1ec] ss:$16 sps:$4 sm:$0xff]  }
 0xbf0   :  { %2391 = vmatprep.subr.bf16.mxu0 %v4267_v15  ;;  %2432 = vmatprep.subr.bf16.mxu1 %v4272_v16  ;;  %v5073_v15 = vld [vmem:[#allocation11_spill] sm:$0xff] }
 0xbf1   :  { %2421 = vmatprep.mubr.bf16.mxu0 %v5066_v53  ;;  %2462 = vmatprep.mubr.bf16.mxu1 %v5066_v53  ;;  %v1558_v16 = vadd.f32 %v5073_v15, %v4543_v27  ;;  %v4888_v15 = vld [vmem:[%s5035_s1 + $0x144] ss:$16 sps:$4 sm:$0xff]  }
 0xbf3   :  { %2392 = vmatpush1.bf16.msra.mxu0 %v4277_v28  ;;  %2433 = vmatpush1.bf16.msra.mxu1 %v4282_v29 }
 0xbf4   :  { %2393 = vmatprep.subr.bf16.mxu0 %v4291_v30  ;;  %2434 = vmatprep.subr.bf16.mxu1 %v4296_v31  ;;  %v5074_v30 = vld [vmem:[#allocation13_spill] sm:$0xff] }
 0xbf5   :  { %v1560_v31 = vadd.f32 %v5074_v30, %v4549_v48  ;;  %v4912_v30 = vld [vmem:[%s5035_s1 + $0x124] ss:$16 sps:$4 sm:$0xff]  }
 0xbf7   :  { %2394 = vmatpush1.bf16.msra.mxu0 %v4301_v32  ;;  %2435 = vmatpush1.bf16.msra.mxu1 %v4306_v5 }
 0xbf8   :  { %2395 = vmatprep.subr.bf16.mxu0 %v4315_v8  ;;  %2436 = vmatprep.subr.bf16.mxu1 %v4320_v9 }
 0xbfb   :  { %2396 = vmatpush1.bf16.msra.mxu0 %v4325_v44  ;;  %2437 = vmatpush1.bf16.msra.mxu1 %v4330_v56 }
 0xbfc   :  { %2397 = vmatprep.subr.bf16.mxu0 %v4335_v57  ;;  %2438 = vmatprep.subr.bf16.mxu1 %v4340_v58 }
 0xbff   :  { %2398 = vmatpush1.bf16.msra.mxu0 %v4349_v59  ;;  %2439 = vmatpush1.bf16.msra.mxu1 %v4354_v0 }
 0xc00   :  { %2399 = vmatprep.subr.bf16.mxu0 %v4361_v6  ;;  %2440 = vmatprep.subr.bf16.mxu1 %v4366_v60  ;;  %v5075_v6 = vld [vmem:[#allocation12_spill] sm:$0xff] }
 0xc01   :  { %v1611_v60 = vadd.f32 %v5075_v6, %v4557_v17  ;;  %v5078_v6 = vld [vmem:[#allocation17_spill] sm:$0xff] }
 0xc03   :  { %2400 = vmatpush1.bf16.msra.mxu0 %v4373_v62  ;;  %2441 = vmatpush1.bf16.msra.mxu1 %v4378_v33  ;;  %v5076_v33 = vld [vmem:[#allocation14_spill] sm:$0xff] }
 0xc04   :  { %2401 = vmatprep.subr.bf16.mxu0 %v4387_v36  ;;  %2442 = vmatprep.subr.bf16.mxu1 %v4392_v39  ;;  %v1613_v36 = vadd.f32 %v5076_v33, %v4560_v12 }
 0xc07   :  { %2402 = vmatpush1.bf16.msra.mxu0 %v4397_v40  ;;  %2443 = vmatpush1.bf16.msra.mxu1 %v4402_v63 }
 0xc08   :  { %2403 = vmatprep.subr.bf16.mxu0 %v4411_v43  ;;  %2444 = vmatprep.subr.bf16.mxu1 %v4416_v61 }
 0xc0b   :  { %2404 = vmatpush1.bf16.msra.mxu0 %v4421_v45  ;;  %2445 = vmatpush1.bf16.msra.mxu1 %v4426_v46 }
 0xc0c   :  { %2505 = vmatprep.subr.bf16.mxu0 %v4751_v55  ;;  %2546 = vmatprep.subr.bf16.mxu1 %v4757_v34 }
 0xcae   :  { %v2307_v28 = vpop.f32.mrf.mxu0  ;;  %v2348_v29 = vpop.f32.mrf.mxu1 }
 0xcaf   :  { %v2355_v32 = vadd.f32 %v2307_v28, %v1558_v16  ;;  %v2357_v62 = vadd.f32 %v2348_v29, %v1611_v60  ;;  %v4894_v16 = vld [vmem:[%s5035_s1 + $0x14c] ss:$16 sps:$4 sm:$0xff]   ;;  %v4900_v28 = vld [vmem:[%s5035_s1 + $0x140] ss:$16 sps:$4 sm:$0xff]   ;;  %v4906_v29 = vld [vmem:[%s5035_s1 + $0x148] ss:$16 sps:$4 sm:$0xff]   ;;  %v1564_v60 = vadd.f32 %v5078_v6, %v4549_v48 }
 0xcb0   :  { %v2309_v5 = vpop.f32.mrf.mxu0  ;;  %v2350_v8 = vpop.f32.mrf.mxu1 }
 0xcb1   :  { %v2912_v9 = vmul.f32 -1.442695, %v2355_v32  ;;  %v2356_v44 = vadd.f32 %v2309_v5, %v1560_v31  ;;  %v2914_v39 = vmul.f32 -1.442695, %v2357_v62  ;;  %v2358_v40 = vadd.f32 %v2350_v8, %v1613_v36  ;;  %v4918_v31 = vld [vmem:[%s5035_s1 + $0x12c] ss:$16 sps:$4 sm:$0xff]  }
 0xcb2   :  { %v2311_v56 = vpop.f32.mrf.mxu0  ;;  %v2352_v57 = vpop.f32.mrf.mxu1  ;;  %v4924_v32 = vld [vmem:[%s5035_s1 + $0x120] ss:$16 sps:$4 sm:$0xff]   ;;  %v4930_v5 = vld [vmem:[%s5035_s1 + $0x128] ss:$16 sps:$4 sm:$0xff]   ;;  %v4936_v8 = vld [vmem:[%s5035_s1 + $0x104] ss:$16 sps:$4 sm:$0xff]  }
 0xcb3   :  { %3263 = vpow2.f32 %v2912_v9  ;;  %v2913_v58 = vmul.f32 -1.442695, %v2356_v44  ;;  %v4942_v9 = vld [vmem:[%s5035_s1 + $0x10c] ss:$16 sps:$4 sm:$0xff]   ;;  %v4948_v44 = vld [vmem:[%s5035_s1 + $0x100] ss:$16 sps:$4 sm:$0xff]  }
 0xcb4   :  { %v2312_v59 = vpop.f32.mrf.mxu0  ;;  %v2353_v0 = vpop.f32.mrf.mxu1  ;;  %v4954_v56 = vld [vmem:[%s5035_s1 + $0x108] ss:$16 sps:$4 sm:$0xff]   ;;  %v5077_v57 = vld [vmem:[#allocation15_spill] sm:$0xff] }
 0xcb5   :  { %3265 = vpow2.f32 %v2913_v58  ;;  %v1562_v58 = vadd.f32 %v5077_v57, %v4543_v27 }
 0xcb6   :  { %3267 = vpow2.f32 %v2914_v39 }
 0xcb7   :  { %3269 = vtanh.f32 %v2358_v40 }
 0xcc0   :  { %v3264_v63 = vpop.eup %3263 }
 0xcc1   :  { %v2368_v43 = vadd.f32 1.0, %v3264_v63 }
 0xcc2   :  { %v3266_v61 = vpop.eup %3265 }
 0xcc3   :  { %3271 = vrcp.f32 %v2368_v43  ;;  %v2369_v45 = vadd.f32 1.0, %v3266_v61  ;;  %v3268_v46 = vpop.eup %3267 }
 0xcc4   :  { %v3270_v7 = vpop.eup %3269  ;;  %v2370_v47 = vadd.f32 1.0, %v3268_v46 }
 0xcc5   :  { %3273 = vrcp.f32 %v2369_v45 }
 0xcc6   :  { %3275 = vrcp.f32 %v2370_v47 }
 0xcd0   :  { %v3272_v50 = vpop.eup %3271 }
 0xcd1   :  { %v2379_v10 = vmul.f32 %v3272_v50, %v3270_v7  ;;  %v5080_v50 = vld [vmem:[#allocation18_spill] sm:$0xff] }
 0xcd2   :  { %v3274_v19 = vpop.eup %3273 }
 0xcd3   :  { %v2378_v22 = vmul.f32 %v3274_v19, %v4710_v21  ;;  %v3276_v24 = vpop.eup %3275  ;;  %v4858_v21 = vld [vmem:[%s5035_s1 + $0x188] ss:$16 sps:$4 sm:$0xff]  }
 0xcd5   :  { %v4769_v54 = vadd.f32 %v2379_v10, %v2378_v22  ;;  %v1617_v10 = vadd.f32 %v5080_v50, %v4560_v12 }
 0xcd7   :  { %3277 = vtanh.f32 %v4769_v54 }
 0xce4   :  { %v3278_v14 = vpop.eup %3277 }
 0xce5   :  { %v2382_v26 = vmul.f32 %v3278_v14, %v3276_v24 }
 0xce7   :  { %2383 = vst [vmem:[%s5041_s4 + $0x20] sm:$0xff] %v2382_v26  ;;  %v2388_v42 = vpack.c.bf16 %v2382_v26, %v2382_v26 }
 0xce9   :  { %2422 = vmatmul.mubr.bf16.vlgmr.msra.gmra.mxu0 %v2388_v42  ;;  %2463 = vmatmul.mubr.bf16.vlgmr.msra.gmra.mxu1 %v2388_v42 }
 0xcea   :  { %2506 = vmatpush1.bf16.msra.mxu0 %v4778_v51  ;;  %2547 = vmatpush1.bf16.msra.mxu1 %v4784_v49 }
 0xceb   :  { %2507 = vmatprep.subr.bf16.mxu0 %v4790_v35  ;;  %2548 = vmatprep.subr.bf16.mxu1 %v4796_v25 }
 0xcec   :  { %2537 = vmatprep.mubr.bf16.mxu0 %v5066_v53  ;;  %2578 = vmatprep.mubr.bf16.mxu1 %v5066_v53 }
 0xcee   :  { %2508 = vmatpush1.bf16.msra.mxu0 %v4804_v3  ;;  %2549 = vmatpush1.bf16.msra.mxu1 %v4810_v20 }
 0xcef   :  { %2509 = vmatprep.subr.bf16.mxu0 %v4816_v23  ;;  %2550 = vmatprep.subr.bf16.mxu1 %v4822_v18 }
 0xcf2   :  { %2510 = vmatpush1.bf16.msra.mxu0 %v4828_v38  ;;  %2551 = vmatpush1.bf16.msra.mxu1 %v4834_v37 }
 0xcf3   :  { %2511 = vmatprep.subr.bf16.mxu0 %v4840_v52  ;;  %2552 = vmatprep.subr.bf16.mxu1 %v4846_v11 }
 0xcf6   :  { %2512 = vmatpush1.bf16.msra.mxu0 %v4852_v2  ;;  %2553 = vmatpush1.bf16.msra.mxu1 %v4858_v21 }
 0xcf7   :  { %2513 = vmatprep.subr.bf16.mxu0 %v4864_v1  ;;  %2554 = vmatprep.subr.bf16.mxu1 %v4870_v41 }
 0xcfa   :  { %2514 = vmatpush1.bf16.msra.mxu0 %v4876_v13  ;;  %2555 = vmatpush1.bf16.msra.mxu1 %v4882_v4 }
 0xcfb   :  { %2515 = vmatprep.subr.bf16.mxu0 %v4888_v15  ;;  %2556 = vmatprep.subr.bf16.mxu1 %v4894_v16 }
 0xcfe   :  { %2516 = vmatpush1.bf16.msra.mxu0 %v4900_v28  ;;  %2557 = vmatpush1.bf16.msra.mxu1 %v4906_v29 }
 0xcff   :  { %2517 = vmatprep.subr.bf16.mxu0 %v4912_v30  ;;  %2558 = vmatprep.subr.bf16.mxu1 %v4918_v31 }
 0xd02   :  { %2518 = vmatpush1.bf16.msra.mxu0 %v4924_v32  ;;  %2559 = vmatpush1.bf16.msra.mxu1 %v4930_v5 }
 0xd03   :  { %2519 = vmatprep.subr.bf16.mxu0 %v4936_v8  ;;  %2560 = vmatprep.subr.bf16.mxu1 %v4942_v9 }
 0xd06   :  { %2520 = vmatpush1.bf16.msra.mxu0 %v4948_v44  ;;  %2561 = vmatpush1.bf16.msra.mxu1 %v4954_v56 }
 0xd07   :  { %2621 = vmatprep.subr.bf16.mxu0 %v4751_v55  ;;  %2662 = vmatprep.subr.bf16.mxu1 %v4757_v34  ;;  %v5079_v34 = vld [vmem:[#allocation16_spill] sm:$0xff] }
 0xd08   :  { %v1615_v46 = vadd.f32 %v5079_v34, %v4557_v17 }
 0xda9   :  { %v2423_v59 = vpop.f32.mrf.mxu0  ;;  %v2464_v0 = vpop.f32.mrf.mxu1 }
 0xdaa   :  { %v2471_v62 = vadd.f32 %v2423_v59, %v1562_v58  ;;  %v2473_v7 = vadd.f32 %v2464_v0, %v1615_v46 }
 0xdab   :  { %v2425_v33 = vpop.f32.mrf.mxu0  ;;  %v2466_v36 = vpop.f32.mrf.mxu1 }
 0xdac   :  { %v2915_v39 = vmul.f32 -1.442695, %v2471_v62  ;;  %v2472_v40 = vadd.f32 %v2425_v33, %v1564_v60  ;;  %v2917_v19 = vmul.f32 -1.442695, %v2473_v7  ;;  %v2474_v22 = vadd.f32 %v2466_v36, %v1617_v10  ;;  %v5085_v7 = vld [vmem:[#allocation23_spill] sm:$0xff] }
 0xdad   :  { %v2427_v63 = vpop.f32.mrf.mxu0  ;;  %v2468_v43 = vpop.f32.mrf.mxu1  ;;  %v1572_v50 = vadd.f32 %v5085_v7, %v4543_v27 }
 0xdae   :  { %3279 = vpow2.f32 %v2915_v39  ;;  %v2916_v61 = vmul.f32 -1.442695, %v2472_v40 }
 0xdaf   :  { %v2428_v55 = vpop.f32.mrf.mxu0  ;;  %v2469_v45 = vpop.f32.mrf.mxu1 }
 0xdb0   :  { %3281 = vpow2.f32 %v2916_v61 }
 0xdb1   :  { %3283 = vpow2.f32 %v2917_v19 }
 0xdbb   :  { %v3280_v47 = vpop.eup %3279 }
 0xdbc   :  { %v2484_v24 = vadd.f32 1.0, %v3280_v47  ;;  %v5086_v47 = vld [vmem:[#allocation25_spill] sm:$0xff] }
 0xdbd   :  { %v3282_v14 = vpop.eup %3281 }
 0xdbe   :  { %3285 = vrcp.f32 %v2484_v24  ;;  %v2485_v26 = vadd.f32 1.0, %v3282_v14  ;;  %v3284_v42 = vpop.eup %3283 }
 0xdbf   :  { %3287 = vtanh.f32 %v2474_v22  ;;  %v2486_v6 = vadd.f32 1.0, %v3284_v42  ;;  %v1574_v22 = vadd.f32 %v5086_v47, %v4549_v48 }
 0xdc0   :  { %3289 = vrcp.f32 %v2485_v26 }
 0xdc1   :  { %3291 = vrcp.f32 %v2486_v6 }
 0xdcb   :  { %v3286_v57 = vpop.eup %3285 }
 0xdcc   :  { %v3288_v58 = vpop.eup %3287 }
 0xdcd   :  { %v3290_v59 = vpop.eup %3289  ;;  %v2495_v60 = vmul.f32 %v3288_v58, %v3286_v57 }
 0xdce   :  { %v2494_v0 = vmul.f32 %v3290_v59, %v4769_v54  ;;  %v3292_v33 = vpop.eup %3291 }
 0xdd0   :  { %v4968_v62 = vadd.f32 %v2495_v60, %v2494_v0 }
 0xdd2   :  { %3293 = vtanh.f32 %v4968_v62 }
 0xddf   :  { %v3294_v36 = vpop.eup %3293 }
 0xde0   :  { %v2498_v39 = vmul.f32 %v3294_v36, %v3292_v33  ;;  %v5088_v36 = vld [vmem:[#allocation26_spill] sm:$0xff] }
 0xde2   :  { %2499 = vst [vmem:[%s5041_s4 + $0x28] sm:$0xff] %v2498_v39  ;;  %v2504_v40 = vpack.c.bf16 %v2498_v39, %v2498_v39  ;;  %v1627_v39 = vadd.f32 %v5088_v36, %v4560_v12 }
 0xde4   :  { %2538 = vmatmul.mubr.bf16.vlgmr.msra.gmra.mxu0 %v2504_v40  ;;  %2579 = vmatmul.mubr.bf16.vlgmr.msra.gmra.mxu1 %v2504_v40 }
 0xde5   :  { %2622 = vmatpush1.bf16.msra.mxu0 %v4778_v51  ;;  %2663 = vmatpush1.bf16.msra.mxu1 %v4784_v49 }
 0xde6   :  { %2623 = vmatprep.subr.bf16.mxu0 %v4790_v35  ;;  %2664 = vmatprep.subr.bf16.mxu1 %v4796_v25  ;;  %v5082_v35 = vld [vmem:[#allocation21_spill] sm:$0xff] }
 0xde7   :  { %2653 = vmatprep.mubr.bf16.mxu0 %v5066_v53  ;;  %2694 = vmatprep.mubr.bf16.mxu1 %v5066_v53  ;;  %v5081_v53 = vld [vmem:[#allocation19_spill] sm:$0xff]  ;;  %v1570_v25 = vadd.f32 %v5082_v35, %v4549_v48 }
 0xde8   :  { %v1568_v54 = vadd.f32 %v5081_v53, %v4543_v27 }
 0xde9   :  { %2624 = vmatpush1.bf16.msra.mxu0 %v4804_v3  ;;  %2665 = vmatpush1.bf16.msra.mxu1 %v4810_v20 }
 0xdea   :  { %2625 = vmatprep.subr.bf16.mxu0 %v4816_v23  ;;  %2666 = vmatprep.subr.bf16.mxu1 %v4822_v18 }
 0xded   :  { %2626 = vmatpush1.bf16.msra.mxu0 %v4828_v38  ;;  %2667 = vmatpush1.bf16.msra.mxu1 %v4834_v37 }
 0xdee   :  { %2627 = vmatprep.subr.bf16.mxu0 %v4840_v52  ;;  %2668 = vmatprep.subr.bf16.mxu1 %v4846_v11 }
 0xdf1   :  { %2628 = vmatpush1.bf16.msra.mxu0 %v4852_v2  ;;  %2669 = vmatpush1.bf16.msra.mxu1 %v4858_v21 }
 0xdf2   :  { %2629 = vmatprep.subr.bf16.mxu0 %v4864_v1  ;;  %2670 = vmatprep.subr.bf16.mxu1 %v4870_v41  ;;  %v5083_v1 = vld [vmem:[#allocation20_spill] sm:$0xff] }
 0xdf3   :  { %v1621_v41 = vadd.f32 %v5083_v1, %v4557_v17 }
 0xdf5   :  { %2630 = vmatpush1.bf16.msra.mxu0 %v4876_v13  ;;  %2671 = vmatpush1.bf16.msra.mxu1 %v4882_v4  ;;  %v5084_v4 = vld [vmem:[#allocation22_spill] sm:$0xff] }
 0xdf6   :  { %2631 = vmatprep.subr.bf16.mxu0 %v4888_v15  ;;  %2672 = vmatprep.subr.bf16.mxu1 %v4894_v16  ;;  %v1623_v15 = vadd.f32 %v5084_v4, %v4560_v12 }
 0xdf9   :  { %2632 = vmatpush1.bf16.msra.mxu0 %v4900_v28  ;;  %2673 = vmatpush1.bf16.msra.mxu1 %v4906_v29 }
 0xdfa   :  { %2633 = vmatprep.subr.bf16.mxu0 %v4912_v30  ;;  %2674 = vmatprep.subr.bf16.mxu1 %v4918_v31 }
 0xdfd   :  { %2634 = vmatpush1.bf16.msra.mxu0 %v4924_v32  ;;  %2675 = vmatpush1.bf16.msra.mxu1 %v4930_v5 }
 0xdfe   :  { %2635 = vmatprep.subr.bf16.mxu0 %v4936_v8  ;;  %2676 = vmatprep.subr.bf16.mxu1 %v4942_v9 }
 0xe01   :  { %2636 = vmatpush1.bf16.msra.mxu0 %v4948_v44  ;;  %2677 = vmatpush1.bf16.msra.mxu1 %v4954_v56 }
 0xea4   :  { %v2539_v51 = vpop.f32.mrf.mxu0  ;;  %v2580_v49 = vpop.f32.mrf.mxu1 }
 0xea5   :  { %v2587_v3 = vadd.f32 %v2539_v51, %v1568_v54  ;;  %v2589_v13 = vadd.f32 %v2580_v49, %v1621_v41 }
 0xea6   :  { %v2541_v20 = vpop.f32.mrf.mxu0  ;;  %v2582_v23 = vpop.f32.mrf.mxu1 }
 0xea7   :  { %v2918_v18 = vmul.f32 -1.442695, %v2587_v3  ;;  %v2588_v38 = vadd.f32 %v2541_v20, %v1570_v25  ;;  %v2920_v16 = vmul.f32 -1.442695, %v2589_v13  ;;  %v2590_v28 = vadd.f32 %v2582_v23, %v1623_v15 }
 0xea8   :  { %v2543_v37 = vpop.f32.mrf.mxu0  ;;  %v2584_v52 = vpop.f32.mrf.mxu1 }
 0xea9   :  { %3295 = vpow2.f32 %v2918_v18  ;;  %v2919_v11 = vmul.f32 -1.442695, %v2588_v38 }
 0xeaa   :  { %v2544_v2 = vpop.f32.mrf.mxu0  ;;  %v2585_v21 = vpop.f32.mrf.mxu1 }
 0xeab   :  { %3297 = vpow2.f32 %v2919_v11 }
 0xeac   :  { %3299 = vpow2.f32 %v2920_v16 }
 0xead   :  { %3301 = vtanh.f32 %v2590_v28 }
 0xeb6   :  { %v3296_v29 = vpop.eup %3295 }
 0xeb7   :  { %v2600_v30 = vadd.f32 1.0, %v3296_v29 }
 0xeb8   :  { %v3298_v31 = vpop.eup %3297 }
 0xeb9   :  { %3303 = vrcp.f32 %v2600_v30  ;;  %v2601_v32 = vadd.f32 1.0, %v3298_v31  ;;  %v3300_v5 = vpop.eup %3299 }
 0xeba   :  { %v3302_v8 = vpop.eup %3301  ;;  %v2602_v63 = vadd.f32 1.0, %v3300_v5 }
 0xebb   :  { %3305 = vrcp.f32 %v2601_v32 }
 0xebc   :  { %3307 = vrcp.f32 %v2602_v63 }
 0xec6   :  { %v3304_v9 = vpop.eup %3303 }
 0xec7   :  { %v2611_v44 = vmul.f32 %v3304_v9, %v3302_v8 }
 0xec8   :  { %v3306_v56 = vpop.eup %3305 }
 0xec9   :  { %v2610_v43 = vmul.f32 %v3306_v56, %v4968_v62  ;;  %v3308_v55 = vpop.eup %3307  ;;  %v5087_v62 = vld [vmem:[#allocation24_spill] sm:$0xff] }
 0xeca   :  { %v1625_v27 = vadd.f32 %v5087_v62, %v4557_v17 }
 0xecb   :  { %v2612_v61 = vadd.f32 %v2611_v44, %v2610_v43 }
 0xecd   :  { %3309 = vtanh.f32 %v2612_v61 }
 0xeda   :  { %v3310_v45 = vpop.eup %3309 }
 0xedb   :  { %v2614_v34 = vmul.f32 %v3310_v45, %v3308_v55 }
 0xedd   :  { %2615 = vst [vmem:[%s5041_s4 + $0x30] sm:$0xff] %v2614_v34  ;;  %v2620_v46 = vpack.c.bf16 %v2614_v34, %v2614_v34 }
 0xedf   :  { %2654 = vmatmul.mubr.bf16.vlgmr.msra.gmra.mxu0 %v2620_v46  ;;  %2695 = vmatmul.mubr.bf16.vlgmr.msra.gmra.mxu1 %v2620_v46 }
 0xf9f   :  { %v2655_v10 = vpop.f32.mrf.mxu0  ;;  %v2696_v19 = vpop.f32.mrf.mxu1 }
 0xfa0   :  { %v2703_v24 = vadd.f32 %v2655_v10, %v1572_v50  ;;  %v2705_v33 = vadd.f32 %v2696_v19, %v1625_v27 }
 0xfa1   :  { %v2657_v14 = vpop.f32.mrf.mxu0  ;;  %v2698_v26 = vpop.f32.mrf.mxu1 }
 0xfa2   :  { %v2921_v42 = vmul.f32 -1.442695, %v2703_v24  ;;  %v2704_v57 = vadd.f32 %v2657_v14, %v1574_v22  ;;  %v2923_v48 = vmul.f32 -1.442695, %v2705_v33  ;;  %v2706_v40 = vadd.f32 %v2698_v26, %v1627_v39 }
 0xfa3   :  { %v2659_v58 = vpop.f32.mrf.mxu0  ;;  %v2700_v59 = vpop.f32.mrf.mxu1 }
 0xfa4   :  { %3311 = vpow2.f32 %v2921_v42  ;;  %v2922_v6 = vmul.f32 -1.442695, %v2704_v57 }
 0xfa5   :  { %v2660_v0 = vpop.f32.mrf.mxu0  ;;  %v2701_v60 = vpop.f32.mrf.mxu1 }
 0xfa6   :  { %3313 = vpow2.f32 %v2922_v6 }
 0xfa7   :  { %3315 = vpow2.f32 %v2923_v48 }
 0xfa8   :  { %3317 = vtanh.f32 %v2706_v40 }
 0xfb1   :  { %v3312_v53 = vpop.eup %3311 }
 0xfb2   :  { %v2716_v54 = vadd.f32 1.0, %v3312_v53 }
 0xfb3   :  { %v3314_v51 = vpop.eup %3313 }
 0xfb4   :  { %3319 = vrcp.f32 %v2716_v54  ;;  %v2717_v49 = vadd.f32 1.0, %v3314_v51  ;;  %v3316_v35 = vpop.eup %3315 }
 0xfb5   :  { %v3318_v25 = vpop.eup %3317  ;;  %v2718_v17 = vadd.f32 1.0, %v3316_v35 }
 0xfb6   :  { %3321 = vrcp.f32 %v2717_v49 }
 0xfb7   :  { %3323 = vrcp.f32 %v2718_v17 }
 0xfc1   :  { %v3320_v3 = vpop.eup %3319 }
 0xfc2   :  { %v2727_v20 = vmul.f32 %v3320_v3, %v3318_v25 }
 0xfc3   :  { %v3322_v23 = vpop.eup %3321 }
 0xfc4   :  { %v2726_v18 = vmul.f32 %v3322_v23, %v2612_v61  ;;  %v3324_v12 = vpop.eup %3323 }
 0xfc6   :  { %v2728_v38 = vadd.f32 %v2727_v20, %v2726_v18 }
 0xfc8   :  { %3325 = vtanh.f32 %v2728_v38  ;;  %2925 = vst [vmem:[%s5038_s6 + $0x8] sm:$0xff] %v2728_v38 }
 0xfd5   :  { %v3326_v37 = vpop.eup %3325 }
 0xfd6   :  { %v2730_v52 = vmul.f32 %v3326_v37, %v3324_v12 }
 0xfd8   :  { %2731 = vst [vmem:[%s5041_s4 + $0x38] sm:$0xff] %v2730_v52  ;;  %2924 = vst [vmem:[%s5039_s5 + $0x8] sm:$0xff] %v2730_v52 }

</bundles_post_ra>
